<compile_context>
chip_gen: v7x
topology: tpu7x:2x2x1
jax: 0.10.0
libtpu: 0.0.40
codegen_flags: <defaults>
</compile_context>

<pallas_src>
import functools

import numpy as np
import jax
import jax.numpy as jnp
from jax.experimental import pallas as pl
from jax.experimental.pallas import tpu as pltpu


_WIDTHS = [8, 16, 24, 32, 48, 64]     # block1..block6 output channels
_STRIDES = [1, 2, 2, 2, 2, 2]         # block1 keeps resolution, rest halve it


# ------------------------------ kernel helpers -------------------------------

def _shift_cols(a, k):
    """b[:, s] = a[:, s + k] if 0 <= s + k < S else 0   (k is a Python int)."""
    cin, s = a.shape
    if k == 0:
        return a
    if abs(k) >= s:
        return jnp.zeros_like(a)
    zeros = jnp.zeros((cin, abs(k)), a.dtype)
    if k > 0:
        return jnp.concatenate([a[:, k:], zeros], axis=1)
    return jnp.concatenate([zeros, a[:, :k]], axis=1)


def _encoder_kernel(*refs, widths, strides, hw0):
    """One batch element; all six conv+ReLU blocks, VMEM-resident.

    refs = (x, w1, b1, ..., w6, b6, sel_1..sel_{#stride2}, o1..o5)
      x    : (1, Cin0, H0*W0)
      w_l  : (Cout_l, 9*Cin_l)   im2col-packed weights
      b_l  : (Cout_l, 1)
      sel_k: (S_in, S_in/4)      0/1 stride-2 spatial selection matrix
      o_k  : (1, C, H*W)         c1..c5
    """
    nblk = len(widths)
    n_s2 = sum(1 for st in strides if st == 2)
    x_ref = refs[0]
    wb_refs = refs[1:1 + 2 * nblk]
    sel_refs = refs[1 + 2 * nblk:1 + 2 * nblk + n_s2]
    o_refs = refs[1 + 2 * nblk + n_s2:]

    a = x_ref[0]                          # (Cin0, S0), spatial lane-dense
    h = w = hw0
    sel_i = 0
    out_i = 0
    for l in range(nblk):
        s = h * w
        wmat = wb_refs[2 * l][...]        # (Cout, 9*Cin)
        bias = wb_refs[2 * l + 1][...]    # (Cout, 1)

        # Column-edge validity masks.  Row-edge taps land outside [0, S) in
        # the flattened index and are already zero-filled by _shift_cols.
        c_idx = jax.lax.broadcasted_iota(jnp.int32, (1, s), 1) % w
        m_left = (c_idx != 0).astype(a.dtype)        # tap col offset -1
        m_right = (c_idx != (w - 1)).astype(a.dtype)  # tap col offset +1

        # im2col patch: 9 shifted+masked copies stacked on the contraction dim.
        pieces = []
        for da in (-1, 0, 1):
            for db in (-1, 0, 1):
                p = _shift_cols(a, da * w + db)
                if db == -1:
                    p = p * m_left
                elif db == 1:
                    p = p * m_right
                pieces.append(p)
        patch = jnp.concatenate(pieces, axis=0)       # (9*Cin, S)

        # Single MXU matmul per block, lane-dense (Cout, S) result.
        out = jnp.dot(wmat, patch, preferred_element_type=jnp.float32)
        out = jnp.maximum(out + bias, 0.0)

        if strides[l] == 2:
            # Fold the stride-2 subsampling into one matmul with a 0/1
            # selection matrix (no lane-strided loads).
            out = jnp.dot(out, sel_refs[sel_i][...],
                          preferred_element_type=jnp.float32)
            sel_i += 1
            h //= 2
            w //= 2

        a = out
        if l >= 1:                                    # blocks 2..6 -> c1..c5
            o_refs[out_i][0] = a.astype(o_refs[out_i].dtype)
            out_i += 1


# ------------------------- parameters (synthetic blocks) ---------------------

def init_params(key, in_channels):
    """Raw HWIO conv weights + biases for the six synthesized blocks."""
    params = []
    cin = in_channels
    for cout in _WIDTHS:
        key, kw, kb = jax.random.split(key, 3)
        scale = 1.0 / np.sqrt(9.0 * cin)
        w = jax.random.normal(kw, (3, 3, cin, cout), jnp.float32) * scale
        b = jax.random.normal(kb, (cout,), jnp.float32) * 0.01
        params.append((w, b))
        cin = cout
    return params


def prepare_params(params):
    """One-time repack: (3,3,Cin,Cout) HWIO -> (Cout, 9*Cin) matching the
    kernel's tap ordering (row-major over (di, dj), Cin-minor); bias->(Cout,1).
    Done once, outside the forward, so no per-forward weight shuffling."""
    packed = []
    for w, b in params:
        cin, cout = w.shape[2], w.shape[3]
        wmat = jnp.transpose(w, (3, 0, 1, 2)).reshape(cout, 9 * cin)
        packed.append((wmat, b.reshape(cout, 1)))
    return packed


def _make_sel(hw):
    """(H*W, (H/2)*(W/2)) 0/1 matrix selecting even-row / even-col positions."""
    h = w = hw
    ho, wo = h // 2, w // 2
    sel = np.zeros((h * w, ho * wo), np.float32)
    for yo in range(ho):
        for xo in range(wo):
            sel[(2 * yo) * w + 2 * xo, yo * wo + xo] = 1.0
    return sel


# ------------------------------- forward pass --------------------------------

def base_encoder_b5_forward(packed_params, inputs_nchw):
    """wavelets_mode=False path: returns (c1..c5), all NCHW, one fused call."""
    # TODO(synk): wavelets_mode branch needs two-argument encoder blocks that
    # the base class never defines, so only the wavelets_mode=False path is
    # implemented.
    n, c0, h, w = inputs_nchw.shape
    assert h == w and h % 32 == 0, "expect square spatial dims, multiple of 32"
    s0 = h * w
    x = inputs_nchw.reshape(n, c0, s0)            # zero-copy NCHW -> (N, C, S)

    # Per-block input spatial sizes: hs[l] is the input H(=W) of block l.
    hs = [h]
    for st in _STRIDES:
        hs.append(hs[-1] // st)

    sels = [jnp.asarray(_make_sel(hs[l])) for l in range(len(_STRIDES))
            if _STRIDES[l] == 2]

    in_specs = [pl.BlockSpec((1, c0, s0), lambda i: (i, 0, 0))]
    flat_in = [x]
    for wmat, b2 in packed_params:
        in_specs.append(pl.BlockSpec(wmat.shape, lambda i: (0, 0)))
        flat_in.append(wmat)
        in_specs.append(pl.BlockSpec(b2.shape, lambda i: (0, 0)))
        flat_in.append(b2)
    for sel in sels:
        in_specs.append(pl.BlockSpec(sel.shape, lambda i: (0, 0)))
        flat_in.append(sel)

    out_shapes, out_specs = [], []
    for l in range(1, len(_WIDTHS)):
        cl, hl = _WIDTHS[l], hs[l + 1]
        out_shapes.append(jax.ShapeDtypeStruct((n, cl, hl * hl), jnp.float32))
        out_specs.append(pl.BlockSpec((1, cl, hl * hl), lambda i: (i, 0, 0)))

    kernel = functools.partial(_encoder_kernel, widths=tuple(_WIDTHS),
                               strides=tuple(_STRIDES), hw0=h)

    outs = pl.pallas_call(
        kernel,
        out_shape=tuple(out_shapes),
        grid_spec=pltpu.PrefetchScalarGridSpec(
            num_scalar_prefetch=0,
            grid=(n,),
            in_specs=in_specs,
            out_specs=out_specs,
        ),
        compiler_params=pltpu.CompilerParams(
            dimension_semantics=("parallel",)),
    )(*flat_in)

    feats = []
    for l in range(1, len(_WIDTHS)):
        cl, hl = _WIDTHS[l], hs[l + 1]
        feats.append(outs[l - 1].reshape(n, cl, hl, hl))   # zero-copy to NCHW
    return tuple(feats)


# ------------------------------ reference (XLA) ------------------------------

def _reference_forward(params, inputs_nchw):
    x = inputs_nchw
    feats = []
    for i, ((w, b), s) in enumerate(zip(params, _STRIDES)):
        y = jax.lax.conv_general_dilated(
            x, w, window_strides=(s, s), padding=((1, 1), (1, 1)),
            dimension_numbers=("NCHW", "HWIO", "NCHW"))
        x = jnp.maximum(y + b.reshape(1, -1, 1, 1), 0.0)
        if i >= 1:
            feats.append(x)
    return tuple(feats)


if __name__ == "__main__":
    key = jax.random.PRNGKey(0)
    key, kx = jax.random.split(key)
    N, C, H, W = 2, 3, 32, 32
    inputs = jax.random.normal(kx, (N, C, H, W), jnp.float32)

    raw_params = init_params(jax.random.PRNGKey(1), in_channels=C)
    packed_params = prepare_params(raw_params)

    fwd = jax.jit(base_encoder_b5_forward)
    outs = jax.block_until_ready(fwd(packed_params, inputs))

    refs = _reference_forward(raw_params, inputs)
    for got, want in zip(outs, refs):
        assert got.shape == want.shape, (got.shape, want.shape)
        np.testing.assert_allclose(np.asarray(got), np.asarray(want),
                                   rtol=1e-3, atol=1e-3)

    print("KERNEL_OK")
</pallas_src>

<mosaic_0001>
module attributes {stable_mosaic.version = 11 : i64} {
  func.func @_encoder_kernel(%arg0: i32, %arg1: memref<1x3x1024xf32, #tpu.memory_space<vmem>>, %arg2: memref<8x27xf32, #tpu.memory_space<vmem>>, %arg3: memref<8x1xf32, #tpu.memory_space<vmem>>, %arg4: memref<16x72xf32, #tpu.memory_space<vmem>>, %arg5: memref<16x1xf32, #tpu.memory_space<vmem>>, %arg6: memref<24x144xf32, #tpu.memory_space<vmem>>, %arg7: memref<24x1xf32, #tpu.memory_space<vmem>>, %arg8: memref<32x216xf32, #tpu.memory_space<vmem>>, %arg9: memref<32x1xf32, #tpu.memory_space<vmem>>, %arg10: memref<48x288xf32, #tpu.memory_space<vmem>>, %arg11: memref<48x1xf32, #tpu.memory_space<vmem>>, %arg12: memref<64x432xf32, #tpu.memory_space<vmem>>, %arg13: memref<64x1xf32, #tpu.memory_space<vmem>>, %arg14: memref<1024x256xf32, #tpu.memory_space<vmem>>, %arg15: memref<256x64xf32, #tpu.memory_space<vmem>>, %arg16: memref<64x16xf32, #tpu.memory_space<vmem>>, %arg17: memref<16x4xf32, #tpu.memory_space<vmem>>, %arg18: memref<4x1xf32, #tpu.memory_space<vmem>>, %arg19: memref<1x16x256xf32, #tpu.memory_space<vmem>>, %arg20: memref<1x24x64xf32, #tpu.memory_space<vmem>>, %arg21: memref<1x32x16xf32, #tpu.memory_space<vmem>>, %arg22: memref<1x48x4xf32, #tpu.memory_space<vmem>>, %arg23: memref<1x64x1xf32, #tpu.memory_space<vmem>>) attributes {dimension_semantics = [#tpu.dimension_semantics<parallel>], iteration_bounds = array<i64: 2>, scalar_prefetch = 0 : i64, scratch_operands = 0 : i64, tpu.core_type = #tpu.core_type<tc>, window_params = [{transform_indices = @transform_0, window_bounds = array<i64: 1, 3, 1024>}, {pipeline_mode = #tpu.pipeline_mode<synchronous>, transform_indices = @transform_1, window_bounds = array<i64: 8, 27>}, {pipeline_mode = #tpu.pipeline_mode<synchronous>, transform_indices = @transform_2, window_bounds = array<i64: 8, 1>}, {pipeline_mode = #tpu.pipeline_mode<synchronous>, transform_indices = @transform_3, window_bounds = array<i64: 16, 72>}, {pipeline_mode = #tpu.pipeline_mode<synchronous>, transform_indices = @transform_4, window_bounds = array<i64: 16, 1>}, {pipeline_mode = #tpu.pipeline_mode<synchronous>, transform_indices = @transform_5, window_bounds = array<i64: 24, 144>}, {pipeline_mode = #tpu.pipeline_mode<synchronous>, transform_indices = @transform_6, window_bounds = array<i64: 24, 1>}, {pipeline_mode = #tpu.pipeline_mode<synchronous>, transform_indices = @transform_7, window_bounds = array<i64: 32, 216>}, {pipeline_mode = #tpu.pipeline_mode<synchronous>, transform_indices = @transform_8, window_bounds = array<i64: 32, 1>}, {pipeline_mode = #tpu.pipeline_mode<synchronous>, transform_indices = @transform_9, window_bounds = array<i64: 48, 288>}, {pipeline_mode = #tpu.pipeline_mode<synchronous>, transform_indices = @transform_10, window_bounds = array<i64: 48, 1>}, {pipeline_mode = #tpu.pipeline_mode<synchronous>, transform_indices = @transform_11, window_bounds = array<i64: 64, 432>}, {pipeline_mode = #tpu.pipeline_mode<synchronous>, transform_indices = @transform_12, window_bounds = array<i64: 64, 1>}, {pipeline_mode = #tpu.pipeline_mode<synchronous>, transform_indices = @transform_13, window_bounds = array<i64: 1024, 256>}, {pipeline_mode = #tpu.pipeline_mode<synchronous>, transform_indices = @transform_14, window_bounds = array<i64: 256, 64>}, {pipeline_mode = #tpu.pipeline_mode<synchronous>, transform_indices = @transform_15, window_bounds = array<i64: 64, 16>}, {pipeline_mode = #tpu.pipeline_mode<synchronous>, transform_indices = @transform_16, window_bounds = array<i64: 16, 4>}, {pipeline_mode = #tpu.pipeline_mode<synchronous>, transform_indices = @transform_17, window_bounds = array<i64: 4, 1>}, {transform_indices = @transform_18, window_bounds = array<i64: 1, 16, 256>}, {transform_indices = @transform_19, window_bounds = array<i64: 1, 24, 64>}, {transform_indices = @transform_20, window_bounds = array<i64: 1, 32, 16>}, {transform_indices = @transform_21, window_bounds = array<i64: 1, 48, 4>}, {transform_indices = @transform_22, window_bounds = array<i64: 1, 64, 1>}]} {
    %c0 = arith.constant 0 : index
    %c0_0 = arith.constant 0 : index
    %c0_1 = arith.constant 0 : index
    %0 = vector.load %arg1[%c0, %c0_0, %c0_1] : memref<1x3x1024xf32, #tpu.memory_space<vmem>>, vector<1x3x1024xf32>
    %1 = vector.shape_cast %0 : vector<1x3x1024xf32> to vector<3x1024xf32>
    %c0_2 = arith.constant 0 : index
    %c0_3 = arith.constant 0 : index
    %2 = vector.load %arg2[%c0_2, %c0_3] : memref<8x27xf32, #tpu.memory_space<vmem>>, vector<8x27xf32>
    %c0_4 = arith.constant 0 : index
    %c0_5 = arith.constant 0 : index
    %3 = vector.load %arg3[%c0_4, %c0_5] : memref<8x1xf32, #tpu.memory_space<vmem>>, vector<8x1xf32>
    %4 = tpu.iota {dimensions = array<i32: 1>} : vector<1x1024xi32>
    %c32_i32 = arith.constant 32 : i32
    %c0_i32 = arith.constant 0 : i32
    %5 = arith.cmpi eq, %c32_i32, %c0_i32 : i32
    %c1_i32 = arith.constant 1 : i32
    %6 = arith.select %5, %c1_i32, %c32_i32 : i32
    %7 = vector.broadcast %6 : i32 to vector<1x1024xi32>
    %8 = arith.remsi %4, %7 : vector<1x1024xi32>
    %c0_i32_6 = arith.constant 0 : i32
    %9 = vector.broadcast %c0_i32_6 : i32 to vector<1x1024xi32>
    %10 = arith.cmpi ne, %8, %9 : vector<1x1024xi32>
    %c0_i32_7 = arith.constant 0 : i32
    %11 = vector.broadcast %c0_i32_7 : i32 to vector<1x1024xi32>
    %12 = arith.cmpi slt, %8, %11 : vector<1x1024xi32>
    %c0_i32_8 = arith.constant 0 : i32
    %13 = arith.cmpi slt, %6, %c0_i32_8 : i32
    %14 = vector.broadcast %13 : i1 to vector<1x1024xi1>
    %15 = vector.broadcast %14 : vector<1x1024xi1> to vector<1x1024xi1>
    %16 = arith.xori %12, %15 : vector<1x1024xi1>
    %17 = arith.andi %16, %10 : vector<1x1024xi1>
    %18 = vector.broadcast %6 : i32 to vector<1x1024xi32>
    %19 = arith.addi %8, %18 : vector<1x1024xi32>
    %20 = arith.select %17, %19, %8 : vector<1x1024xi1>, vector<1x1024xi32>
    %c0_i32_9 = arith.constant 0 : i32
    %21 = vector.broadcast %c0_i32_9 : i32 to vector<1x1024xi32>
    %22 = arith.cmpi ne, %20, %21 : vector<1x1024xi32>
    %23 = arith.extui %22 : vector<1x1024xi1> to vector<1x1024xi32>
    %24 = arith.sitofp %23 : vector<1x1024xi32> to vector<1x1024xf32>
    %c31_i32 = arith.constant 31 : i32
    %25 = vector.broadcast %c31_i32 : i32 to vector<1x1024xi32>
    %26 = arith.cmpi ne, %20, %25 : vector<1x1024xi32>
    %27 = arith.extui %26 : vector<1x1024xi1> to vector<1x1024xi32>
    %28 = arith.sitofp %27 : vector<1x1024xi32> to vector<1x1024xf32>
    %cst = arith.constant 0.000000e+00 : f32
    %29 = vector.broadcast %cst : f32 to vector<3x33xf32>
    %30 = vector.extract_strided_slice %1 {offsets = [0, 0], sizes = [3, 991], strides = [1, 1]} : vector<3x1024xf32> to vector<3x991xf32>
    %31 = tpu.concatenate %29, %30 in 1 : vector<3x33xf32>, vector<3x991xf32> -> vector<3x1024xf32>
    %32 = vector.broadcast %24 : vector<1x1024xf32> to vector<3x1024xf32>
    %33 = arith.mulf %31, %32 : vector<3x1024xf32>
    %cst_10 = arith.constant 0.000000e+00 : f32
    %34 = vector.broadcast %cst_10 : f32 to vector<3x32xf32>
    %35 = vector.extract_strided_slice %1 {offsets = [0, 0], sizes = [3, 992], strides = [1, 1]} : vector<3x1024xf32> to vector<3x992xf32>
    %36 = tpu.concatenate %34, %35 in 1 : vector<3x32xf32>, vector<3x992xf32> -> vector<3x1024xf32>
    %cst_11 = arith.constant 0.000000e+00 : f32
    %37 = vector.broadcast %cst_11 : f32 to vector<3x31xf32>
    %38 = vector.extract_strided_slice %1 {offsets = [0, 0], sizes = [3, 993], strides = [1, 1]} : vector<3x1024xf32> to vector<3x993xf32>
    %39 = tpu.concatenate %37, %38 in 1 : vector<3x31xf32>, vector<3x993xf32> -> vector<3x1024xf32>
    %40 = vector.broadcast %28 : vector<1x1024xf32> to vector<3x1024xf32>
    %41 = arith.mulf %39, %40 : vector<3x1024xf32>
    %cst_12 = arith.constant 0.000000e+00 : f32
    %42 = vector.broadcast %cst_12 : f32 to vector<3x1xf32>
    %43 = vector.extract_strided_slice %1 {offsets = [0, 0], sizes = [3, 1023], strides = [1, 1]} : vector<3x1024xf32> to vector<3x1023xf32>
    %44 = tpu.concatenate %42, %43 in 1 : vector<3x1xf32>, vector<3x1023xf32> -> vector<3x1024xf32>
    %45 = vector.broadcast %24 : vector<1x1024xf32> to vector<3x1024xf32>
    %46 = arith.mulf %44, %45 : vector<3x1024xf32>
    %cst_13 = arith.constant 0.000000e+00 : f32
    %47 = vector.broadcast %cst_13 : f32 to vector<3x1xf32>
    %48 = vector.extract_strided_slice %1 {offsets = [0, 1], sizes = [3, 1023], strides = [1, 1]} : vector<3x1024xf32> to vector<3x1023xf32>
    %49 = tpu.concatenate %48, %47 in 1 : vector<3x1023xf32>, vector<3x1xf32> -> vector<3x1024xf32>
    %50 = vector.broadcast %28 : vector<1x1024xf32> to vector<3x1024xf32>
    %51 = arith.mulf %49, %50 : vector<3x1024xf32>
    %cst_14 = arith.constant 0.000000e+00 : f32
    %52 = vector.broadcast %cst_14 : f32 to vector<3x31xf32>
    %53 = vector.extract_strided_slice %1 {offsets = [0, 31], sizes = [3, 993], strides = [1, 1]} : vector<3x1024xf32> to vector<3x993xf32>
    %54 = tpu.concatenate %53, %52 in 1 : vector<3x993xf32>, vector<3x31xf32> -> vector<3x1024xf32>
    %55 = vector.broadcast %24 : vector<1x1024xf32> to vector<3x1024xf32>
    %56 = arith.mulf %54, %55 : vector<3x1024xf32>
    %cst_15 = arith.constant 0.000000e+00 : f32
    %57 = vector.broadcast %cst_15 : f32 to vector<3x32xf32>
    %58 = vector.extract_strided_slice %1 {offsets = [0, 32], sizes = [3, 992], strides = [1, 1]} : vector<3x1024xf32> to vector<3x992xf32>
    %59 = tpu.concatenate %58, %57 in 1 : vector<3x992xf32>, vector<3x32xf32> -> vector<3x1024xf32>
    %cst_16 = arith.constant 0.000000e+00 : f32
    %60 = vector.broadcast %cst_16 : f32 to vector<3x33xf32>
    %61 = vector.extract_strided_slice %1 {offsets = [0, 33], sizes = [3, 991], strides = [1, 1]} : vector<3x1024xf32> to vector<3x991xf32>
    %62 = tpu.concatenate %61, %60 in 1 : vector<3x991xf32>, vector<3x33xf32> -> vector<3x1024xf32>
    %63 = vector.broadcast %28 : vector<1x1024xf32> to vector<3x1024xf32>
    %64 = arith.mulf %62, %63 : vector<3x1024xf32>
    %65 = tpu.concatenate %33, %36, %41, %46, %1, %51, %56, %59, %64 in 0 : vector<3x1024xf32>, vector<3x1024xf32>, vector<3x1024xf32>, vector<3x1024xf32>, vector<3x1024xf32>, vector<3x1024xf32>, vector<3x1024xf32>, vector<3x1024xf32>, vector<3x1024xf32> -> vector<27x1024xf32>
    %cst_17 = arith.constant dense<0.000000e+00> : vector<8x1024xf32>
    %66 = tpu.matmul %2, %65, %cst_17 {dimension_numbers = #tpu.dot_dimension_numbers<[1], [0], [0], [1], [0, 0, 1, 1], [], []>} : vector<8x27xf32>, vector<27x1024xf32>, vector<8x1024xf32> -> vector<8x1024xf32>
    %67 = vector.broadcast %3 : vector<8x1xf32> to vector<8x1024xf32>
    %68 = arith.addf %66, %67 : vector<8x1024xf32>
    %cst_18 = arith.constant 0.000000e+00 : f32
    %69 = vector.broadcast %cst_18 : f32 to vector<8x1024xf32>
    %70 = arith.maximumf %68, %69 : vector<8x1024xf32>
    %c0_19 = arith.constant 0 : index
    %c0_20 = arith.constant 0 : index
    %71 = vector.load %arg4[%c0_19, %c0_20] : memref<16x72xf32, #tpu.memory_space<vmem>>, vector<16x72xf32>
    %c0_21 = arith.constant 0 : index
    %c0_22 = arith.constant 0 : index
    %72 = vector.load %arg5[%c0_21, %c0_22] : memref<16x1xf32, #tpu.memory_space<vmem>>, vector<16x1xf32>
    %73 = tpu.iota {dimensions = array<i32: 1>} : vector<1x1024xi32>
    %c32_i32_23 = arith.constant 32 : i32
    %c0_i32_24 = arith.constant 0 : i32
    %74 = arith.cmpi eq, %c32_i32_23, %c0_i32_24 : i32
    %c1_i32_25 = arith.constant 1 : i32
    %75 = arith.select %74, %c1_i32_25, %c32_i32_23 : i32
    %76 = vector.broadcast %75 : i32 to vector<1x1024xi32>
    %77 = arith.remsi %73, %76 : vector<1x1024xi32>
    %c0_i32_26 = arith.constant 0 : i32
    %78 = vector.broadcast %c0_i32_26 : i32 to vector<1x1024xi32>
    %79 = arith.cmpi ne, %77, %78 : vector<1x1024xi32>
    %c0_i32_27 = arith.constant 0 : i32
    %80 = vector.broadcast %c0_i32_27 : i32 to vector<1x1024xi32>
    %81 = arith.cmpi slt, %77, %80 : vector<1x1024xi32>
    %c0_i32_28 = arith.constant 0 : i32
    %82 = arith.cmpi slt, %75, %c0_i32_28 : i32
    %83 = vector.broadcast %82 : i1 to vector<1x1024xi1>
    %84 = vector.broadcast %83 : vector<1x1024xi1> to vector<1x1024xi1>
    %85 = arith.xori %81, %84 : vector<1x1024xi1>
    %86 = arith.andi %85, %79 : vector<1x1024xi1>
    %87 = vector.broadcast %75 : i32 to vector<1x1024xi32>
    %88 = arith.addi %77, %87 : vector<1x1024xi32>
    %89 = arith.select %86, %88, %77 : vector<1x1024xi1>, vector<1x1024xi32>
    %c0_i32_29 = arith.constant 0 : i32
    %90 = vector.broadcast %c0_i32_29 : i32 to vector<1x1024xi32>
    %91 = arith.cmpi ne, %89, %90 : vector<1x1024xi32>
    %92 = arith.extui %91 : vector<1x1024xi1> to vector<1x1024xi32>
    %93 = arith.sitofp %92 : vector<1x1024xi32> to vector<1x1024xf32>
    %c31_i32_30 = arith.constant 31 : i32
    %94 = vector.broadcast %c31_i32_30 : i32 to vector<1x1024xi32>
    %95 = arith.cmpi ne, %89, %94 : vector<1x1024xi32>
    %96 = arith.extui %95 : vector<1x1024xi1> to vector<1x1024xi32>
    %97 = arith.sitofp %96 : vector<1x1024xi32> to vector<1x1024xf32>
    %cst_31 = arith.constant 0.000000e+00 : f32
    %98 = vector.broadcast %cst_31 : f32 to vector<8x33xf32>
    %99 = vector.extract_strided_slice %70 {offsets = [0, 0], sizes = [8, 991], strides = [1, 1]} : vector<8x1024xf32> to vector<8x991xf32>
    %100 = tpu.concatenate %98, %99 in 1 : vector<8x33xf32>, vector<8x991xf32> -> vector<8x1024xf32>
    %101 = vector.broadcast %93 : vector<1x1024xf32> to vector<8x1024xf32>
    %102 = arith.mulf %100, %101 : vector<8x1024xf32>
    %cst_32 = arith.constant 0.000000e+00 : f32
    %103 = vector.broadcast %cst_32 : f32 to vector<8x32xf32>
    %104 = vector.extract_strided_slice %70 {offsets = [0, 0], sizes = [8, 992], strides = [1, 1]} : vector<8x1024xf32> to vector<8x992xf32>
    %105 = tpu.concatenate %103, %104 in 1 : vector<8x32xf32>, vector<8x992xf32> -> vector<8x1024xf32>
    %cst_33 = arith.constant 0.000000e+00 : f32
    %106 = vector.broadcast %cst_33 : f32 to vector<8x31xf32>
    %107 = vector.extract_strided_slice %70 {offsets = [0, 0], sizes = [8, 993], strides = [1, 1]} : vector<8x1024xf32> to vector<8x993xf32>
    %108 = tpu.concatenate %106, %107 in 1 : vector<8x31xf32>, vector<8x993xf32> -> vector<8x1024xf32>
    %109 = vector.broadcast %97 : vector<1x1024xf32> to vector<8x1024xf32>
    %110 = arith.mulf %108, %109 : vector<8x1024xf32>
    %cst_34 = arith.constant 0.000000e+00 : f32
    %111 = vector.broadcast %cst_34 : f32 to vector<8x1xf32>
    %112 = vector.extract_strided_slice %70 {offsets = [0, 0], sizes = [8, 1023], strides = [1, 1]} : vector<8x1024xf32> to vector<8x1023xf32>
    %113 = tpu.concatenate %111, %112 in 1 : vector<8x1xf32>, vector<8x1023xf32> -> vector<8x1024xf32>
    %114 = vector.broadcast %93 : vector<1x1024xf32> to vector<8x1024xf32>
    %115 = arith.mulf %113, %114 : vector<8x1024xf32>
    %cst_35 = arith.constant 0.000000e+00 : f32
    %116 = vector.broadcast %cst_35 : f32 to vector<8x1xf32>
    %117 = vector.extract_strided_slice %70 {offsets = [0, 1], sizes = [8, 1023], strides = [1, 1]} : vector<8x1024xf32> to vector<8x1023xf32>
    %118 = tpu.concatenate %117, %116 in 1 : vector<8x1023xf32>, vector<8x1xf32> -> vector<8x1024xf32>
    %119 = vector.broadcast %97 : vector<1x1024xf32> to vector<8x1024xf32>
    %120 = arith.mulf %118, %119 : vector<8x1024xf32>
    %cst_36 = arith.constant 0.000000e+00 : f32
    %121 = vector.broadcast %cst_36 : f32 to vector<8x31xf32>
    %122 = vector.extract_strided_slice %70 {offsets = [0, 31], sizes = [8, 993], strides = [1, 1]} : vector<8x1024xf32> to vector<8x993xf32>
    %123 = tpu.concatenate %122, %121 in 1 : vector<8x993xf32>, vector<8x31xf32> -> vector<8x1024xf32>
    %124 = vector.broadcast %93 : vector<1x1024xf32> to vector<8x1024xf32>
    %125 = arith.mulf %123, %124 : vector<8x1024xf32>
    %cst_37 = arith.constant 0.000000e+00 : f32
    %126 = vector.broadcast %cst_37 : f32 to vector<8x32xf32>
    %127 = vector.extract_strided_slice %70 {offsets = [0, 32], sizes = [8, 992], strides = [1, 1]} : vector<8x1024xf32> to vector<8x992xf32>
    %128 = tpu.concatenate %127, %126 in 1 : vector<8x992xf32>, vector<8x32xf32> -> vector<8x1024xf32>
    %cst_38 = arith.constant 0.000000e+00 : f32
    %129 = vector.broadcast %cst_38 : f32 to vector<8x33xf32>
    %130 = vector.extract_strided_slice %70 {offsets = [0, 33], sizes = [8, 991], strides = [1, 1]} : vector<8x1024xf32> to vector<8x991xf32>
    %131 = tpu.concatenate %130, %129 in 1 : vector<8x991xf32>, vector<8x33xf32> -> vector<8x1024xf32>
    %132 = vector.broadcast %97 : vector<1x1024xf32> to vector<8x1024xf32>
    %133 = arith.mulf %131, %132 : vector<8x1024xf32>
    %134 = tpu.concatenate %102, %105, %110, %115, %70, %120, %125, %128, %133 in 0 : vector<8x1024xf32>, vector<8x1024xf32>, vector<8x1024xf32>, vector<8x1024xf32>, vector<8x1024xf32>, vector<8x1024xf32>, vector<8x1024xf32>, vector<8x1024xf32>, vector<8x1024xf32> -> vector<72x1024xf32>
    %cst_39 = arith.constant dense<0.000000e+00> : vector<16x1024xf32>
    %135 = tpu.matmul %71, %134, %cst_39 {dimension_numbers = #tpu.dot_dimension_numbers<[1], [0], [0], [1], [0, 0, 1, 1], [], []>} : vector<16x72xf32>, vector<72x1024xf32>, vector<16x1024xf32> -> vector<16x1024xf32>
    %136 = vector.broadcast %72 : vector<16x1xf32> to vector<16x1024xf32>
    %137 = arith.addf %135, %136 : vector<16x1024xf32>
    %cst_40 = arith.constant 0.000000e+00 : f32
    %138 = vector.broadcast %cst_40 : f32 to vector<16x1024xf32>
    %139 = arith.maximumf %137, %138 : vector<16x1024xf32>
    %c0_41 = arith.constant 0 : index
    %c0_42 = arith.constant 0 : index
    %140 = vector.load %arg14[%c0_41, %c0_42] : memref<1024x256xf32, #tpu.memory_space<vmem>>, vector<1024x256xf32>
    %cst_43 = arith.constant dense<0.000000e+00> : vector<16x256xf32>
    %141 = tpu.matmul %139, %140, %cst_43 {dimension_numbers = #tpu.dot_dimension_numbers<[1], [0], [0], [1], [0, 0, 1, 1], [], []>} : vector<16x1024xf32>, vector<1024x256xf32>, vector<16x256xf32> -> vector<16x256xf32>
    %c0_44 = arith.constant 0 : index
    %c0_45 = arith.constant 0 : index
    %c0_46 = arith.constant 0 : index
    %142 = vector.load %arg19[%c0_44, %c0_45, %c0_46] : memref<1x16x256xf32, #tpu.memory_space<vmem>>, vector<1x16x256xf32>
    %143 = vector.shape_cast %142 : vector<1x16x256xf32> to vector<16x256xf32>
    %144 = vector.shape_cast %141 : vector<16x256xf32> to vector<1x16x256xf32>
    tpu.vector_store %arg19[%c0_44, %c0_45, %c0_46], %144 {strides = array<i32>} : memref<1x16x256xf32, #tpu.memory_space<vmem>>, vector<1x16x256xf32>,
    %c0_47 = arith.constant 0 : index
    %c0_48 = arith.constant 0 : index
    %145 = vector.load %arg6[%c0_47, %c0_48] : memref<24x144xf32, #tpu.memory_space<vmem>>, vector<24x144xf32>
    %c0_49 = arith.constant 0 : index
    %c0_50 = arith.constant 0 : index
    %146 = vector.load %arg7[%c0_49, %c0_50] : memref<24x1xf32, #tpu.memory_space<vmem>>, vector<24x1xf32>
    %147 = tpu.iota {dimensions = array<i32: 1>} : vector<1x256xi32>
    %c16_i32 = arith.constant 16 : i32
    %c0_i32_51 = arith.constant 0 : i32
    %148 = arith.cmpi eq, %c16_i32, %c0_i32_51 : i32
    %c1_i32_52 = arith.constant 1 : i32
    %149 = arith.select %148, %c1_i32_52, %c16_i32 : i32
    %150 = vector.broadcast %149 : i32 to vector<1x256xi32>
    %151 = arith.remsi %147, %150 : vector<1x256xi32>
    %c0_i32_53 = arith.constant 0 : i32
    %152 = vector.broadcast %c0_i32_53 : i32 to vector<1x256xi32>
    %153 = arith.cmpi ne, %151, %152 : vector<1x256xi32>
    %c0_i32_54 = arith.constant 0 : i32
    %154 = vector.broadcast %c0_i32_54 : i32 to vector<1x256xi32>
    %155 = arith.cmpi slt, %151, %154 : vector<1x256xi32>
    %c0_i32_55 = arith.constant 0 : i32
    %156 = arith.cmpi slt, %149, %c0_i32_55 : i32
    %157 = vector.broadcast %156 : i1 to vector<1x256xi1>
    %158 = vector.broadcast %157 : vector<1x256xi1> to vector<1x256xi1>
    %159 = arith.xori %155, %158 : vector<1x256xi1>
    %160 = arith.andi %159, %153 : vector<1x256xi1>
    %161 = vector.broadcast %149 : i32 to vector<1x256xi32>
    %162 = arith.addi %151, %161 : vector<1x256xi32>
    %163 = arith.select %160, %162, %151 : vector<1x256xi1>, vector<1x256xi32>
    %c0_i32_56 = arith.constant 0 : i32
    %164 = vector.broadcast %c0_i32_56 : i32 to vector<1x256xi32>
    %165 = arith.cmpi ne, %163, %164 : vector<1x256xi32>
    %166 = arith.extui %165 : vector<1x256xi1> to vector<1x256xi32>
    %167 = arith.sitofp %166 : vector<1x256xi32> to vector<1x256xf32>
    %c15_i32 = arith.constant 15 : i32
    %168 = vector.broadcast %c15_i32 : i32 to vector<1x256xi32>
    %169 = arith.cmpi ne, %163, %168 : vector<1x256xi32>
    %170 = arith.extui %169 : vector<1x256xi1> to vector<1x256xi32>
    %171 = arith.sitofp %170 : vector<1x256xi32> to vector<1x256xf32>
    %cst_57 = arith.constant 0.000000e+00 : f32
    %172 = vector.broadcast %cst_57 : f32 to vector<16x17xf32>
    %173 = vector.extract_strided_slice %141 {offsets = [0, 0], sizes = [16, 239], strides = [1, 1]} : vector<16x256xf32> to vector<16x239xf32>
    %174 = tpu.concatenate %172, %173 in 1 : vector<16x17xf32>, vector<16x239xf32> -> vector<16x256xf32>
    %175 = vector.broadcast %167 : vector<1x256xf32> to vector<16x256xf32>
    %176 = arith.mulf %174, %175 : vector<16x256xf32>
    %cst_58 = arith.constant 0.000000e+00 : f32
    %177 = vector.broadcast %cst_58 : f32 to vector<16x16xf32>
    %178 = vector.extract_strided_slice %141 {offsets = [0, 0], sizes = [16, 240], strides = [1, 1]} : vector<16x256xf32> to vector<16x240xf32>
    %179 = tpu.concatenate %177, %178 in 1 : vector<16x16xf32>, vector<16x240xf32> -> vector<16x256xf32>
    %cst_59 = arith.constant 0.000000e+00 : f32
    %180 = vector.broadcast %cst_59 : f32 to vector<16x15xf32>
    %181 = vector.extract_strided_slice %141 {offsets = [0, 0], sizes = [16, 241], strides = [1, 1]} : vector<16x256xf32> to vector<16x241xf32>
    %182 = tpu.concatenate %180, %181 in 1 : vector<16x15xf32>, vector<16x241xf32> -> vector<16x256xf32>
    %183 = vector.broadcast %171 : vector<1x256xf32> to vector<16x256xf32>
    %184 = arith.mulf %182, %183 : vector<16x256xf32>
    %cst_60 = arith.constant 0.000000e+00 : f32
    %185 = vector.broadcast %cst_60 : f32 to vector<16x1xf32>
    %186 = vector.extract_strided_slice %141 {offsets = [0, 0], sizes = [16, 255], strides = [1, 1]} : vector<16x256xf32> to vector<16x255xf32>
    %187 = tpu.concatenate %185, %186 in 1 : vector<16x1xf32>, vector<16x255xf32> -> vector<16x256xf32>
    %188 = vector.broadcast %167 : vector<1x256xf32> to vector<16x256xf32>
    %189 = arith.mulf %187, %188 : vector<16x256xf32>
    %cst_61 = arith.constant 0.000000e+00 : f32
    %190 = vector.broadcast %cst_61 : f32 to vector<16x1xf32>
    %191 = vector.extract_strided_slice %141 {offsets = [0, 1], sizes = [16, 255], strides = [1, 1]} : vector<16x256xf32> to vector<16x255xf32>
    %192 = tpu.concatenate %191, %190 in 1 : vector<16x255xf32>, vector<16x1xf32> -> vector<16x256xf32>
    %193 = vector.broadcast %171 : vector<1x256xf32> to vector<16x256xf32>
    %194 = arith.mulf %192, %193 : vector<16x256xf32>
    %cst_62 = arith.constant 0.000000e+00 : f32
    %195 = vector.broadcast %cst_62 : f32 to vector<16x15xf32>
    %196 = vector.extract_strided_slice %141 {offsets = [0, 15], sizes = [16, 241], strides = [1, 1]} : vector<16x256xf32> to vector<16x241xf32>
    %197 = tpu.concatenate %196, %195 in 1 : vector<16x241xf32>, vector<16x15xf32> -> vector<16x256xf32>
    %198 = vector.broadcast %167 : vector<1x256xf32> to vector<16x256xf32>
    %199 = arith.mulf %197, %198 : vector<16x256xf32>
    %cst_63 = arith.constant 0.000000e+00 : f32
    %200 = vector.broadcast %cst_63 : f32 to vector<16x16xf32>
    %201 = vector.extract_strided_slice %141 {offsets = [0, 16], sizes = [16, 240], strides = [1, 1]} : vector<16x256xf32> to vector<16x240xf32>
    %202 = tpu.concatenate %201, %200 in 1 : vector<16x240xf32>, vector<16x16xf32> -> vector<16x256xf32>
    %cst_64 = arith.constant 0.000000e+00 : f32
    %203 = vector.broadcast %cst_64 : f32 to vector<16x17xf32>
    %204 = vector.extract_strided_slice %141 {offsets = [0, 17], sizes = [16, 239], strides = [1, 1]} : vector<16x256xf32> to vector<16x239xf32>
    %205 = tpu.concatenate %204, %203 in 1 : vector<16x239xf32>, vector<16x17xf32> -> vector<16x256xf32>
    %206 = vector.broadcast %171 : vector<1x256xf32> to vector<16x256xf32>
    %207 = arith.mulf %205, %206 : vector<16x256xf32>
    %208 = tpu.concatenate %176, %179, %184, %189, %141, %194, %199, %202, %207 in 0 : vector<16x256xf32>, vector<16x256xf32>, vector<16x256xf32>, vector<16x256xf32>, vector<16x256xf32>, vector<16x256xf32>, vector<16x256xf32>, vector<16x256xf32>, vector<16x256xf32> -> vector<144x256xf32>
    %cst_65 = arith.constant dense<0.000000e+00> : vector<24x256xf32>
    %209 = tpu.matmul %145, %208, %cst_65 {dimension_numbers = #tpu.dot_dimension_numbers<[1], [0], [0], [1], [0, 0, 1, 1], [], []>} : vector<24x144xf32>, vector<144x256xf32>, vector<24x256xf32> -> vector<24x256xf32>
    %210 = vector.broadcast %146 : vector<24x1xf32> to vector<24x256xf32>
    %211 = arith.addf %209, %210 : vector<24x256xf32>
    %cst_66 = arith.constant 0.000000e+00 : f32
    %212 = vector.broadcast %cst_66 : f32 to vector<24x256xf32>
    %213 = arith.maximumf %211, %212 : vector<24x256xf32>
    %c0_67 = arith.constant 0 : index
    %c0_68 = arith.constant 0 : index
    %214 = vector.load %arg15[%c0_67, %c0_68] : memref<256x64xf32, #tpu.memory_space<vmem>>, vector<256x64xf32>
    %cst_69 = arith.constant dense<0.000000e+00> : vector<24x64xf32>
    %215 = tpu.matmul %213, %214, %cst_69 {dimension_numbers = #tpu.dot_dimension_numbers<[1], [0], [0], [1], [0, 0, 1, 1], [], []>} : vector<24x256xf32>, vector<256x64xf32>, vector<24x64xf32> -> vector<24x64xf32>
    %c0_70 = arith.constant 0 : index
    %c0_71 = arith.constant 0 : index
    %c0_72 = arith.constant 0 : index
    %216 = vector.load %arg20[%c0_70, %c0_71, %c0_72] : memref<1x24x64xf32, #tpu.memory_space<vmem>>, vector<1x24x64xf32>
    %217 = vector.shape_cast %216 : vector<1x24x64xf32> to vector<24x64xf32>
    %218 = vector.shape_cast %215 : vector<24x64xf32> to vector<1x24x64xf32>
    tpu.vector_store %arg20[%c0_70, %c0_71, %c0_72], %218 {strides = array<i32>} : memref<1x24x64xf32, #tpu.memory_space<vmem>>, vector<1x24x64xf32>,
    %c0_73 = arith.constant 0 : index
    %c0_74 = arith.constant 0 : index
    %219 = vector.load %arg8[%c0_73, %c0_74] : memref<32x216xf32, #tpu.memory_space<vmem>>, vector<32x216xf32>
    %c0_75 = arith.constant 0 : index
    %c0_76 = arith.constant 0 : index
    %220 = vector.load %arg9[%c0_75, %c0_76] : memref<32x1xf32, #tpu.memory_space<vmem>>, vector<32x1xf32>
    %221 = tpu.iota {dimensions = array<i32: 1>} : vector<1x64xi32>
    %c8_i32 = arith.constant 8 : i32
    %c0_i32_77 = arith.constant 0 : i32
    %222 = arith.cmpi eq, %c8_i32, %c0_i32_77 : i32
    %c1_i32_78 = arith.constant 1 : i32
    %223 = arith.select %222, %c1_i32_78, %c8_i32 : i32
    %224 = vector.broadcast %223 : i32 to vector<1x64xi32>
    %225 = arith.remsi %221, %224 : vector<1x64xi32>
    %c0_i32_79 = arith.constant 0 : i32
    %226 = vector.broadcast %c0_i32_79 : i32 to vector<1x64xi32>
    %227 = arith.cmpi ne, %225, %226 : vector<1x64xi32>
    %c0_i32_80 = arith.constant 0 : i32
    %228 = vector.broadcast %c0_i32_80 : i32 to vector<1x64xi32>
    %229 = arith.cmpi slt, %225, %228 : vector<1x64xi32>
    %c0_i32_81 = arith.constant 0 : i32
    %230 = arith.cmpi slt, %223, %c0_i32_81 : i32
    %231 = vector.broadcast %230 : i1 to vector<1x64xi1>
    %232 = vector.broadcast %231 : vector<1x64xi1> to vector<1x64xi1>
    %233 = arith.xori %229, %232 : vector<1x64xi1>
    %234 = arith.andi %233, %227 : vector<1x64xi1>
    %235 = vector.broadcast %223 : i32 to vector<1x64xi32>
    %236 = arith.addi %225, %235 : vector<1x64xi32>
    %237 = arith.select %234, %236, %225 : vector<1x64xi1>, vector<1x64xi32>
    %c0_i32_82 = arith.constant 0 : i32
    %238 = vector.broadcast %c0_i32_82 : i32 to vector<1x64xi32>
    %239 = arith.cmpi ne, %237, %238 : vector<1x64xi32>
    %240 = arith.extui %239 : vector<1x64xi1> to vector<1x64xi32>
    %241 = arith.sitofp %240 : vector<1x64xi32> to vector<1x64xf32>
    %c7_i32 = arith.constant 7 : i32
    %242 = vector.broadcast %c7_i32 : i32 to vector<1x64xi32>
    %243 = arith.cmpi ne, %237, %242 : vector<1x64xi32>
    %244 = arith.extui %243 : vector<1x64xi1> to vector<1x64xi32>
    %245 = arith.sitofp %244 : vector<1x64xi32> to vector<1x64xf32>
    %cst_83 = arith.constant 0.000000e+00 : f32
    %246 = vector.broadcast %cst_83 : f32 to vector<24x9xf32>
    %247 = vector.extract_strided_slice %215 {offsets = [0, 0], sizes = [24, 55], strides = [1, 1]} : vector<24x64xf32> to vector<24x55xf32>
    %248 = tpu.concatenate %246, %247 in 1 : vector<24x9xf32>, vector<24x55xf32> -> vector<24x64xf32>
    %249 = vector.broadcast %241 : vector<1x64xf32> to vector<24x64xf32>
    %250 = arith.mulf %248, %249 : vector<24x64xf32>
    %cst_84 = arith.constant 0.000000e+00 : f32
    %251 = vector.broadcast %cst_84 : f32 to vector<24x8xf32>
    %252 = vector.extract_strided_slice %215 {offsets = [0, 0], sizes = [24, 56], strides = [1, 1]} : vector<24x64xf32> to vector<24x56xf32>
    %253 = tpu.concatenate %251, %252 in 1 : vector<24x8xf32>, vector<24x56xf32> -> vector<24x64xf32>
    %cst_85 = arith.constant 0.000000e+00 : f32
    %254 = vector.broadcast %cst_85 : f32 to vector<24x7xf32>
    %255 = vector.extract_strided_slice %215 {offsets = [0, 0], sizes = [24, 57], strides = [1, 1]} : vector<24x64xf32> to vector<24x57xf32>
    %256 = tpu.concatenate %254, %255 in 1 : vector<24x7xf32>, vector<24x57xf32> -> vector<24x64xf32>
    %257 = vector.broadcast %245 : vector<1x64xf32> to vector<24x64xf32>
    %258 = arith.mulf %256, %257 : vector<24x64xf32>
    %cst_86 = arith.constant 0.000000e+00 : f32
    %259 = vector.broadcast %cst_86 : f32 to vector<24x1xf32>
    %260 = vector.extract_strided_slice %215 {offsets = [0, 0], sizes = [24, 63], strides = [1, 1]} : vector<24x64xf32> to vector<24x63xf32>
    %261 = tpu.concatenate %259, %260 in 1 : vector<24x1xf32>, vector<24x63xf32> -> vector<24x64xf32>
    %262 = vector.broadcast %241 : vector<1x64xf32> to vector<24x64xf32>
    %263 = arith.mulf %261, %262 : vector<24x64xf32>
    %cst_87 = arith.constant 0.000000e+00 : f32
    %264 = vector.broadcast %cst_87 : f32 to vector<24x1xf32>
    %265 = vector.extract_strided_slice %215 {offsets = [0, 1], sizes = [24, 63], strides = [1, 1]} : vector<24x64xf32> to vector<24x63xf32>
    %266 = tpu.concatenate %265, %264 in 1 : vector<24x63xf32>, vector<24x1xf32> -> vector<24x64xf32>
    %267 = vector.broadcast %245 : vector<1x64xf32> to vector<24x64xf32>
    %268 = arith.mulf %266, %267 : vector<24x64xf32>
    %cst_88 = arith.constant 0.000000e+00 : f32
    %269 = vector.broadcast %cst_88 : f32 to vector<24x7xf32>
    %270 = vector.extract_strided_slice %215 {offsets = [0, 7], sizes = [24, 57], strides = [1, 1]} : vector<24x64xf32> to vector<24x57xf32>
    %271 = tpu.concatenate %270, %269 in 1 : vector<24x57xf32>, vector<24x7xf32> -> vector<24x64xf32>
    %272 = vector.broadcast %241 : vector<1x64xf32> to vector<24x64xf32>
    %273 = arith.mulf %271, %272 : vector<24x64xf32>
    %cst_89 = arith.constant 0.000000e+00 : f32
    %274 = vector.broadcast %cst_89 : f32 to vector<24x8xf32>
    %275 = vector.extract_strided_slice %215 {offsets = [0, 8], sizes = [24, 56], strides = [1, 1]} : vector<24x64xf32> to vector<24x56xf32>
    %276 = tpu.concatenate %275, %274 in 1 : vector<24x56xf32>, vector<24x8xf32> -> vector<24x64xf32>
    %cst_90 = arith.constant 0.000000e+00 : f32
    %277 = vector.broadcast %cst_90 : f32 to vector<24x9xf32>
    %278 = vector.extract_strided_slice %215 {offsets = [0, 9], sizes = [24, 55], strides = [1, 1]} : vector<24x64xf32> to vector<24x55xf32>
    %279 = tpu.concatenate %278, %277 in 1 : vector<24x55xf32>, vector<24x9xf32> -> vector<24x64xf32>
    %280 = vector.broadcast %245 : vector<1x64xf32> to vector<24x64xf32>
    %281 = arith.mulf %279, %280 : vector<24x64xf32>
    %282 = tpu.concatenate %250, %253, %258, %263, %215, %268, %273, %276, %281 in 0 : vector<24x64xf32>, vector<24x64xf32>, vector<24x64xf32>, vector<24x64xf32>, vector<24x64xf32>, vector<24x64xf32>, vector<24x64xf32>, vector<24x64xf32>, vector<24x64xf32> -> vector<216x64xf32>
    %cst_91 = arith.constant dense<0.000000e+00> : vector<32x64xf32>
    %283 = tpu.matmul %219, %282, %cst_91 {dimension_numbers = #tpu.dot_dimension_numbers<[1], [0], [0], [1], [0, 0, 1, 1], [], []>} : vector<32x216xf32>, vector<216x64xf32>, vector<32x64xf32> -> vector<32x64xf32>
    %284 = vector.broadcast %220 : vector<32x1xf32> to vector<32x64xf32>
    %285 = arith.addf %283, %284 : vector<32x64xf32>
    %cst_92 = arith.constant 0.000000e+00 : f32
    %286 = vector.broadcast %cst_92 : f32 to vector<32x64xf32>
    %287 = arith.maximumf %285, %286 : vector<32x64xf32>
    %c0_93 = arith.constant 0 : index
    %c0_94 = arith.constant 0 : index
    %288 = vector.load %arg16[%c0_93, %c0_94] : memref<64x16xf32, #tpu.memory_space<vmem>>, vector<64x16xf32>
    %cst_95 = arith.constant dense<0.000000e+00> : vector<32x16xf32>
    %289 = tpu.matmul %287, %288, %cst_95 {dimension_numbers = #tpu.dot_dimension_numbers<[1], [0], [0], [1], [0, 0, 1, 1], [], []>} : vector<32x64xf32>, vector<64x16xf32>, vector<32x16xf32> -> vector<32x16xf32>
    %c0_96 = arith.constant 0 : index
    %c0_97 = arith.constant 0 : index
    %c0_98 = arith.constant 0 : index
    %290 = vector.load %arg21[%c0_96, %c0_97, %c0_98] : memref<1x32x16xf32, #tpu.memory_space<vmem>>, vector<1x32x16xf32>
    %291 = vector.shape_cast %290 : vector<1x32x16xf32> to vector<32x16xf32>
    %292 = vector.shape_cast %289 : vector<32x16xf32> to vector<1x32x16xf32>
    tpu.vector_store %arg21[%c0_96, %c0_97, %c0_98], %292 {strides = array<i32>} : memref<1x32x16xf32, #tpu.memory_space<vmem>>, vector<1x32x16xf32>,
    %c0_99 = arith.constant 0 : index
    %c0_100 = arith.constant 0 : index
    %293 = vector.load %arg10[%c0_99, %c0_100] : memref<48x288xf32, #tpu.memory_space<vmem>>, vector<48x288xf32>
    %c0_101 = arith.constant 0 : index
    %c0_102 = arith.constant 0 : index
    %294 = vector.load %arg11[%c0_101, %c0_102] : memref<48x1xf32, #tpu.memory_space<vmem>>, vector<48x1xf32>
    %295 = tpu.iota {dimensions = array<i32: 1>} : vector<1x16xi32>
    %c4_i32 = arith.constant 4 : i32
    %c0_i32_103 = arith.constant 0 : i32
    %296 = arith.cmpi eq, %c4_i32, %c0_i32_103 : i32
    %c1_i32_104 = arith.constant 1 : i32
    %297 = arith.select %296, %c1_i32_104, %c4_i32 : i32
    %298 = vector.broadcast %297 : i32 to vector<1x16xi32>
    %299 = arith.remsi %295, %298 : vector<1x16xi32>
    %c0_i32_105 = arith.constant 0 : i32
    %300 = vector.broadcast %c0_i32_105 : i32 to vector<1x16xi32>
    %301 = arith.cmpi ne, %299, %300 : vector<1x16xi32>
    %c0_i32_106 = arith.constant 0 : i32
    %302 = vector.broadcast %c0_i32_106 : i32 to vector<1x16xi32>
    %303 = arith.cmpi slt, %299, %302 : vector<1x16xi32>
    %c0_i32_107 = arith.constant 0 : i32
    %304 = arith.cmpi slt, %297, %c0_i32_107 : i32
    %305 = vector.broadcast %304 : i1 to vector<1x16xi1>
    %306 = vector.broadcast %305 : vector<1x16xi1> to vector<1x16xi1>
    %307 = arith.xori %303, %306 : vector<1x16xi1>
    %308 = arith.andi %307, %301 : vector<1x16xi1>
    %309 = vector.broadcast %297 : i32 to vector<1x16xi32>
    %310 = arith.addi %299, %309 : vector<1x16xi32>
    %311 = arith.select %308, %310, %299 : vector<1x16xi1>, vector<1x16xi32>
    %c0_i32_108 = arith.constant 0 : i32
    %312 = vector.broadcast %c0_i32_108 : i32 to vector<1x16xi32>
    %313 = arith.cmpi ne, %311, %312 : vector<1x16xi32>
    %314 = arith.extui %313 : vector<1x16xi1> to vector<1x16xi32>
    %315 = arith.sitofp %314 : vector<1x16xi32> to vector<1x16xf32>
    %c3_i32 = arith.constant 3 : i32
    %316 = vector.broadcast %c3_i32 : i32 to vector<1x16xi32>
    %317 = arith.cmpi ne, %311, %316 : vector<1x16xi32>
    %318 = arith.extui %317 : vector<1x16xi1> to vector<1x16xi32>
    %319 = arith.sitofp %318 : vector<1x16xi32> to vector<1x16xf32>
    %cst_109 = arith.constant 0.000000e+00 : f32
    %320 = vector.broadcast %cst_109 : f32 to vector<32x5xf32>
    %321 = vector.extract_strided_slice %289 {offsets = [0, 0], sizes = [32, 11], strides = [1, 1]} : vector<32x16xf32> to vector<32x11xf32>
    %322 = tpu.concatenate %320, %321 in 1 : vector<32x5xf32>, vector<32x11xf32> -> vector<32x16xf32>
    %323 = vector.broadcast %315 : vector<1x16xf32> to vector<32x16xf32>
    %324 = arith.mulf %322, %323 : vector<32x16xf32>
    %cst_110 = arith.constant 0.000000e+00 : f32
    %325 = vector.broadcast %cst_110 : f32 to vector<32x4xf32>
    %326 = vector.extract_strided_slice %289 {offsets = [0, 0], sizes = [32, 12], strides = [1, 1]} : vector<32x16xf32> to vector<32x12xf32>
    %327 = tpu.concatenate %325, %326 in 1 : vector<32x4xf32>, vector<32x12xf32> -> vector<32x16xf32>
    %cst_111 = arith.constant 0.000000e+00 : f32
    %328 = vector.broadcast %cst_111 : f32 to vector<32x3xf32>
    %329 = vector.extract_strided_slice %289 {offsets = [0, 0], sizes = [32, 13], strides = [1, 1]} : vector<32x16xf32> to vector<32x13xf32>
    %330 = tpu.concatenate %328, %329 in 1 : vector<32x3xf32>, vector<32x13xf32> -> vector<32x16xf32>
    %331 = vector.broadcast %319 : vector<1x16xf32> to vector<32x16xf32>
    %332 = arith.mulf %330, %331 : vector<32x16xf32>
    %cst_112 = arith.constant 0.000000e+00 : f32
    %333 = vector.broadcast %cst_112 : f32 to vector<32x1xf32>
    %334 = vector.extract_strided_slice %289 {offsets = [0, 0], sizes = [32, 15], strides = [1, 1]} : vector<32x16xf32> to vector<32x15xf32>
    %335 = tpu.concatenate %333, %334 in 1 : vector<32x1xf32>, vector<32x15xf32> -> vector<32x16xf32>
    %336 = vector.broadcast %315 : vector<1x16xf32> to vector<32x16xf32>
    %337 = arith.mulf %335, %336 : vector<32x16xf32>
    %cst_113 = arith.constant 0.000000e+00 : f32
    %338 = vector.broadcast %cst_113 : f32 to vector<32x1xf32>
    %339 = vector.extract_strided_slice %289 {offsets = [0, 1], sizes = [32, 15], strides = [1, 1]} : vector<32x16xf32> to vector<32x15xf32>
    %340 = tpu.concatenate %339, %338 in 1 : vector<32x15xf32>, vector<32x1xf32> -> vector<32x16xf32>
    %341 = vector.broadcast %319 : vector<1x16xf32> to vector<32x16xf32>
    %342 = arith.mulf %340, %341 : vector<32x16xf32>
    %cst_114 = arith.constant 0.000000e+00 : f32
    %343 = vector.broadcast %cst_114 : f32 to vector<32x3xf32>
    %344 = vector.extract_strided_slice %289 {offsets = [0, 3], sizes = [32, 13], strides = [1, 1]} : vector<32x16xf32> to vector<32x13xf32>
    %345 = tpu.concatenate %344, %343 in 1 : vector<32x13xf32>, vector<32x3xf32> -> vector<32x16xf32>
    %346 = vector.broadcast %315 : vector<1x16xf32> to vector<32x16xf32>
    %347 = arith.mulf %345, %346 : vector<32x16xf32>
    %cst_115 = arith.constant 0.000000e+00 : f32
    %348 = vector.broadcast %cst_115 : f32 to vector<32x4xf32>
    %349 = vector.extract_strided_slice %289 {offsets = [0, 4], sizes = [32, 12], strides = [1, 1]} : vector<32x16xf32> to vector<32x12xf32>
    %350 = tpu.concatenate %349, %348 in 1 : vector<32x12xf32>, vector<32x4xf32> -> vector<32x16xf32>
    %cst_116 = arith.constant 0.000000e+00 : f32
    %351 = vector.broadcast %cst_116 : f32 to vector<32x5xf32>
    %352 = vector.extract_strided_slice %289 {offsets = [0, 5], sizes = [32, 11], strides = [1, 1]} : vector<32x16xf32> to vector<32x11xf32>
    %353 = tpu.concatenate %352, %351 in 1 : vector<32x11xf32>, vector<32x5xf32> -> vector<32x16xf32>
    %354 = vector.broadcast %319 : vector<1x16xf32> to vector<32x16xf32>
    %355 = arith.mulf %353, %354 : vector<32x16xf32>
    %356 = tpu.concatenate %324, %327, %332, %337, %289, %342, %347, %350, %355 in 0 : vector<32x16xf32>, vector<32x16xf32>, vector<32x16xf32>, vector<32x16xf32>, vector<32x16xf32>, vector<32x16xf32>, vector<32x16xf32>, vector<32x16xf32>, vector<32x16xf32> -> vector<288x16xf32>
    %cst_117 = arith.constant dense<0.000000e+00> : vector<48x16xf32>
    %357 = tpu.matmul %293, %356, %cst_117 {dimension_numbers = #tpu.dot_dimension_numbers<[1], [0], [0], [1], [0, 0, 1, 1], [], []>} : vector<48x288xf32>, vector<288x16xf32>, vector<48x16xf32> -> vector<48x16xf32>
    %358 = vector.broadcast %294 : vector<48x1xf32> to vector<48x16xf32>
    %359 = arith.addf %357, %358 : vector<48x16xf32>
    %cst_118 = arith.constant 0.000000e+00 : f32
    %360 = vector.broadcast %cst_118 : f32 to vector<48x16xf32>
    %361 = arith.maximumf %359, %360 : vector<48x16xf32>
    %c0_119 = arith.constant 0 : index
    %c0_120 = arith.constant 0 : index
    %362 = vector.load %arg17[%c0_119, %c0_120] : memref<16x4xf32, #tpu.memory_space<vmem>>, vector<16x4xf32>
    %cst_121 = arith.constant dense<0.000000e+00> : vector<48x4xf32>
    %363 = tpu.matmul %361, %362, %cst_121 {dimension_numbers = #tpu.dot_dimension_numbers<[1], [0], [0], [1], [0, 0, 1, 1], [], []>} : vector<48x16xf32>, vector<16x4xf32>, vector<48x4xf32> -> vector<48x4xf32>
    %c0_122 = arith.constant 0 : index
    %c0_123 = arith.constant 0 : index
    %c0_124 = arith.constant 0 : index
    %364 = vector.load %arg22[%c0_122, %c0_123, %c0_124] : memref<1x48x4xf32, #tpu.memory_space<vmem>>, vector<1x48x4xf32>
    %365 = vector.shape_cast %364 : vector<1x48x4xf32> to vector<48x4xf32>
    %366 = vector.shape_cast %363 : vector<48x4xf32> to vector<1x48x4xf32>
    tpu.vector_store %arg22[%c0_122, %c0_123, %c0_124], %366 {strides = array<i32>} : memref<1x48x4xf32, #tpu.memory_space<vmem>>, vector<1x48x4xf32>,
    %c0_125 = arith.constant 0 : index
    %c0_126 = arith.constant 0 : index
    %367 = vector.load %arg12[%c0_125, %c0_126] : memref<64x432xf32, #tpu.memory_space<vmem>>, vector<64x432xf32>
    %c0_127 = arith.constant 0 : index
    %c0_128 = arith.constant 0 : index
    %368 = vector.load %arg13[%c0_127, %c0_128] : memref<64x1xf32, #tpu.memory_space<vmem>>, vector<64x1xf32>
    %369 = tpu.iota {dimensions = array<i32: 1>} : vector<1x4xi32>
    %c2_i32 = arith.constant 2 : i32
    %c0_i32_129 = arith.constant 0 : i32
    %370 = arith.cmpi eq, %c2_i32, %c0_i32_129 : i32
    %c1_i32_130 = arith.constant 1 : i32
    %371 = arith.select %370, %c1_i32_130, %c2_i32 : i32
    %372 = vector.broadcast %371 : i32 to vector<1x4xi32>
    %373 = arith.remsi %369, %372 : vector<1x4xi32>
    %c0_i32_131 = arith.constant 0 : i32
    %374 = vector.broadcast %c0_i32_131 : i32 to vector<1x4xi32>
    %375 = arith.cmpi ne, %373, %374 : vector<1x4xi32>
    %c0_i32_132 = arith.constant 0 : i32
    %376 = vector.broadcast %c0_i32_132 : i32 to vector<1x4xi32>
    %377 = arith.cmpi slt, %373, %376 : vector<1x4xi32>
    %c0_i32_133 = arith.constant 0 : i32
    %378 = arith.cmpi slt, %371, %c0_i32_133 : i32
    %379 = vector.broadcast %378 : i1 to vector<1x4xi1>
    %380 = vector.broadcast %379 : vector<1x4xi1> to vector<1x4xi1>
    %381 = arith.xori %377, %380 : vector<1x4xi1>
    %382 = arith.andi %381, %375 : vector<1x4xi1>
    %383 = vector.broadcast %371 : i32 to vector<1x4xi32>
    %384 = arith.addi %373, %383 : vector<1x4xi32>
    %385 = arith.select %382, %384, %373 : vector<1x4xi1>, vector<1x4xi32>
    %c0_i32_134 = arith.constant 0 : i32
    %386 = vector.broadcast %c0_i32_134 : i32 to vector<1x4xi32>
    %387 = arith.cmpi ne, %385, %386 : vector<1x4xi32>
    %388 = arith.extui %387 : vector<1x4xi1> to vector<1x4xi32>
    %389 = arith.sitofp %388 : vector<1x4xi32> to vector<1x4xf32>
    %c1_i32_135 = arith.constant 1 : i32
    %390 = vector.broadcast %c1_i32_135 : i32 to vector<1x4xi32>
    %391 = arith.cmpi ne, %385, %390 : vector<1x4xi32>
    %392 = arith.extui %391 : vector<1x4xi1> to vector<1x4xi32>
    %393 = arith.sitofp %392 : vector<1x4xi32> to vector<1x4xf32>
    %cst_136 = arith.constant 0.000000e+00 : f32
    %394 = vector.broadcast %cst_136 : f32 to vector<48x3xf32>
    %395 = vector.extract_strided_slice %363 {offsets = [0, 0], sizes = [48, 1], strides = [1, 1]} : vector<48x4xf32> to vector<48x1xf32>
    %396 = tpu.concatenate %394, %395 in 1 : vector<48x3xf32>, vector<48x1xf32> -> vector<48x4xf32>
    %397 = vector.broadcast %389 : vector<1x4xf32> to vector<48x4xf32>
    %398 = arith.mulf %396, %397 : vector<48x4xf32>
    %cst_137 = arith.constant 0.000000e+00 : f32
    %399 = vector.broadcast %cst_137 : f32 to vector<48x2xf32>
    %400 = vector.extract_strided_slice %363 {offsets = [0, 0], sizes = [48, 2], strides = [1, 1]} : vector<48x4xf32> to vector<48x2xf32>
    %401 = tpu.concatenate %399, %400 in 1 : vector<48x2xf32>, vector<48x2xf32> -> vector<48x4xf32>
    %cst_138 = arith.constant 0.000000e+00 : f32
    %402 = vector.broadcast %cst_138 : f32 to vector<48x1xf32>
    %403 = vector.extract_strided_slice %363 {offsets = [0, 0], sizes = [48, 3], strides = [1, 1]} : vector<48x4xf32> to vector<48x3xf32>
    %404 = tpu.concatenate %402, %403 in 1 : vector<48x1xf32>, vector<48x3xf32> -> vector<48x4xf32>
    %405 = vector.broadcast %393 : vector<1x4xf32> to vector<48x4xf32>
    %406 = arith.mulf %404, %405 : vector<48x4xf32>
    %cst_139 = arith.constant 0.000000e+00 : f32
    %407 = vector.broadcast %cst_139 : f32 to vector<48x1xf32>
    %408 = vector.extract_strided_slice %363 {offsets = [0, 0], sizes = [48, 3], strides = [1, 1]} : vector<48x4xf32> to vector<48x3xf32>
    %409 = tpu.concatenate %407, %408 in 1 : vector<48x1xf32>, vector<48x3xf32> -> vector<48x4xf32>
    %410 = vector.broadcast %389 : vector<1x4xf32> to vector<48x4xf32>
    %411 = arith.mulf %409, %410 : vector<48x4xf32>
    %cst_140 = arith.constant 0.000000e+00 : f32
    %412 = vector.broadcast %cst_140 : f32 to vector<48x1xf32>
    %413 = vector.extract_strided_slice %363 {offsets = [0, 1], sizes = [48, 3], strides = [1, 1]} : vector<48x4xf32> to vector<48x3xf32>
    %414 = tpu.concatenate %413, %412 in 1 : vector<48x3xf32>, vector<48x1xf32> -> vector<48x4xf32>
    %415 = vector.broadcast %393 : vector<1x4xf32> to vector<48x4xf32>
    %416 = arith.mulf %414, %415 : vector<48x4xf32>
    %cst_141 = arith.constant 0.000000e+00 : f32
    %417 = vector.broadcast %cst_141 : f32 to vector<48x1xf32>
    %418 = vector.extract_strided_slice %363 {offsets = [0, 1], sizes = [48, 3], strides = [1, 1]} : vector<48x4xf32> to vector<48x3xf32>
    %419 = tpu.concatenate %418, %417 in 1 : vector<48x3xf32>, vector<48x1xf32> -> vector<48x4xf32>
    %420 = vector.broadcast %389 : vector<1x4xf32> to vector<48x4xf32>
    %421 = arith.mulf %419, %420 : vector<48x4xf32>
    %cst_142 = arith.constant 0.000000e+00 : f32
    %422 = vector.broadcast %cst_142 : f32 to vector<48x2xf32>
    %423 = vector.extract_strided_slice %363 {offsets = [0, 2], sizes = [48, 2], strides = [1, 1]} : vector<48x4xf32> to vector<48x2xf32>
    %424 = tpu.concatenate %423, %422 in 1 : vector<48x2xf32>, vector<48x2xf32> -> vector<48x4xf32>
    %cst_143 = arith.constant 0.000000e+00 : f32
    %425 = vector.broadcast %cst_143 : f32 to vector<48x3xf32>
    %426 = vector.extract_strided_slice %363 {offsets = [0, 3], sizes = [48, 1], strides = [1, 1]} : vector<48x4xf32> to vector<48x1xf32>
    %427 = tpu.concatenate %426, %425 in 1 : vector<48x1xf32>, vector<48x3xf32> -> vector<48x4xf32>
    %428 = vector.broadcast %393 : vector<1x4xf32> to vector<48x4xf32>
    %429 = arith.mulf %427, %428 : vector<48x4xf32>
    %430 = tpu.concatenate %398, %401, %406, %411, %363, %416, %421, %424, %429 in 0 : vector<48x4xf32>, vector<48x4xf32>, vector<48x4xf32>, vector<48x4xf32>, vector<48x4xf32>, vector<48x4xf32>, vector<48x4xf32>, vector<48x4xf32>, vector<48x4xf32> -> vector<432x4xf32>
    %cst_144 = arith.constant dense<0.000000e+00> : vector<64x4xf32>
    %431 = tpu.matmul %367, %430, %cst_144 {dimension_numbers = #tpu.dot_dimension_numbers<[1], [0], [0], [1], [0, 0, 1, 1], [], []>} : vector<64x432xf32>, vector<432x4xf32>, vector<64x4xf32> -> vector<64x4xf32>
    %432 = vector.broadcast %368 : vector<64x1xf32> to vector<64x4xf32>
    %433 = arith.addf %431, %432 : vector<64x4xf32>
    %cst_145 = arith.constant 0.000000e+00 : f32
    %434 = vector.broadcast %cst_145 : f32 to vector<64x4xf32>
    %435 = arith.maximumf %433, %434 : vector<64x4xf32>
    %c0_146 = arith.constant 0 : index
    %c0_147 = arith.constant 0 : index
    %436 = vector.load %arg18[%c0_146, %c0_147] : memref<4x1xf32, #tpu.memory_space<vmem>>, vector<4x1xf32>
    %cst_148 = arith.constant dense<0.000000e+00> : vector<64x1xf32>
    %437 = tpu.matmul %435, %436, %cst_148 {dimension_numbers = #tpu.dot_dimension_numbers<[1], [0], [0], [1], [0, 0, 1, 1], [], []>} : vector<64x4xf32>, vector<4x1xf32>, vector<64x1xf32> -> vector<64x1xf32>
    %c0_149 = arith.constant 0 : index
    %c0_150 = arith.constant 0 : index
    %c0_151 = arith.constant 0 : index
    %438 = vector.load %arg23[%c0_149, %c0_150, %c0_151] : memref<1x64x1xf32, #tpu.memory_space<vmem>>, vector<1x64x1xf32>
    %439 = vector.shape_cast %438 : vector<1x64x1xf32> to vector<64x1xf32>
    %440 = vector.shape_cast %437 : vector<64x1xf32> to vector<1x64x1xf32>
    tpu.vector_store %arg23[%c0_149, %c0_150, %c0_151], %440 {strides = array<i32>} : memref<1x64x1xf32, #tpu.memory_space<vmem>>, vector<1x64x1xf32>,
    return
  }
  func.func @transform_0(%arg0: i32) -> (i32, i32, i32) {
    %c0_i32 = arith.constant 0 : i32
    %c0_i32_0 = arith.constant 0 : i32
    %c0_i32_1 = arith.constant 0 : i32
    return %arg0, %c0_i32, %c0_i32_0 : i32, i32, i32
  }
  func.func @transform_1(%arg0: i32) -> (i32, i32) {
    %c0_i32 = arith.constant 0 : i32
    %c0_i32_0 = arith.constant 0 : i32
    %c0_i32_1 = arith.constant 0 : i32
    return %c0_i32, %c0_i32_0 : i32, i32
  }
  func.func @transform_2(%arg0: i32) -> (i32, i32) {
    %c0_i32 = arith.constant 0 : i32
    %c0_i32_0 = arith.constant 0 : i32
    %c0_i32_1 = arith.constant 0 : i32
    return %c0_i32, %c0_i32_0 : i32, i32
  }
  func.func @transform_3(%arg0: i32) -> (i32, i32) {
    %c0_i32 = arith.constant 0 : i32
    %c0_i32_0 = arith.constant 0 : i32
    %c0_i32_1 = arith.constant 0 : i32
    return %c0_i32, %c0_i32_0 : i32, i32
  }
  func.func @transform_4(%arg0: i32) -> (i32, i32) {
    %c0_i32 = arith.constant 0 : i32
    %c0_i32_0 = arith.constant 0 : i32
    %c0_i32_1 = arith.constant 0 : i32
    return %c0_i32, %c0_i32_0 : i32, i32
  }
  func.func @transform_5(%arg0: i32) -> (i32, i32) {
    %c0_i32 = arith.constant 0 : i32
    %c0_i32_0 = arith.constant 0 : i32
    %c0_i32_1 = arith.constant 0 : i32
    return %c0_i32, %c0_i32_0 : i32, i32
  }
  func.func @transform_6(%arg0: i32) -> (i32, i32) {
    %c0_i32 = arith.constant 0 : i32
    %c0_i32_0 = arith.constant 0 : i32
    %c0_i32_1 = arith.constant 0 : i32
    return %c0_i32, %c0_i32_0 : i32, i32
  }
  func.func @transform_7(%arg0: i32) -> (i32, i32) {
    %c0_i32 = arith.constant 0 : i32
    %c0_i32_0 = arith.constant 0 : i32
    %c0_i32_1 = arith.constant 0 : i32
    return %c0_i32, %c0_i32_0 : i32, i32
  }
  func.func @transform_8(%arg0: i32) -> (i32, i32) {
    %c0_i32 = arith.constant 0 : i32
    %c0_i32_0 = arith.constant 0 : i32
    %c0_i32_1 = arith.constant 0 : i32
    return %c0_i32, %c0_i32_0 : i32, i32
  }
  func.func @transform_9(%arg0: i32) -> (i32, i32) {
    %c0_i32 = arith.constant 0 : i32
    %c0_i32_0 = arith.constant 0 : i32
    %c0_i32_1 = arith.constant 0 : i32
    return %c0_i32, %c0_i32_0 : i32, i32
  }
  func.func @transform_10(%arg0: i32) -> (i32, i32) {
    %c0_i32 = arith.constant 0 : i32
    %c0_i32_0 = arith.constant 0 : i32
    %c0_i32_1 = arith.constant 0 : i32
    return %c0_i32, %c0_i32_0 : i32, i32
  }
  func.func @transform_11(%arg0: i32) -> (i32, i32) {
    %c0_i32 = arith.constant 0 : i32
    %c0_i32_0 = arith.constant 0 : i32
    %c0_i32_1 = arith.constant 0 : i32
    return %c0_i32, %c0_i32_0 : i32, i32
  }
  func.func @transform_12(%arg0: i32) -> (i32, i32) {
    %c0_i32 = arith.constant 0 : i32
    %c0_i32_0 = arith.constant 0 : i32
    %c0_i32_1 = arith.constant 0 : i32
    return %c0_i32, %c0_i32_0 : i32, i32
  }
  func.func @transform_13(%arg0: i32) -> (i32, i32) {
    %c0_i32 = arith.constant 0 : i32
    %c0_i32_0 = arith.constant 0 : i32
    %c0_i32_1 = arith.constant 0 : i32
    return %c0_i32, %c0_i32_0 : i32, i32
  }
  func.func @transform_14(%arg0: i32) -> (i32, i32) {
    %c0_i32 = arith.constant 0 : i32
    %c0_i32_0 = arith.constant 0 : i32
    %c0_i32_1 = arith.constant 0 : i32
    return %c0_i32, %c0_i32_0 : i32, i32
  }
  func.func @transform_15(%arg0: i32) -> (i32, i32) {
    %c0_i32 = arith.constant 0 : i32
    %c0_i32_0 = arith.constant 0 : i32
    %c0_i32_1 = arith.constant 0 : i32
    return %c0_i32, %c0_i32_0 : i32, i32
  }
  func.func @transform_16(%arg0: i32) -> (i32, i32) {
    %c0_i32 = arith.constant 0 : i32
    %c0_i32_0 = arith.constant 0 : i32
    %c0_i32_1 = arith.constant 0 : i32
    return %c0_i32, %c0_i32_0 : i32, i32
  }
  func.func @transform_17(%arg0: i32) -> (i32, i32) {
    %c0_i32 = arith.constant 0 : i32
    %c0_i32_0 = arith.constant 0 : i32
    %c0_i32_1 = arith.constant 0 : i32
    return %c0_i32, %c0_i32_0 : i32, i32
  }
  func.func @transform_18(%arg0: i32) -> (i32, i32, i32) {
    %c0_i32 = arith.constant 0 : i32
    %c0_i32_0 = arith.constant 0 : i32
    %c0_i32_1 = arith.constant 0 : i32
    return %arg0, %c0_i32, %c0_i32_0 : i32, i32, i32
  }
  func.func @transform_19(%arg0: i32) -> (i32, i32, i32) {
    %c0_i32 = arith.constant 0 : i32
    %c0_i32_0 = arith.constant 0 : i32
    %c0_i32_1 = arith.constant 0 : i32
    return %arg0, %c0_i32, %c0_i32_0 : i32, i32, i32
  }
  func.func @transform_20(%arg0: i32) -> (i32, i32, i32) {
    %c0_i32 = arith.constant 0 : i32
    %c0_i32_0 = arith.constant 0 : i32
    %c0_i32_1 = arith.constant 0 : i32
    return %arg0, %c0_i32, %c0_i32_0 : i32, i32, i32
  }
  func.func @transform_21(%arg0: i32) -> (i32, i32, i32) {
    %c0_i32 = arith.constant 0 : i32
    %c0_i32_0 = arith.constant 0 : i32
    %c0_i32_1 = arith.constant 0 : i32
    return %arg0, %c0_i32, %c0_i32_0 : i32, i32, i32
  }
  func.func @transform_22(%arg0: i32) -> (i32, i32, i32) {
    %c0_i32 = arith.constant 0 : i32
    %c0_i32_0 = arith.constant 0 : i32
    %c0_i32_1 = arith.constant 0 : i32
    return %arg0, %c0_i32, %c0_i32_0 : i32, i32, i32
  }
}

</mosaic_0001>

<bundles_post_ra>
// kernel: base_encoder_b5_forward.1
= control target key start
LH: loop header
LB: loop body
LE: loop exit
PB: predicated region body
PF: predicated region fallthrough
CT: control target
= control target key end

     0   :  { %s9223_s0 = inlined_call_operand.vmem [shape: f32[2,3,1024], index: 0, kind: input, shape index: {}]   ;;  %s9224_s1 = inlined_call_operand.hbm [shape: f32[8,27], index: 1, kind: input, shape index: {}]   ;;  %s9225_s2 = inlined_call_operand.vmem [shape: f32[8,1], index: 2, kind: input, shape index: {}]   ;;  %s9226_s3 = inlined_call_operand.hbm [shape: f32[16,72], index: 3, kind: input, shape index: {}]   ;;  %s9227_s4 = inlined_call_operand.vmem [shape: f32[16,1], index: 4, kind: input, shape index: {}]   ;;  %s9228_s5 = inlined_call_operand.hbm [shape: f32[24,144], index: 5, kind: input, shape index: {}]   ;;  %s9229_s6 = inlined_call_operand.vmem [shape: f32[24,1], index: 6, kind: input, shape index: {}]   ;;  %s9230_s7 = inlined_call_operand.hbm [shape: f32[32,216], index: 7, kind: input, shape index: {}]   ;;  %s9231_s8 = inlined_call_operand.vmem [shape: f32[32,1], index: 8, kind: input, shape index: {}]   ;;  %s9232_s9 = inlined_call_operand.hbm [shape: f32[48,288], index: 9, kind: input, shape index: {}]   ;;  %s9233_s10 = inlined_call_operand.vmem [shape: f32[48,1], index: 10, kind: input, shape index: {}]   ;;  %s9234_s11 = inlined_call_operand.vmem [shape: f32[64,432], index: 11, kind: input, shape index: {}]   ;;  %s9235_s12 = inlined_call_operand.vmem [shape: f32[64,1], index: 12, kind: input, shape index: {}]   ;;  %s9236_s13 = inlined_call_operand.hbm [shape: f32[1024,256], index: 13, kind: input, shape index: {}]   ;;  %s9237_s14 = inlined_call_operand.hbm [shape: f32[256,64], index: 14, kind: input, shape index: {}]   ;;  %s9238_s15 = inlined_call_operand.vmem [shape: f32[64,16], index: 15, kind: input, shape index: {}]   ;;  %s9239_s16 = inlined_call_operand.hbm [shape: f32[16,4], index: 16, kind: input, shape index: {}]   ;;  %s9240_s17 = inlined_call_operand.vmem [shape: f32[4,1], index: 17, kind: input, shape index: {}]   ;;  %s9241_s18 = inlined_call_operand.vmem [shape: f32[2,16,256], index: 18, kind: output, shape index: {0}]   ;;  %s9242_s19 = inlined_call_operand.vmem [shape: f32[2,24,64], index: 19, kind: output, shape index: {1}]   ;;  %s9243_s20 = inlined_call_operand.vmem [shape: f32[2,32,16], index: 20, kind: output, shape index: {2}]   ;;  %s9244_s21 = inlined_call_operand.vmem [shape: f32[2,48,4], index: 21, kind: output, shape index: {3}]   ;;  %s9245_s22 = inlined_call_operand.vmem [shape: f32[2,64,1], index: 22, kind: output, shape index: {4}]  }
   0x1   :  { %9271 = sst [smem:[#allocation21_spill]] %s9223_s0 }
   0x2   :  { %9272 = sst [smem:[#allocation22_spill]] %s9224_s1 }
   0x3   :  { %9273 = sst [smem:[#allocation23_spill]] %s9225_s2 }
   0x4   :  { %9274 = sst [smem:[#allocation24_spill]] %s9226_s3 }
   0x5   :  { %9275 = sst [smem:[#allocation25_spill]] %s9227_s4 }
   0x6   :  { %9276 = sst [smem:[#allocation26_spill]] %s9228_s5 }
   0x7   :  { %9277 = sst [smem:[#allocation27_spill]] %s9229_s6 }
   0x8   :  { %9278 = sst [smem:[#allocation28_spill]] %s9230_s7 }
   0x9   :  { %9279 = sst [smem:[#allocation29_spill]] %s9234_s11 }
   0xa   :  { %9280 = sst [smem:[#allocation30_spill]] %s9235_s12 }
   0xb   :  { %9281 = sst [smem:[#allocation31_spill]] %s9236_s13 }
   0xc   :  { %9282 = sst [smem:[#allocation32_spill]] %s9240_s17 }
   0xd   :  { %9283 = sst [smem:[#allocation33_spill]] %s9245_s22 }
   0xe   :  { %28 = vsyncpa [#allocation3], 0 }
   0xf   :  { %29 = vsyncpa [#allocation5], 0 }
  0x10   :  { %30 = vsyncpa [#allocation8], 0 }
  0x11   :  { %31 = vsyncpa [#allocation11], 0 }
  0x12   :  { %32 = vsyncpa [#allocation14], 0  ;;  %s7136_s3 = smov 0  }
  0x13 LB: > { %9284 = sst [smem:[#allocation20_spill]] %s6973_s3  ;;  %s6975_s28 = smov [#allocation4]   ;;  %s6973_s3 = sphi %s7136_s3, %s38_s3  }
  0x14   : > { %s582_s29 = sshll.u32 %s6975_s28, 4  ;;  %s7142_s30 = sadd.s32 4294967295, %s6973_s3   ;;  %s7147_s29 = int_to_ptr.vmem [resolvable:$true] %s582_s29 }
  0x15   : > { %p5391_p0 = scmp.ge.s32.totalorder %s6973_s3, 1  ;;  %p556_p1 = scmp.lt.s32.totalorder %s6973_s3, 3 }
  0x16   : > { %p9258_p2 = scmp.eq.s32.totalorder %s7142_s30, 0  ;;  %s6976_s23 = smov [#allocation7]  }
  0x17   : > { %p7149_p3 = pnand %p5391_p0, %p556_p1  ;;  %s614_s1 = sshll.u32 %s6976_s23, 4  ;;  %s7161_s1 = int_to_ptr.vmem [resolvable:$true] %s614_s1 }
  0x18   : > { %s6977_s5 = smov [#allocation10]   ;;  %s9287_s26 = sld [smem:[#allocation24_spill]] }
  0x19   : > { %s9285_s4 = scalar_select %p7149_p3, 1, 0 }
  0x1a   : > { %p6468_p4 = pneg %p7149_p3  ;;  %s652_s24 = sshll.u32 %s6977_s5, 4  ;;  %s7163_s24 = int_to_ptr.vmem [resolvable:$true] %s652_s24 }
  0x1c   : > { %p7157_p5 = pnand %p9258_p2, %p6468_p4 }
  0x1e   : > { %s6723_s2 = scalar_lea.hbm %s9287_s26, 256  ;;  %p7173_p7 = pneg %p7157_p5 }
  0x1f   : > { %p6724_p6 = scmp.ne.s32.totalorder %s9287_s26, %s6723_s2  ;;  %p6730_p10 = scmp.lt.u32.totalorder %s6723_s2, %s9287_s26 }
  0x21   : > { %p6726_p8 = pnand %p7173_p7, %p6724_p6 }
  0x23   : > { %p6727_p9 = pneg %p6726_p8 }
  0x25   : > { %p6732_p11 = pnand %p6730_p10, %p6727_p9 }
  0x27   : > { %6735 = shalt.err (!%p6732_p11)
}
  0x28   : > { %s6736_s6 = scalar_lea.vmem %s7147_s29, 256  ;;  %p6744_p1 = scmp.lt.s32.totalorder %s7147_s29, %s7147_s29 }
  0x29   : > { %p6737_p12 = scmp.ne.s32.totalorder %s7147_s29, %s6736_s6  ;;  %p6745_p4 = scmp.lt.s32.totalorder %s6736_s6, %s6736_s6 }
  0x2b   : > { %p6739_p13 = pnand %p6737_p12, %p7173_p7  ;;  %p6746_p6 = por %p6745_p4, %p6744_p1 }
  0x2d   : > { %p6740_p0 = pneg %p6739_p13 }
  0x2f   : > { %p6747_p8 = pnand %p6746_p6, %p6740_p0 }
  0x31   : > { %6750 = shalt.err (!%p6747_p8)
}
  0x32   : > { %s9254_s25 = smov 128   ;;  %s9256_s2 = smov 8  }
  0x33   : > { %6474 = dma.hbm_to_vmem [thread:$0]  (!%p7157_p5), %s9287_s26, 256, %s7147_s29, [#allocation5], %s9254_s25, %s9254_s25, %s9256_s2  }
  0x34   : > { %s9289_s7 = sld [smem:[#allocation28_spill]] }
  0x3a   : > { %s6751_s6 = scalar_lea.hbm %s9289_s7, 1024 }
  0x3b   : > { %p6752_p9 = scmp.ne.s32.totalorder %s9289_s7, %s6751_s6  ;;  %p6758_p12 = scmp.lt.u32.totalorder %s6751_s6, %s9289_s7 }
  0x3d   : > { %p6754_p10 = pnand %p6752_p9, %p7173_p7 }
  0x3f   : > { %p6755_p11 = pneg %p6754_p10 }
  0x41   : > { %p6760_p13 = pnand %p6758_p12, %p6755_p11 }
  0x43   : > { %6763 = shalt.err (!%p6760_p13)
}
  0x44   : > { %s6764_s29 = scalar_lea.vmem %s7161_s1, 1024  ;;  %p6772_p6 = scmp.lt.s32.totalorder %s7161_s1, %s7161_s1 }
  0x45   : > { %p6765_p0 = scmp.ne.s32.totalorder %s7161_s1, %s6764_s29  ;;  %p6773_p8 = scmp.lt.s32.totalorder %s6764_s29, %s6764_s29 }
  0x47   : > { %p6767_p1 = pnand %p6765_p0, %p7173_p7  ;;  %p6774_p9 = por %p6773_p8, %p6772_p6 }
  0x49   : > { %p6768_p4 = pneg %p6767_p1 }
  0x4b   : > { %p6775_p10 = pnand %p6774_p9, %p6768_p4 }
  0x4d   : > { %6778 = shalt.err (!%p6775_p10)
}
  0x4e   : > { %s6980_s17 = smov 256   ;;  %s6981_s11 = smov 16  }
  0x4f   : > { %6480 = dma.hbm_to_vmem [thread:$0]  (!%p7157_p5), %s9289_s7, 1024, %s7161_s1, [#allocation8], %s6980_s17, %s6980_s17, %s6981_s11  }
  0x50   : > { %s9290_s13 = sld [smem:[#allocation31_spill]] }
  0x56   : > { %s6779_s23 = scalar_lea.hbm %s9290_s13, 32768 }
  0x57   : > { %p6780_p11 = scmp.ne.s32.totalorder %s9290_s13, %s6779_s23  ;;  %p6786_p0 = scmp.lt.u32.totalorder %s6779_s23, %s9290_s13 }
  0x59   : > { %p6782_p12 = pnand %p6780_p11, %p7173_p7 }
  0x5b   : > { %p6783_p13 = pneg %p6782_p12 }
  0x5d   : > { %p6788_p1 = pnand %p6786_p0, %p6783_p13 }
  0x5f   : > { %6791 = shalt.err (!%p6788_p1)
}
  0x60   : > { %s6792_s1 = scalar_lea.vmem %s7163_s24, 32768  ;;  %p6800_p9 = scmp.lt.s32.totalorder %s7163_s24, %s7163_s24 }
  0x61   : > { %p6793_p4 = scmp.ne.s32.totalorder %s7163_s24, %s6792_s1  ;;  %p6801_p10 = scmp.lt.s32.totalorder %s6792_s1, %s6792_s1 }
  0x63   : > { %p6795_p6 = pnand %p6793_p4, %p7173_p7  ;;  %p6802_p11 = por %p6801_p10, %p6800_p9 }
  0x65   : > { %p6796_p8 = pneg %p6795_p6 }
  0x67   : > { %p6803_p12 = pnand %p6802_p11, %p6796_p8 }
  0x69   : > { %6806 = shalt.err (!%p6803_p12)
}
  0x6a   : > { %6486 = dma.hbm_to_vmem [thread:$0]  (!%p7157_p5), %s9290_s13, 32768, %s7163_s24, [#allocation11], %s6980_s17, %s6980_s17, %s6981_s11  }
  0x6b   : > { %s6982_s22 = smov [#allocation2]   ;;  %s6983_s28 = smov [#allocation6]  }
  0x6c   : > { %s569_s27 = sshll.u32 %s6982_s22, 4  ;;  %s598_s23 = sshll.u32 %s6983_s28, 4  ;;  %s570_s27 = int_to_ptr.vmem [resolvable:$true] %s569_s27  ;;  %s7249_s23 = int_to_ptr.vmem [resolvable:$true] %s598_s23 }
  0x6d   : > { %s9291_s29 = sld [smem:[#allocation22_spill]] }
  0x73   : > { %s6807_s1 = scalar_lea.hbm %s9291_s29, 128 }
  0x74   : > { %p6808_p13 = scmp.ne.s32.totalorder %s9291_s29, %s6807_s1  ;;  %p6814_p4 = scmp.lt.u32.totalorder %s6807_s1, %s9291_s29 }
  0x76   : > { %p6810_p0 = pnand %p6808_p13, %p7173_p7 }
  0x78   : > { %p6811_p1 = pneg %p6810_p0 }
  0x7a   : > { %p6816_p6 = pnand %p6814_p4, %p6811_p1 }
  0x7c   : > { %6819 = shalt.err (!%p6816_p6)
}
  0x7d   : > { %s6820_s12 = scalar_lea.vmem %s570_s27, 128  ;;  %p6828_p11 = scmp.lt.s32.totalorder %s570_s27, %s570_s27 }
  0x7e   : > { %p6821_p8 = scmp.ne.s32.totalorder %s570_s27, %s6820_s12  ;;  %p6829_p12 = scmp.lt.s32.totalorder %s6820_s12, %s6820_s12 }
  0x80   : > { %p6823_p9 = pnand %p6821_p8, %p7173_p7  ;;  %p6830_p2 = por %p6829_p12, %p6828_p11 }
  0x82   : > { %p6824_p10 = pneg %p6823_p9 }
  0x84   : > { %p6831_p3 = pnand %p6830_p2, %p6824_p10 }
  0x86   : > { %6834 = shalt.err (!%p6831_p3)
}
  0x87   : > { %6471 = dma.hbm_to_vmem [thread:$0]  (!%p7157_p5), %s9291_s29, 128, %s570_s27, [#allocation3]  }
  0x88   : > { %s9292_s5 = sld [smem:[#allocation26_spill]] }
  0x8e   : > { %s6835_s6 = scalar_lea.hbm %s9292_s5, 768 }
  0x8f   : > { %p6836_p13 = scmp.ne.s32.totalorder %s9292_s5, %s6835_s6  ;;  %p6842_p2 = scmp.lt.u32.totalorder %s6835_s6, %s9292_s5 }
  0x91   : > { %p6838_p0 = pnand %p6836_p13, %p7173_p7 }
  0x93   : > { %p6839_p1 = pneg %p6838_p0 }
  0x95   : > { %p6844_p3 = pnand %p6842_p2, %p6839_p1 }
  0x97   : > { %6847 = shalt.err (!%p6844_p3)
}
  0x98   : > { %s6848_s27 = scalar_lea.vmem %s7249_s23, 768  ;;  %p6856_p9 = scmp.lt.s32.totalorder %s7249_s23, %s7249_s23 }
  0x99   : > { %p6849_p4 = scmp.ne.s32.totalorder %s7249_s23, %s6848_s27  ;;  %p6857_p10 = scmp.lt.s32.totalorder %s6848_s27, %s6848_s27 }
  0x9b   : > { %p6851_p6 = pnand %p6849_p4, %p7173_p7  ;;  %p6858_p11 = por %p6857_p10, %p6856_p9 }
  0x9d   : > { %p6852_p8 = pneg %p6851_p6 }
  0x9f   : > { %p6859_p12 = pnand %p6858_p11, %p6852_p8 }
  0xa1   : > { %6862 = shalt.err (!%p6859_p12)
}
  0xa2   : > { %6477 = dma.hbm_to_vmem [thread:$0]  (!%p7157_p5), %s9292_s5, 768, %s7249_s23, [#allocation5], %s6980_s17, %s6980_s17, %s6981_s11  }
  0xa3   : > { %s6984_s22 = smov [#allocation9]   ;;  %s6863_s25 = scalar_lea.hbm %s9232_s9, 2304 }
  0xa4   : > { %s630_s28 = sshll.u32 %s6984_s22, 4  ;;  %p6864_p13 = scmp.ne.s32.totalorder %s9232_s9, %s6863_s25  ;;  %s631_s28 = int_to_ptr.vmem [resolvable:$true] %s630_s28 }
  0xa5   : > { %p6870_p2 = scmp.lt.u32.totalorder %s6863_s25, %s9232_s9 }
  0xa6   : > { %p6866_p0 = pnand %p6864_p13, %p7173_p7 }
  0xa8   : > { %p6867_p1 = pneg %p6866_p0 }
  0xaa   : > { %p6872_p3 = pnand %p6870_p2, %p6867_p1 }
  0xac   : > { %6875 = shalt.err (!%p6872_p3)
}
  0xad   : > { %s6876_s17 = scalar_lea.vmem %s631_s28, 2304  ;;  %p6884_p9 = scmp.lt.s32.totalorder %s631_s28, %s631_s28 }
  0xae   : > { %p6877_p4 = scmp.ne.s32.totalorder %s631_s28, %s6876_s17  ;;  %p6885_p10 = scmp.lt.s32.totalorder %s6876_s17, %s6876_s17 }
  0xb0   : > { %p6879_p6 = pnand %p6877_p4, %p7173_p7  ;;  %p6886_p11 = por %p6885_p10, %p6884_p9 }
  0xb2   : > { %p6880_p8 = pneg %p6879_p6 }
  0xb4   : > { %p6887_p12 = pnand %p6886_p11, %p6880_p8 }
  0xb6   : > { %6890 = shalt.err (!%p6887_p12)
}
  0xb7   : > { %s6985_s11 = smov 384   ;;  %s6986_s23 = smov 24  }
  0xb8   : > { %6483 = dma.hbm_to_vmem [thread:$0]  (!%p7157_p5), %s9232_s9, 2304, %s631_s28, [#allocation8], %s6985_s11, %s6985_s11, %s6986_s23  }
  0xb9   : > { %s6987_s2 = smov [#allocation12]   ;;  %s6988_s6 = smov [#allocation13]  }
  0xba   : > { %s665_s22 = sshll.u32 %s6987_s2, 4  ;;  %s681_s1 = sshll.u32 %s6988_s6, 4  ;;  %s666_s22 = int_to_ptr.vmem [resolvable:$true] %s665_s22  ;;  %s682_s1 = int_to_ptr.vmem [resolvable:$true] %s681_s1 }
  0xbb   : > { %s6891_s12 = scalar_lea.hbm %s9237_s14, 4096 }
  0xbc   : > { %p6892_p13 = scmp.ne.s32.totalorder %s9237_s14, %s6891_s12  ;;  %p6898_p2 = scmp.lt.u32.totalorder %s6891_s12, %s9237_s14 }
  0xbe   : > { %p6894_p0 = pnand %p6892_p13, %p7173_p7 }
  0xc0   : > { %p6895_p1 = pneg %p6894_p0 }
  0xc2   : > { %p6900_p3 = pnand %p6898_p2, %p6895_p1 }
  0xc4   : > { %6903 = shalt.err (!%p6900_p3)
}
  0xc5   : > { %s6904_s28 = scalar_lea.vmem %s666_s22, 4096  ;;  %p6912_p9 = scmp.lt.s32.totalorder %s666_s22, %s666_s22 }
  0xc6   : > { %p6905_p4 = scmp.ne.s32.totalorder %s666_s22, %s6904_s28  ;;  %p6913_p10 = scmp.lt.s32.totalorder %s6904_s28, %s6904_s28 }
  0xc8   : > { %p6907_p6 = pnand %p6905_p4, %p7173_p7  ;;  %p6914_p11 = por %p6913_p10, %p6912_p9 }
  0xca   : > { %p6908_p8 = pneg %p6907_p6 }
  0xcc   : > { %p6915_p12 = pnand %p6914_p11, %p6908_p8 }
  0xce   : > { %6918 = shalt.err (!%p6915_p12)
}
  0xcf   : > { %s9293_s11 = smov 8   ;;  %s9294_s23 = smov 128  }
  0xd0   : > { %6489 = dma.hbm_to_vmem [thread:$0]  (!%p7157_p5), %s9237_s14, 4096, %s666_s22, [#allocation11], %s9294_s23, %s9294_s23, %s9293_s11  }
  0xd1   : > { %s6919_s2 = scalar_lea.hbm %s9239_s16, 256 }
  0xd2   : > { %p6920_p13 = scmp.ne.s32.totalorder %s9239_s16, %s6919_s2  ;;  %p6926_p2 = scmp.lt.u32.totalorder %s6919_s2, %s9239_s16 }
  0xd4   : > { %p6922_p0 = pnand %p6920_p13, %p7173_p7 }
  0xd6   : > { %p6923_p1 = pneg %p6922_p0 }
  0xd8   : > { %p6928_p3 = pnand %p6926_p2, %p6923_p1 }
  0xda   : > { %6931 = shalt.err (!%p6928_p3)
}
  0xdb   : > { %s6932_s27 = scalar_lea.vmem %s682_s1, 256  ;;  %p6940_p9 = scmp.lt.s32.totalorder %s682_s1, %s682_s1 }
  0xdc   : > { %p6933_p4 = scmp.ne.s32.totalorder %s682_s1, %s6932_s27  ;;  %p6941_p10 = scmp.lt.s32.totalorder %s6932_s27, %s6932_s27 }
  0xde   : > { %p6935_p6 = pnand %p6933_p4, %p7173_p7  ;;  %p6942_p11 = por %p6941_p10, %p6940_p9 }
  0xe0   : > { %p6936_p8 = pneg %p6935_p6 }
  0xe2   : > { %p6943_p12 = pnand %p6942_p11, %p6936_p8 }
  0xe4   : > { %6946 = shalt.err (!%p6943_p12)
}
  0xe5   : > { %6492 = dma.hbm_to_vmem [thread:$0]  (!%p7157_p5), %s9239_s16, 256, %s682_s1, [#allocation14], %s9294_s23, %s9294_s23, %s9293_s11  }
  0xe6   : > { %p9295_p13 = scmp.ne.s32.totalorder %s9285_s4, 0 }
  0xe7   : > { %p9296_p7 = scmp.eq.s32.totalorder (!%p9295_p13), %s7142_s30, 0 }
  0xe8   : > { %708 = sbr.rel (%p9295_p13) target bundleno = 3940 (0xf64), region = 92 }
  0xef   : > { %6952 = dma.done.wait (%p9296_p7), [#allocation3], 128   ;;  %p9297_p0 = pmov %p9296_p7 }
  0xf1   : > { %6954 = vsyncadd (%p9297_p0), [#allocation3], 4294967168  ;;  %p9298_p1 = pmov %p9297_p0 }
  0xf2   : > { %p9299_p2 = pmov %p9297_p0 }
  0xf3   : > { %6956 = dma.done.wait (%p9298_p1), [#allocation5], 1024  }
  0xf4   : > { %6958 = vsyncadd (%p9299_p2), [#allocation5], 4294966272  ;;  %p9300_p3 = pmov %p9297_p0 }
  0xf5   : > { %p9301_p5 = pmov %p9297_p0 }
  0xf6   : > { %6960 = dma.done.wait (%p9300_p3), [#allocation8], 3328  }
  0xf7   : > { %6962 = vsyncadd (%p9301_p5), [#allocation8], 4294963968  ;;  %p9302_p4 = pmov %p9297_p0 }
  0xf8   : > { %p9303_p6 = pmov %p9297_p0 }
  0xf9   : > { %6964 = dma.done.wait (%p9302_p4), [#allocation11], 36864  }
  0xfa   : > { %6966 = vsyncadd (%p9303_p6), [#allocation11], 4294930432  ;;  %p9304_p8 = pmov %p9297_p0 }
  0xfb   : > { %p9305_p9 = pmov %p9297_p0 }
  0xfc   : > { %6968 = dma.done.wait (%p9304_p8), [#allocation14], 256  }
  0xfd   : > { %6970 = vsyncadd (%p9305_p9), [#allocation14], 4294967040  ;;  %p818_p10 = scmp.lt.s32.totalorder %s7142_s30, 1  ;;  %v6989_v0 = vmov 0.0   ;;  %s9306_s1 = sld [smem:[#allocation21_spill]]  ;;  %v854_v16 = vlaneseq  ;;  %v6998_v19 = vmov 0  }
  0xfe   : > { %1611 = vmatprep.mubr.f32.mxu0 %v6989_v0  ;;  %1682 = vmatprep.mubr.f32.mxu1 %v6989_v0  ;;  %s6990_s11 = smov 1   ;;  %s6991_s23 = smov 31   ;;  %vm1139_vm1 = vcmask 7168   ;;  %vm1098_vm3 = vcmask 252928   ;;  %vm1180_vm6 = vcmask 1039360   ;;  %vm9267_vm7 = vcmask 269312  }
  0xff   : > { %s9385_s30 = smov (!%p818_p10, %s7142_s30), 1  ;;  %s6992_s26 = smov 127   ;;  %v7500_v17 = vand.u32 127, %v854_v16  ;;  %6598 = vset.pattern.permute.xlu1 %v6998_v19  ;;  %6634 = vset.pattern.permute.xlu0 %v6998_v19  ;;  %vm9269_vm8 = vcmask 1040384   ;;  %vm9264_vm9 = vcmask 261120   ;;  %vm1478_vm10 = vcmask 1043456  }
 0x100   : > { %s7384_s3 = sshll.u32 %s9385_s30, 5  ;;  %s6993_s5 = smov 33   ;;  %vm9263_vm11 = vcmask 1046528   ;;  %vm1451_vm12 = vcmask 1042432   ;;  %vm9262_vm13 = vcmask 1045504   ;;  %vm1221_vm14 = vcmask 793600  }
 0x101   : > { %s6994_s13 = smov 32   ;;  %s6995_s7 = smov 97   ;;  %v7506_v20 = vadd.s32 128, %v7500_v17  ;;  %v867_v21 = vand.u32 31, %v7500_v17  ;;  %vm1262_vm15 = vcmask 785408  }
 0x102   : > { %s6996_s2 = smov 96   ;;  %s6997_s6 = smov 95  }
 0x103   : > { %s7390_s28 = scalar_lea.vmem %s9306_s1, %s7384_s3  ;;  %s9307_s12 = sld [smem:[#allocation23_spill]]  ;;  %v874_v24 = vand.u32 31, %v7506_v20  ;;  %vm959_vm0 = vcmp.ne.s32.totalorder %v867_v21, 0  ;;  %vm983_vm2 = vcmp.ne.s32.totalorder %v867_v21, 31 }
 0x104   : > { %v7393_v1 = vld [vmem:[%s7390_s28] sm:$0x77]  ;;  %v7402_v3 = vld [vmem:[%s7390_s28 + $0x8] sm:$0x77]  ;;  %v7439_v7 = vld [vmem:[%s7390_s28 + $0x10] sm:$0x77] }
 0x105   : > { %1123 = vrot.lane.b32.xlu1 %v7393_v1, %s6990_s11  ;;  %1082 = vrot.lane.b32.xlu0 %v7393_v1, %s6991_s23  ;;  %v1011_v2 = vcombine.high %v7393_v1, %v7393_v1  ;;  %v1012_v6 = vcombine.high %v7402_v3, %v7402_v3  ;;  %v1013_v10 = vcombine.high %v7439_v7, %v7439_v7  ;;  %v7466_v11 = vld [vmem:[%s7390_s28 + $0x18] sm:$0x77]  ;;  %vm960_vm4 = vcmp.ne.s32.totalorder %v874_v24, 0  ;;  %s9344_s17 = sld [smem:[#allocation25_spill]]  ;;  %s7005_s25 = smov 111  }
 0x106   : > { %v1014_v14 = vcombine.high %v7466_v11, %v7466_v11  ;;  %vm984_vm5 = vcmp.ne.s32.totalorder %v874_v24, 31  ;;  %v7516_v27 = vsel %vm959_vm0, 1.0, %v6989_v0  ;;  %v7520_v29 = vsel %vm983_vm2, 1.0, %v6989_v0  ;;  %s9360_s27 = sld [smem:[#allocation27_spill]]  ;;  %s6434_s28 = smul.u32 24, %s9385_s30 }
 0x107   : > { %v6563_v4 = vpack.i.bf16 %v1011_v2, %v7393_v1  ;;  %v6568_v5 = vpack.i.bf16 %v7402_v3, %v1011_v2  ;;  %v6573_v8 = vpack.i.bf16 %v1012_v6, %v7402_v3  ;;  %v6578_v9 = vpack.i.bf16 %v7439_v7, %v1012_v6  ;;  %s7011_s24 = smov 120   ;;  %s7015_s22 = smov 4  }
 0x108   : > { %v6583_v12 = vpack.i.bf16 %v1013_v10, %v7439_v7  ;;  %v6588_v13 = vpack.i.bf16 %v7466_v11, %v1013_v10  ;;  %v6593_v15 = vpack.i.bf16 %v1014_v14, %v7466_v11  ;;  %v7524_v31 = vsel %vm960_vm4, 1.0, %v6989_v0  ;;  %s7016_s4 = smov 3   ;;  %s7017_s0 = smov 124  }
 0x109   : > { %1168 = vrot.lane.b32.xlu1 %v7402_v3, %s6992_s26  ;;  %1084 = vrot.lane.b32.xlu0 %v1011_v2, %s6991_s23  ;;  %v853_v18 = vld [vmem:[%s9307_s12] sm:$0xff]  ;;  %v7527_v32 = vsel %vm984_vm5, 1.0, %v6989_v0  ;;  %v1378_v53 = vcombine.low %v7393_v1, %v7393_v1  ;;  %v857_v24 = vadd.s32 256, %v7500_v17  ;;  %s7012_s12 = smov 119   ;;  %s7018_s1 = smov 123  }
 0x10d   : > { %1125 = vrot.lane.b32.xlu1 %v1011_v2, %s6990_s11  ;;  %1166 = vrot.lane.b32.xlu0 %v1011_v2, %s6992_s26 }
 0x111   : > { %1017 = vrot.lane.b32.xlu1 %v1011_v2, %s6993_s5  ;;  %1015 = vrot.lane.b32.xlu0 %v7393_v1, %s6993_s5 }
 0x115   : > { %1164 = vrot.lane.b32.xlu1 %v7393_v1, %s6992_s26  ;;  %6564 = vrot.lane.b32.xlu0 %v6563_v4, %s6994_s13 }
 0x119   : > { %1209 = vrot.lane.b32.xlu1 %v7402_v3, %s6995_s7  ;;  %1207 = vrot.lane.b32.xlu0 %v1011_v2, %s6995_s7 }
 0x11d   : > { %6569 = vrot.lane.b32.xlu1 %v6568_v5, %s6996_s2  ;;  %1205 = vrot.lane.b32.xlu0 %v7393_v1, %s6995_s7 }
 0x121   : > { %1088 = vrot.lane.b32.xlu1 %v1012_v6, %s6991_s23  ;;  %1086 = vrot.lane.b32.xlu0 %v7402_v3, %s6991_s23 }
 0x125   : > { %1129 = vrot.lane.b32.xlu1 %v1012_v6, %s6990_s11  ;;  %1127 = vrot.lane.b32.xlu0 %v7402_v3, %s6990_s11 }
 0x129   : > { %1274 = vrot.lane.b32.xlu1 %v1011_v2, %s6997_s6  ;;  %1246 = vrot.lane.b32.xlu0 %v7393_v1, %s6996_s2 }
 0x12d   : > { %1272 = vrot.lane.b32.xlu1 %v7393_v1, %s6997_s6  ;;  %1276 = vrot.lane.b32.xlu0 %v7402_v3, %s6997_s6 }
 0x131   : > { %1172 = vrot.lane.b32.xlu1 %v7439_v7, %s6992_s26  ;;  %1170 = vrot.lane.b32.xlu0 %v1012_v6, %s6992_s26 }
 0x135   : > { %1021 = vrot.lane.b32.xlu1 %v1012_v6, %s6993_s5  ;;  %1019 = vrot.lane.b32.xlu0 %v7402_v3, %s6993_s5 }
 0x139   : > { %1211 = vrot.lane.b32.xlu1 %v1012_v6, %s6995_s7  ;;  %6574 = vrot.lane.b32.xlu0 %v6573_v8, %s6994_s13 }
 0x13d   : > { %6579 = vrot.lane.b32.xlu1 %v6578_v9, %s6996_s2  ;;  %1213 = vrot.lane.b32.xlu0 %v7439_v7, %s6995_s7 }
 0x141   : > { %1280 = vrot.lane.b32.xlu1 %v7439_v7, %s6997_s6  ;;  %1278 = vrot.lane.b32.xlu0 %v1012_v6, %s6997_s6 }
 0x145   : > { %1092 = vrot.lane.b32.xlu1 %v1013_v10, %s6991_s23  ;;  %1090 = vrot.lane.b32.xlu0 %v7439_v7, %s6991_s23 }
 0x149   : > { %1133 = vrot.lane.b32.xlu1 %v1013_v10, %s6990_s11  ;;  %1131 = vrot.lane.b32.xlu0 %v7439_v7, %s6990_s11 }
 0x14d   : > { %1176 = vrot.lane.b32.xlu1 %v7466_v11, %s6992_s26  ;;  %1174 = vrot.lane.b32.xlu0 %v1013_v10, %s6992_s26 }
 0x151   : > { %1025 = vrot.lane.b32.xlu1 %v1013_v10, %s6993_s5  ;;  %1023 = vrot.lane.b32.xlu0 %v7439_v7, %s6993_s5 }
 0x155   : > { %1215 = vrot.lane.b32.xlu1 %v1013_v10, %s6995_s7  ;;  %6584 = vrot.lane.b32.xlu0 %v6583_v12, %s6994_s13 }
 0x159   : > { %6589 = vrot.lane.b32.xlu1 %v6588_v13, %s6996_s2  ;;  %1217 = vrot.lane.b32.xlu0 %v7466_v11, %s6995_s7 }
 0x15d   : > { %1284 = vrot.lane.b32.xlu1 %v7466_v11, %s6997_s6  ;;  %1282 = vrot.lane.b32.xlu0 %v1013_v10, %s6997_s6 }
 0x161   : > { %1096 = vrot.lane.b32.xlu1 %v1014_v14, %s6991_s23  ;;  %1094 = vrot.lane.b32.xlu0 %v7466_v11, %s6991_s23 }
 0x165   : > { %1137 = vrot.lane.b32.xlu1 %v1014_v14, %s6990_s11  ;;  %1135 = vrot.lane.b32.xlu0 %v7466_v11, %s6990_s11 }
 0x169   : > { %1027 = vrot.lane.b32.xlu1 %v7466_v11, %s6993_s5  ;;  %1178 = vrot.lane.b32.xlu0 %v1014_v14, %s6992_s26 }
 0x16d   : > { %6594 = vrot.lane.b32.xlu1 %v6593_v15, %s6994_s13  ;;  %1029 = vrot.lane.b32.xlu0 %v1014_v14, %s6993_s5 }
 0x171   : > { %1219 = vrot.lane.b32.xlu0 %v1014_v14, %s6995_s7  ;;  %1260 = vrot.lane.b32.xlu1 %v1014_v14, %s6996_s2 }
 0x175   : > { %1286 = vrot.lane.b32.xlu0 %v1014_v14, %s6997_s6  ;;  %1516 = vperm.xlu1 %6598, %v853_v18  }
 0x177   : > { %v1124_v22 = vpop.permute.xlu1 %1123  ;;  %v1083_v23 = vpop.permute.xlu0 %1082 }
 0x178   : > { %v1155_v28 = vsel %vm1139_vm1, 0.0, %v1124_v22  ;;  %v1114_v30 = vsel %vm1098_vm3, 0.0, %v1083_v23 }
 0x179   : > { %v1156_v37 = vmul.f32 %v7516_v27, %v1155_v28  ;;  %v1115_v38 = vmul.f32 %v7520_v29, %v1114_v30  ;;  %v858_v30 = vadd.s32 384, %v7500_v17 }
 0x17b   : > { %v7511_v25 = vpop.permute.xlu1 %1168  ;;  %v7513_v26 = vpop.permute.xlu0 %1084  ;;  %v1362_v45 = vrot.slane %v1156_v37, 7  ;;  %v1338_v46 = vrot.slane %v1115_v38, 2  ;;  %v881_v37 = vand.u32 31, %v857_v24 }
 0x17c   : > { %v1099_v33 = vsel %vm1098_vm3, %v1083_v23, %v7513_v26 }
 0x17d   : > { %v1116_v40 = vmul.f32 %v7527_v32, %v1099_v33  ;;  %v1470_v59 = vsel %vm9269_vm8, %v1338_v46, %v1362_v45  ;;  %vm985_vm0 = vcmp.ne.s32.totalorder %v881_v37, 31  ;;  %vm961_vm4 = vcmp.ne.s32.totalorder %v881_v37, 0 }
 0x17e   : > { %v1479_v12 = vsel %vm1478_vm10, %v1470_v59, %v1378_v53  ;;  %v7602_v53 = vsel %vm985_vm0, 1.0, %v6989_v0  ;;  %v7608_v59 = vsel %vm961_vm4, 1.0, %v6989_v0  ;;  %vm9265_vm0 = vmmov 1  }
 0x17f   : > { %v7531_v34 = vpop.permute.xlu1 %1125  ;;  %v1167_v35 = vpop.permute.xlu0 %1166  ;;  %v1339_v47 = vrot.slane %v1116_v40, 2  ;;  %v888_v40 = vand.u32 31, %v858_v30  ;;  %vm1519_vm4 = vcmask 220160  }
 0x180   : > { %v1140_v36 = vsel %vm1139_vm1, %v1124_v22, %v7531_v34  ;;  %v1182_v44 = vsel %vm1180_vm6, %v1167_v35, %v7511_v25 }
 0x181   : > { %v1157_v39 = vmul.f32 %v7524_v31, %v1140_v36  ;;  %v7544_v48 = vmul.f32 %v7527_v32, %v1182_v44  ;;  %vm986_vm2 = vcmp.ne.s32.totalorder %v888_v40, 31  ;;  %vm962_vm5 = vcmp.ne.s32.totalorder %v888_v40, 0 }
 0x183   : > { %v7539_v41 = vpop.permute.xlu1 %1017  ;;  %v1016_v42 = vpop.permute.xlu0 %1015  ;;  %v1363_v43 = vrot.slane %v1157_v39, 7  ;;  %v1395_v10 = vrot.slane %v7544_v48, 1 }
 0x184   : > { %v1032_v49 = vsel %vm9267_vm7, %v1016_v42, %v7539_v41  ;;  %v1047_v50 = vsel %vm9267_vm7, 0.0, %v1016_v42 }
 0x185   : > { %v1471_v57 = vsel %vm9269_vm8, %v1339_v47, %v1363_v43  ;;  %v1048_v60 = vmul.f32 %v7516_v27, %v1047_v50  ;;  %v1049_v61 = vmul.f32 %v7524_v31, %v1032_v49 }
 0x186   : > { %v1480_v9 = vsel %vm1478_vm10, %v1471_v57, %v7393_v1 }
 0x187   : > { %v1165_v51 = vpop.permute.xlu1 %1164  ;;  %v7549_v52 = vpop.permute.xlu0 %6564  ;;  %v1489_v18 = vsel %vm9263_vm11, %v1480_v9, %v1395_v10 }
 0x188   : > { %v1181_v54 = vsel %vm1180_vm6, %v1165_v51, %v1167_v35  ;;  %v6567_v55 = vunpack.i.h.bf16 %v7549_v52  ;;  %v6566_v56 = vunpack.i.l.bf16 %v7549_v52 }
 0x189   : > { %v7558_v58 = vmul.f32 %v7520_v29, %v1181_v54 }
 0x18a   : > { %v1081_v62 = vsel %vm9264_vm9, 0.0, %v6566_v56  ;;  %v1073_v63 = vsel %vm9264_vm9, %v6566_v56, %v6567_v55  ;;  %v7605_v56 = vsel %vm986_vm2, 1.0, %v6989_v0  ;;  %vm9268_vm9 = vcmask 1044480   ;;  %vm7637_vm2 = vmpackc.low %vm1451_vm12, %vm9265_vm0 }
 0x18b   : > { %v1394_v2 = vrot.slane %v7558_v58, 1  ;;  %v1314_v4 = vrot.slane %v1081_v62, 5  ;;  %v7568_v5 = vpop.permute.xlu1 %1209  ;;  %v1208_v6 = vpop.permute.xlu0 %1207  ;;  %v1315_v8 = vrot.slane %v1073_v63, 5 }
 0x18c   : > { %v1223_v35 = vsel %vm1221_vm14, %v1208_v6, %v7568_v5 }
 0x18d   : > { %v1453_v13 = vsel %vm1451_vm12, %v1049_v61, %v1315_v8  ;;  %v1452_v14 = vsel %vm1451_vm12, %v1048_v60, %v1314_v4  ;;  %v1488_v15 = vsel %vm9263_vm11, %v1479_v12, %v1394_v2  ;;  %v1239_v44 = vmul.f32 %v7524_v31, %v1223_v35 }
 0x18e   : > { %v1462_v16 = vsel %vm9262_vm13, %v1453_v13, %v1339_v47  ;;  %v1461_v19 = vsel %vm9262_vm13, %v1452_v14, %v1338_v46  ;;  %vm9270_vm13 = vcmask 1041408   ;;  %vm1288_vm11 = vcmask 777216  }
 0x18f   : > { %v7582_v21 = vpop.permute.xlu1 %6569  ;;  %v1206_v1 = vpop.permute.xlu0 %1205  ;;  %v5812_v22 = vpack.c.bf16 %v1489_v18, %v1462_v16  ;;  %v5814_v23 = vpack.c.bf16 %v1488_v15, %v1461_v19  ;;  %v1419_v49 = vrot.slane %v1239_v44, 6  ;;  %v7611_v60 = vsel %vm962_vm5, 1.0, %v6989_v0 }
 0x190   : > { %v1222_v36 = vsel %vm1221_vm14, %v1206_v1, %v1208_v6  ;;  %v6572_v38 = vunpack.i.h.bf16 %v7582_v21  ;;  %v6571_v39 = vunpack.i.l.bf16 %v7582_v21  ;;  %vm9310_vm5 = vcmask 261120  }
 0x191   : > { %5813 = vmatprep.subr.bf16.mxu0 %v5812_v22  ;;  %v1238_v45 = vmul.f32 %v7516_v27, %v1222_v36  ;;  %v1498_v4 = vsel %vm9270_vm13, %v1395_v10, %v1419_v49  ;;  %v7654_v36 = vld [vmem:[#allocation2] sm:$0xff]  ;;  %vm9311_vm0 = vmmov %vm9310_vm5 }
 0x192   : > { %5815 = vmatpush1.bf16.msra.mxu0 %v5814_v23  ;;  %v1264_v46 = vsel %vm1262_vm15, %v6571_v39, %v6572_v38 }
 0x193   : > { %v7585_v28 = vpop.permute.xlu1 %1088  ;;  %v1087_v33 = vpop.permute.xlu0 %1086  ;;  %v1418_v51 = vrot.slane %v1238_v45, 6  ;;  %v1436_v54 = vrot.slane %v1264_v46, 3 }
 0x194   : > { %v1101_v13 = vsel %vm1098_vm3, %v1087_v33, %v7585_v28  ;;  %v1100_v10 = vsel %vm1098_vm3, %v7513_v26, %v1087_v33 }
 0x195   : > { %v1497_v12 = vsel %vm9270_vm13, %v1394_v2, %v1418_v51  ;;  %v1507_v18 = vsel %vm9268_vm9, %v1498_v4, %v1436_v54  ;;  %v1118_v23 = vmul.f32 %v7605_v56, %v1101_v13  ;;  %v1117_v30 = vmul.f32 %v7602_v53, %v1100_v10 }
 0x197   : > { %v7593_v42 = vpop.permute.xlu1 %1129  ;;  %v1128_v43 = vpop.permute.xlu0 %1127  ;;  %v1341_v44 = vrot.slane %v1118_v23, 2  ;;  %v1340_v45 = vrot.slane %v1117_v30, 2 }
 0x198   : > { %v1142_v61 = vsel %vm1139_vm1, %v1128_v43, %v7593_v42  ;;  %v1141_v6 = vsel %vm1139_vm1, %v7531_v34, %v1128_v43 }
 0x199   : > { %v1159_v34 = vmul.f32 %v7611_v60, %v1142_v61  ;;  %v1158_v2 = vmul.f32 %v7608_v59, %v1141_v6  ;;  %v859_v61 = vadd.s32 512, %v7500_v17 }
 0x19b   : > { %v1275_v47 = vpop.permute.xlu1 %1274  ;;  %v1247_v48 = vpop.permute.xlu0 %1246  ;;  %v1365_v33 = vrot.slane %v1159_v34, 7  ;;  %v1364_v37 = vrot.slane %v1158_v2, 7 }
 0x19c   : > { %v1263_v50 = vsel %vm1262_vm15, %v1247_v48, %v6571_v39  ;;  %v1379_v48 = vcombine.low %v7402_v3, %v7402_v3 }
 0x19d   : > { %v1435_v57 = vrot.slane %v1263_v50, 3 }
 0x19f   : > { %v1273_v62 = vpop.permute.xlu1 %1272  ;;  %v7615_v63 = vpop.permute.xlu0 %1276  ;;  %v1506_v16 = vsel %vm9268_vm9, %v1497_v12, %v1435_v57  ;;  %v1472_v57 = vsel %vm9269_vm8, %v1340_v45, %v1364_v37 }
 0x1a0   : > { %v1289_v8 = vsel %vm1288_vm11, %v1273_v62, %v1275_v47  ;;  %v1290_v9 = vsel %vm1288_vm11, %v1275_v47, %v7615_v63  ;;  %v1473_v47 = vsel %vm9269_vm8, %v1341_v44, %v1365_v33  ;;  %v1481_v10 = vsel %vm1478_vm10, %v1472_v57, %v1379_v48 }
 0x1a1   : > { %v1305_v14 = vmul.f32 %v7520_v29, %v1289_v8  ;;  %v1306_v15 = vmul.f32 %v7527_v32, %v1290_v9  ;;  %v1482_v12 = vsel %vm1478_vm10, %v1473_v47, %v7402_v3 }
 0x1a3   : > { %v5819_v19 = vpack.c.bf16 %v1305_v14, %v1506_v16  ;;  %v5816_v1 = vpack.c.bf16 %v1306_v15, %v1507_v18  ;;  %v7642_v22 = vpop.permute.xlu1 %1172  ;;  %v1171_v26 = vpop.permute.xlu0 %1170 }
 0x1a4   : > { %v1184_v24 = vsel %vm1180_vm6, %v1171_v26, %v7642_v22  ;;  %v1183_v35 = vsel %vm1180_vm6, %v7511_v25, %v1171_v26  ;;  %v7663_v25 = vadd.s32 640, %v7500_v17 }
 0x1a5   : > { %5818 = vmatprep.subr.msk.bf16.mxu0 %vm7637_vm2, %v5816_v1  ;;  %v1200_v39 = vmul.f32 %v7605_v56, %v1184_v24  ;;  %v1199_v46 = vmul.f32 %v7602_v53, %v1183_v35 }
 0x1a6   : > { %5821 = vmatpush1.bf16.msk.msra.mxu0 %vm7637_vm2, %v5819_v19  ;;  %v902_v13 = vand.u32 31, %v7663_v25 }
 0x1a7   : > { %v7657_v40 = vpop.permute.xlu1 %1021  ;;  %v1020_v43 = vpop.permute.xlu0 %1019  ;;  %v1397_v49 = vrot.slane %v1200_v39, 1  ;;  %v1396_v9 = vrot.slane %v1199_v46, 1 }
 0x1a8   : > { %v1033_v50 = vsel %vm9267_vm7, %v7539_v41, %v1020_v43  ;;  %v1034_v62 = vsel %vm9267_vm7, %v1020_v43, %v7657_v40  ;;  %vm9312_vm7 = vcmask 1046528  }
 0x1a9   : > { %5438 = vmatmul.mubr.msk.f32.vlgmr.msra.gmra.mrb[0].mxu0 %vm1519_vm4, %v7654_v36  ;;  %v1050_v14 = vmul.f32 %v7608_v59, %v1033_v50  ;;  %v1051_v34 = vmul.f32 %v7611_v60, %v1034_v62  ;;  %v1491_v19 = vsel %vm9312_vm7, %v1482_v12, %v1397_v49 }
 0x1aa   : > { %1753 = vmatprep.mubr.f32.mxu0 %v6989_v0 }
 0x1ab   : > { %v1212_v51 = vpop.permute.xlu1 %1211  ;;  %v7671_v54 = vpop.permute.xlu0 %6574 }
 0x1ac   : > { %v1224_v4 = vsel %vm1221_vm14, %v7568_v5, %v1212_v51  ;;  %v6577_v6 = vunpack.i.h.bf16 %v7671_v54  ;;  %v6576_v8 = vunpack.i.l.bf16 %v7671_v54 }
 0x1ad   : > { %v1240_v41 = vmul.f32 %v7608_v59, %v1224_v4 }
 0x1ae   : > { %v1074_v15 = vsel %vm9310_vm5, %v6567_v55, %v6576_v8  ;;  %v1075_v5 = vsel %vm9311_vm0, %v6576_v8, %v6577_v6  ;;  %vm9313_vm0 = vmmov %vm9312_vm7  ;;  %vm9314_vm7 = vcmask 1045504  }
 0x1af   : > { %v1316_v16 = vrot.slane %v1074_v15, 5  ;;  %v7694_v18 = vpop.permute.xlu1 %6579  ;;  %v7696_v3 = vpop.permute.xlu0 %1213  ;;  %v1317_v2 = vrot.slane %v1075_v5, 5  ;;  %v1420_v1 = vrot.slane %v1240_v41, 6  ;;  %v1490_v33 = vsel %vm9313_vm0, %v1481_v10, %v1396_v9  ;;  %vm9315_vm5 = vmmov %vm9314_vm7 }
 0x1b0   : > { %v6582_v52 = vunpack.i.h.bf16 %v7694_v18  ;;  %v6581_v55 = vunpack.i.l.bf16 %v7694_v18  ;;  %v1225_v26 = vsel %vm1221_vm14, %v1212_v51, %v7696_v3  ;;  %vm988_vm0 = vcmp.ne.s32.totalorder %v902_v13, 31 }
 0x1b1   : > { %v1241_v23 = vmul.f32 %v7611_v60, %v1225_v26  ;;  %v1455_v24 = vsel %vm1451_vm12, %v1051_v34, %v1317_v2  ;;  %v1454_v30 = vsel %vm1451_vm12, %v1050_v14, %v1316_v16  ;;  %v1499_v57 = vsel %vm9270_vm13, %v1396_v9, %v1420_v1 }
 0x1b2   : > { %v1265_v35 = vsel %vm1262_vm15, %v6572_v38, %v6581_v55  ;;  %v1266_v37 = vsel %vm1262_vm15, %v6581_v55, %v6582_v52  ;;  %v1464_v39 = vsel %vm9314_vm7, %v1455_v24, %v1341_v44  ;;  %v1463_v43 = vsel %vm9315_vm5, %v1454_v30, %v1340_v45 }
 0x1b3   : > { %v1437_v46 = vrot.slane %v1265_v35, 3  ;;  %v1438_v25 = vrot.slane %v1266_v37, 3  ;;  %v1421_v47 = vrot.slane %v1241_v23, 6  ;;  %v7715_v48 = vpop.permute.xlu1 %1280  ;;  %v1279_v50 = vpop.permute.xlu0 %1278  ;;  %v5822_v51 = vpack.c.bf16 %v1491_v19, %v1464_v39 }
 0x1b4   : > { %v1291_v21 = vsel %vm1288_vm11, %v7615_v63, %v1279_v50  ;;  %v1292_v38 = vsel %vm1288_vm11, %v1279_v50, %v7715_v48  ;;  %v5824_v62 = vpack.c.bf16 %v1490_v33, %v1463_v43  ;;  %v895_v14 = vand.u32 31, %v859_v61 }
 0x1b5   : > { %v1500_v44 = vsel %vm9270_vm13, %v1397_v49, %v1421_v47  ;;  %v1508_v45 = vsel %vm9268_vm9, %v1499_v57, %v1437_v46  ;;  %v1307_v4 = vmul.f32 %v7602_v53, %v1291_v21  ;;  %v1308_v8 = vmul.f32 %v7605_v56, %v1292_v38  ;;  %5823 = vmatprep.subr.bf16.mxu1 %v5822_v51 }
 0x1b6   : > { %v1509_v41 = vsel %vm9268_vm9, %v1500_v44, %v1438_v25  ;;  %5825 = vmatpush1.bf16.msra.mxu1 %v5824_v62  ;;  %vm964_vm7 = vcmp.ne.s32.totalorder %v902_v13, 0  ;;  %v7730_v49 = vsel %vm988_vm0, 1.0, %v6989_v0  ;;  %vm963_vm5 = vcmp.ne.s32.totalorder %v895_v14, 0 }
 0x1b7   : > { %v5826_v9 = vpack.c.bf16 %v1308_v8, %v1509_v41  ;;  %v5829_v12 = vpack.c.bf16 %v1307_v4, %v1508_v45  ;;  %v7727_v63 = vpop.permute.xlu1 %1092  ;;  %v1091_v15 = vpop.permute.xlu0 %1090  ;;  %v7739_v10 = vsel %vm964_vm7, 1.0, %v6989_v0  ;;  %vm987_vm9 = vcmp.ne.s32.totalorder %v895_v14, 31 }
 0x1b8   : > { %v1103_v5 = vsel %vm1098_vm3, %v1091_v15, %v7727_v63  ;;  %v7747_v16 = vsel %vm963_vm5, 1.0, %v6989_v0  ;;  %v7757_v55 = vsel %vm987_vm9, 1.0, %v6989_v0  ;;  %v1102_v26 = vsel %vm1098_vm3, %v7585_v28, %v1091_v15 }
 0x1b9   : > { %5828 = vmatprep.subr.msk.bf16.mxu1 %vm7637_vm2, %v5826_v9  ;;  %v7744_v34 = vmul.f32 %v7730_v49, %v1103_v5  ;;  %v1119_v37 = vmul.f32 %v7757_v55, %v1102_v26  ;;  %v7770_v39 = vadd.s32 768, %v7500_v17  ;;  %v7775_v43 = vadd.s32 896, %v7500_v17 }
 0x1ba   : > { %5831 = vmatpush1.bf16.msk.msra.mxu1 %vm7637_vm2, %v5829_v12  ;;  %vm9316_vm9 = vcmask 269312   ;;  %vm9320_vm5 = vcmask 261120  }
 0x1bb   : > { %v7741_v61 = vpop.permute.xlu1 %1133  ;;  %v1132_v13 = vpop.permute.xlu0 %1131  ;;  %v1343_v30 = vrot.slane %v7744_v34, 2  ;;  %v1342_v57 = vrot.slane %v1119_v37, 2  ;;  %v909_v38 = vand.u32 31, %v7770_v39  ;;  %v916_v44 = vand.u32 31, %v7775_v43  ;;  %vm9317_vm0 = vmmov %vm9316_vm9 }
 0x1bc   : > { %v1143_v2 = vsel %vm1139_vm1, %v7593_v42, %v1132_v13  ;;  %v1144_v19 = vsel %vm1139_vm1, %v1132_v13, %v7741_v61 }
 0x1bd   : > { %v1161_v1 = vmul.f32 %v7739_v10, %v1144_v19  ;;  %5441 = vmatmul.mubr.msk.f32.vlgmr.msra.gmra.mrb[0].mxu1 %vm1519_vm4, %v7654_v36  ;;  %v1160_v23 = vmul.f32 %v7747_v16, %v1143_v2  ;;  %vm7801_vm7 = vcmp.ne.s32.totalorder %v909_v38, 31 }
 0x1be   : > { %1824 = vmatprep.mubr.f32.mxu1 %v6989_v0 }
 0x1bf   : > { %v7763_v24 = vpop.permute.xlu1 %1176  ;;  %v1175_v42 = vpop.permute.xlu0 %1174  ;;  %v1367_v33 = vrot.slane %v1161_v1, 7  ;;  %v1366_v46 = vrot.slane %v1160_v23, 7 }
 0x1c0   : > { %v1186_v35 = vsel %vm1180_vm6, %v1175_v42, %v7763_v24  ;;  %v1185_v28 = vsel %vm1180_vm6, %v7642_v22, %v1175_v42  ;;  %v1380_v22 = vcombine.low %v7439_v7, %v7439_v7 }
 0x1c1   : > { %v1202_v25 = vmul.f32 %v7730_v49, %v1186_v35  ;;  %v1475_v51 = vsel %vm9269_vm8, %v1343_v30, %v1367_v33  ;;  %v1201_v21 = vmul.f32 %v7757_v55, %v1185_v28  ;;  %v1474_v45 = vsel %vm9269_vm8, %v1342_v57, %v1366_v46 }
 0x1c2   : > { %v1484_v9 = vsel %vm1478_vm10, %v1475_v51, %v7439_v7  ;;  %vm9324_vm8 = vcmask 1046528  }
 0x1c3   : > { %v7778_v47 = vpop.permute.xlu1 %1025  ;;  %v1024_v50 = vpop.permute.xlu0 %1023  ;;  %v1399_v4 = vrot.slane %v1202_v25, 1  ;;  %v1398_v13 = vrot.slane %v1201_v21, 1 }
 0x1c4   : > { %v1036_v62 = vsel %vm9316_vm9, %v1024_v50, %v7778_v47  ;;  %v1035_v12 = vsel %vm9317_vm0, %v7657_v40, %v1024_v50  ;;  %vm9321_vm9 = vmmov %vm9320_vm5  ;;  %vm7812_vm0 = vcmp.ne.s32.totalorder %v916_v44, 31 }
 0x1c5   : > { %v1053_v34 = vmul.f32 %v7739_v10, %v1036_v62  ;;  %v1052_v26 = vmul.f32 %v7747_v16, %v1035_v12  ;;  %v1493_v54 = vsel %vm9324_vm8, %v1484_v9, %v1399_v4 }
 0x1c7   : > { %v1216_v8 = vpop.permute.xlu1 %1215  ;;  %v7789_v41 = vpop.permute.xlu0 %6584 }
 0x1c8   : > { %v1226_v14 = vsel %vm1221_vm14, %v7696_v3, %v1216_v8  ;;  %v6587_v15 = vunpack.i.h.bf16 %v7789_v41  ;;  %v6586_v5 = vunpack.i.l.bf16 %v7789_v41  ;;  %v1483_v3 = vsel %vm1478_vm10, %v1474_v45, %v1380_v22 }
 0x1c9   : > { %v1242_v2 = vmul.f32 %v7747_v16, %v1226_v14 }
 0x1ca   : > { %v1076_v7 = vsel %vm9320_vm5, %v6577_v6, %v6586_v5  ;;  %v1077_v40 = vsel %vm9321_vm9, %v6586_v5, %v6587_v15  ;;  %vm9325_vm5 = vmmov %vm9324_vm8  ;;  %vm9326_vm8 = vcmask 1045504  }
 0x1cb   : > { %v1318_v23 = vrot.slane %v1076_v7, 5  ;;  %v1319_v42 = vrot.slane %v1077_v40, 5  ;;  %v7817_v33 = vpop.permute.xlu1 %6589  ;;  %v7819_v35 = vpop.permute.xlu0 %1217  ;;  %v1422_v6 = vrot.slane %v1242_v2, 6  ;;  %v1492_v50 = vsel %vm9325_vm5, %v1483_v3, %v1398_v13  ;;  %vm9327_vm9 = vmmov %vm9326_vm8 }
 0x1cc   : > { %v6592_v37 = vunpack.i.h.bf16 %v7817_v33  ;;  %v6591_v39 = vunpack.i.l.bf16 %v7817_v33  ;;  %v1227_v28 = vsel %vm1221_vm14, %v1216_v8, %v7819_v35  ;;  %vm9328_vm5 = vcmask 1044480  }
 0x1cd   : > { %v1243_v43 = vmul.f32 %v7739_v10, %v1227_v28  ;;  %v1457_v46 = vsel %vm1451_vm12, %v1053_v34, %v1319_v42  ;;  %v1456_v25 = vsel %vm1451_vm12, %v1052_v26, %v1318_v23  ;;  %v1501_v34 = vsel %vm9270_vm13, %v1398_v13, %v1422_v6 }
 0x1ce   : > { %v1267_v51 = vsel %vm1262_vm15, %v6582_v52, %v6591_v39  ;;  %v1268_v21 = vsel %vm1262_vm15, %v6591_v39, %v6592_v37  ;;  %v1466_v62 = vsel %vm9326_vm8, %v1457_v46, %v1343_v30  ;;  %v1465_v22 = vsel %vm9327_vm9, %v1456_v25, %v1342_v57  ;;  %vm9329_vm8 = vmmov %vm9328_vm5 }
 0x1cf   : > { %v1439_v45 = vrot.slane %v1267_v51, 3  ;;  %v1440_v8 = vrot.slane %v1268_v21, 3  ;;  %v1423_v9 = vrot.slane %v1243_v43, 6  ;;  %v7838_v12 = vpop.permute.xlu1 %1284  ;;  %v1283_v14 = vpop.permute.xlu0 %1282  ;;  %v5832_v5 = vpack.c.bf16 %v1493_v54, %v1466_v62 }
 0x1d0   : > { %v1293_v18 = vsel %vm1288_vm11, %v7715_v48, %v1283_v14  ;;  %v1294_v52 = vsel %vm1288_vm11, %v1283_v14, %v7838_v12  ;;  %v5834_v2 = vpack.c.bf16 %v1492_v50, %v1465_v22  ;;  %vm965_vm9 = vcmp.ne.s32.totalorder %v909_v38, 0 }
 0x1d1   : > { %v1502_v30 = vsel %vm9270_vm13, %v1399_v4, %v1423_v9  ;;  %v1510_v57 = vsel %vm9328_vm5, %v1501_v34, %v1439_v45  ;;  %v1309_v7 = vmul.f32 %v7757_v55, %v1293_v18  ;;  %v1310_v40 = vmul.f32 %v7730_v49, %v1294_v52  ;;  %5833 = vmatprep.subr.bf16.mxu0 %v5832_v5 }
 0x1d2   : > { %v1511_v3 = vsel %vm9329_vm8, %v1502_v30, %v1440_v8  ;;  %5835 = vmatpush1.bf16.msra.mxu0 %v5834_v2  ;;  %v7853_v23 = vsel %vm7801_vm7, 1.0, %v6989_v0  ;;  %vm966_vm13 = vcmp.ne.s32.totalorder %v916_v44, 0  ;;  %v7858_v42 = vsel %vm7812_vm0, 1.0, %v6989_v0 }
 0x1d3   : > { %v5836_v13 = vpack.c.bf16 %v1310_v40, %v1511_v3  ;;  %v5839_v26 = vpack.c.bf16 %v1309_v7, %v1510_v57  ;;  %v1097_v48 = vpop.permute.xlu1 %1096  ;;  %v1095_v4 = vpop.permute.xlu0 %1094  ;;  %v7869_v44 = vsel %vm965_vm9, 1.0, %v6989_v0  ;;  %v7872_v19 = vsel %vm966_vm13, 1.0, %v6989_v0 }
 0x1d4   : > { %v1104_v54 = vsel %vm1098_vm3, %v7727_v63, %v1095_v4  ;;  %v1105_v38 = vsel %vm1098_vm3, %v1095_v4, %v1097_v48  ;;  %v1381_v5 = vcombine.low %v7466_v11, %v7466_v11  ;;  %vm9330_vm13 = vcmask 1040384  }
 0x1d5   : > { %5838 = vmatprep.subr.msk.bf16.mxu0 %vm7637_vm2, %v5836_v13  ;;  %v1121_v6 = vmul.f32 %v7853_v23, %v1104_v54  ;;  %v1122_v1 = vmul.f32 %v7858_v42, %v1105_v38  ;;  %vm9331_vm7 = vcmask 269312   ;;  %vm9332_vm0 = vmmov %vm9330_vm13  ;;  %vm9334_vm8 = vcmask 261120  }
 0x1d6   : > { %5841 = vmatpush1.bf16.msk.msra.mxu0 %vm7637_vm2, %v5839_v26  ;;  %vm9333_vm5 = vmmov %vm9331_vm7 }
 0x1d7   : > { %v1138_v39 = vpop.permute.xlu1 %1137  ;;  %v1136_v63 = vpop.permute.xlu0 %1135  ;;  %v1344_v50 = vrot.slane %v1121_v6, 2  ;;  %v1345_v51 = vrot.slane %v1122_v1, 2  ;;  %vm9335_vm9 = vmmov %vm9334_vm8 }
 0x1d8   : > { %v1145_v28 = vsel %vm1139_vm1, %v7741_v61, %v1136_v63  ;;  %v1146_v43 = vsel %vm1139_vm1, %v1136_v63, %v1138_v39 }
 0x1d9   : > { %v1162_v46 = vmul.f32 %v7869_v44, %v1145_v28  ;;  %v1163_v25 = vmul.f32 %v7872_v19, %v1146_v43  ;;  %5444 = vmatmul.mubr.msk.f32.vlgmr.msra.gmra.mrb[2].mxu0 %vm1519_vm4, %v7654_v36 }
 0x1da   : > { %2236 = vmatprep.mubr.f32.mxu0 %v6989_v0 }
 0x1db   : > { %v1368_v21 = vrot.slane %v1162_v46, 7  ;;  %v1369_v62 = vrot.slane %v1163_v25, 7  ;;  %v1028_v22 = vpop.permute.xlu1 %1027  ;;  %v1179_v45 = vpop.permute.xlu0 %1178 }
 0x1dc   : > { %v1187_v61 = vsel %vm1180_vm6, %v7763_v24, %v1179_v45  ;;  %v1196_v8 = vsel %vm1180_vm6, %v1179_v45, 0.0  ;;  %v1037_v18 = vsel %vm9331_vm7, %v7778_v47, %v1028_v22 }
 0x1dd   : > { %v1203_v9 = vmul.f32 %v7853_v23, %v1187_v61  ;;  %v1204_v14 = vmul.f32 %v7858_v42, %v1196_v8  ;;  %v1476_v34 = vsel %vm9330_vm13, %v1344_v50, %v1368_v21  ;;  %v1477_v30 = vsel %vm9332_vm0, %v1345_v51, %v1369_v62 }
 0x1de   : > { %v1054_v40 = vmul.f32 %v7869_v44, %v1037_v18  ;;  %v1485_v26 = vsel %vm1478_vm10, %v1476_v34, %v1381_v5  ;;  %v1486_v54 = vsel %vm1478_vm10, %v1477_v30, %v7466_v11  ;;  %vm9336_vm13 = vcmask 1046528  }
 0x1df   : > { %v6595_v52 = vpop.permute.xlu1 %6594  ;;  %v1030_v2 = vpop.permute.xlu0 %1029  ;;  %v1400_v3 = vrot.slane %v1203_v9, 1  ;;  %v1401_v13 = vrot.slane %v1204_v14, 1  ;;  %vm9337_vm7 = vmmov %vm9336_vm13  ;;  %vm9338_vm0 = vcmask 1045504  }
 0x1e0   : > { %v6597_v57 = vunpack.i.h.bf16 %v6595_v52  ;;  %v6596_v24 = vunpack.i.l.bf16 %v6595_v52  ;;  %v1038_v7 = vsel %vm9333_vm5, %v1028_v22, %v1030_v2  ;;  %vm9339_vm5 = vmmov %vm9338_vm0 }
 0x1e1   : > { %v1055_v4 = vmul.f32 %v7872_v19, %v1038_v7  ;;  %v1495_v11 = vsel %vm9336_vm13, %v1486_v54, %v1401_v13  ;;  %v1494_v25 = vsel %vm9337_vm7, %v1485_v26, %v1400_v3  ;;  %vm9347_vm7 = vcmask 261120  }
 0x1e2   : > { %v1078_v48 = vsel %vm9334_vm8, %v6587_v15, %v6596_v24  ;;  %v1079_v47 = vsel %vm9335_vm9, %v6596_v24, %v6597_v57  ;;  %vm9340_vm8 = vcmask 1041408  }
 0x1e3   : > { %v1320_v38 = vrot.slane %v1078_v48, 5  ;;  %v1321_v6 = vrot.slane %v1079_v47, 5  ;;  %v1220_v1 = vpop.permute.xlu0 %1219  ;;  %v1261_v39 = vpop.permute.xlu1 %1260  ;;  %vm9341_vm9 = vmmov %vm9340_vm8 }
 0x1e4   : > { %v1228_v63 = vsel %vm1221_vm14, %v7819_v35, %v1220_v1  ;;  %v1237_v28 = vsel %vm1221_vm14, %v1220_v1, 0.0  ;;  %v1269_v41 = vsel %vm1262_vm15, %v6592_v37, %v1261_v39  ;;  %v1271_v15 = vsel %vm1262_vm15, %v1261_v39, 0.0 }
 0x1e5   : > { %v1244_v43 = vmul.f32 %v7869_v44, %v1228_v63  ;;  %v1245_v46 = vmul.f32 %v7872_v19, %v1237_v28  ;;  %v1441_v21 = vrot.slane %v1269_v41, 3  ;;  %v1442_v62 = vrot.slane %v1271_v15, 3 }
 0x1e6   : > { %v1459_v35 = vsel %vm1451_vm12, %v1055_v4, %v1321_v6  ;;  %v1458_v22 = vsel %vm1451_vm12, %v1054_v40, %v1320_v38  ;;  %vm9342_vm12 = vcmask 1044480  }
 0x1e7   : > { %v1424_v45 = vrot.slane %v1244_v43, 6  ;;  %v1425_v33 = vrot.slane %v1245_v46, 6  ;;  %v1287_v61 = vpop.permute.xlu0 %1286  ;;  %v1468_v37 = vsel %vm9338_vm0, %v1459_v35, %v1345_v51  ;;  %v1467_v8 = vsel %vm9339_vm5, %v1458_v22, %v1344_v50  ;;  %vm9343_vm13 = vmmov %vm9342_vm12 }
 0x1e8   : > { %v1295_v9 = vsel %vm1288_vm11, %v7838_v12, %v1287_v61  ;;  %v1304_v14 = vsel %vm1288_vm11, %v1287_v61, 0.0  ;;  %v5842_v5 = vpack.c.bf16 %v1495_v11, %v1468_v37  ;;  %v5844_v34 = vpack.c.bf16 %v1494_v25, %v1467_v8  ;;  %v1841_v8 = vld [vmem:[%s9344_s17] sm:$0xff]  ;;  %vm5448_vm0 = vmneg %vm9347_vm7 }
 0x1e9   : > { %v1503_v18 = vsel %vm9340_vm8, %v1400_v3, %v1424_v45  ;;  %v1504_v52 = vsel %vm9341_vm9, %v1401_v13, %v1425_v33  ;;  %v1311_v2 = vmul.f32 %v7853_v23, %v1295_v9  ;;  %v1312_v30 = vmul.f32 %v7858_v42, %v1304_v14  ;;  %vm9348_vm5 = vmmov %vm9347_vm7 }
 0x1ea   : > { %v1512_v57 = vsel %vm9342_vm12, %v1503_v18, %v1441_v21  ;;  %v1513_v51 = vsel %vm9343_vm13, %v1504_v52, %v1442_v62  ;;  %5843 = vmatprep.subr.bf16.mxu1 %v5842_v5  ;;  %v1842_v52 = vld [vmem:[%s9344_s17 + $0x8] sm:$0xff]  ;;  %vm9349_vm8 = vmmov 1   ;;  %vm2165_vm12 = vcmask 588800  }
 0x1eb   : > { %v5846_v50 = vpack.c.bf16 %v1312_v30, %v1513_v51  ;;  %v5849_v24 = vpack.c.bf16 %v1311_v2, %v1512_v57  ;;  %5845 = vmatpush1.bf16.msra.mxu1 %v5844_v34  ;;  %vm5855_vm9 = vmpackc.low %vm5448_vm0, %vm9349_vm8 }
 0x1ed   : > { %5848 = vmatprep.subr.msk.bf16.mxu1 %vm7637_vm2, %v5846_v50 }
 0x1ef   : > { %5851 = vmatpush1.bf16.msk.msra.mxu1 %vm7637_vm2, %v5849_v24  ;;  %vm9345_vm2 = vcmask 269312  }
 0x1f0   : > { %vm9350_vm13 = vmmov %vm9345_vm2 }
 0x1f1   : > { %vm9353_vm0 = vmmov %vm9345_vm2 }
 0x1f2   : > { %5447 = vmatmul.mubr.msk.f32.vlgmr.msra.gmra.mrb[2].mxu1 %vm1519_vm4, %v7654_v36  ;;  %vm9346_vm4 = vmmov %vm9345_vm2 }
 0x1f3   : > { %2467 = vmatprep.mubr.f32.mxu1 %v6989_v0 }
 0x1f4   : > { %v7935_v12 = vpop.permute.xlu1 %1516 }
 0x27c   : > { %v1613_v7 = vpop.f32.mrb[0].mxu0 }
 0x27d   : > { %v1614_v40 = vadd.f32 %v1613_v7, %v7935_v12  ;;  %v1615_v3 = vpop.f32.mrb[1].mxu0 }
 0x27e   : > { %v1616_v58 = vadd.f32 %v1615_v3, %v7935_v12 }
 0x27f   : > { %v7938_v13 = vmax.f32 %v1614_v40, 0.0 }
 0x280   : > { %v7947_v36 = vmax.f32 %v1616_v58, 0.0 }
 0x281   : > { %1923 = vrot.lane.b32.xlu1 %v7938_v13, %s6991_s23  ;;  %1851 = vrot.lane.b32.xlu0 %v7938_v13, %s6993_s5 }
 0x282   : > { %v6599_v54 = vpack.i.bf16 %v7947_v36, %v7938_v13 }
 0x285   : > { %1963 = vrot.lane.b32.xlu1 %v7938_v13, %s6990_s11 }
 0x289   : > { %2003 = vrot.lane.b32.xlu1 %v7938_v13, %s6992_s26 }
 0x28d   : > { %1853 = vrot.lane.b32.xlu1 %v7947_v36, %s6993_s5 }
 0x290   : > { %v1684_v26 = vpop.f32.mrb[0].mxu1 }
 0x291   : > { %v1685_v48 = vadd.f32 %v1684_v26, %v7935_v12  ;;  %v1686_v47 = vpop.f32.mrb[1].mxu1 }
 0x292   : > { %v1687_v6 = vadd.f32 %v1686_v47, %v7935_v12 }
 0x293   : > { %v7954_v4 = vmax.f32 %v1685_v48, 0.0 }
 0x294   : > { %v7983_v1 = vmax.f32 %v1687_v6, 0.0 }
 0x295   : > { %2047 = vrot.lane.b32.xlu1 %v7954_v4, %s6995_s7  ;;  %2007 = vrot.lane.b32.xlu0 %v7954_v4, %s6992_s26  ;;  %v6604_v38 = vpack.i.bf16 %v7954_v4, %v7947_v36 }
 0x296   : > { %v6609_v15 = vpack.i.bf16 %v7983_v1, %v7954_v4 }
 0x299   : > { %2005 = vrot.lane.b32.xlu1 %v7947_v36, %s6992_s26  ;;  %6600 = vrot.lane.b32.xlu0 %v6599_v54, %s6994_s13 }
 0x29d   : > { %6605 = vrot.lane.b32.xlu1 %v6604_v38, %s6996_s2  ;;  %1925 = vrot.lane.b32.xlu0 %v7947_v36, %s6991_s23 }
 0x2a1   : > { %2117 = vrot.lane.b32.xlu1 %v7947_v36, %s6997_s6  ;;  %1965 = vrot.lane.b32.xlu0 %v7947_v36, %s6990_s11 }
 0x2a5   : > { %2115 = vrot.lane.b32.xlu1 %v7938_v13, %s6997_s6  ;;  %2043 = vrot.lane.b32.xlu0 %v7938_v13, %s6995_s7 }
 0x2a9   : > { %1927 = vrot.lane.b32.xlu1 %v7954_v4, %s6991_s23  ;;  %2045 = vrot.lane.b32.xlu0 %v7947_v36, %s6995_s7 }
 0x2ac   : > { %v1755_v39 = vpop.f32.mrb[2].mxu0 }
 0x2ad   : > { %v1757_v63 = vpop.f32.mrb[3].mxu0  ;;  %1857 = vrot.lane.b32.xlu1 %v7983_v1, %s6993_s5  ;;  %2083 = vrot.lane.b32.xlu0 %v7938_v13, %s6996_s2  ;;  %v1756_v28 = vadd.f32 %v1755_v39, %v7935_v12 }
 0x2ae   : > { %v1758_v46 = vadd.f32 %v1757_v63, %v7935_v12 }
 0x2af   : > { %v7998_v41 = vmax.f32 %v1756_v28, 0.0 }
 0x2b0   : > { %v8019_v21 = vmax.f32 %v1758_v46, 0.0 }
 0x2b1   : > { %1967 = vrot.lane.b32.xlu1 %v7954_v4, %s6990_s11  ;;  %2119 = vrot.lane.b32.xlu0 %v7954_v4, %s6997_s6  ;;  %v6614_v43 = vpack.i.bf16 %v7998_v41, %v7983_v1 }
 0x2b2   : > { %v6619_v22 = vpack.i.bf16 %v8019_v21, %v7998_v41 }
 0x2b5   : > { %2009 = vrot.lane.b32.xlu1 %v7983_v1, %s6992_s26  ;;  %1855 = vrot.lane.b32.xlu0 %v7954_v4, %s6993_s5 }
 0x2b9   : > { %2049 = vrot.lane.b32.xlu1 %v7983_v1, %s6995_s7  ;;  %6610 = vrot.lane.b32.xlu0 %v6609_v15, %s6994_s13 }
 0x2bd   : > { %6615 = vrot.lane.b32.xlu1 %v6614_v43, %s6996_s2  ;;  %1929 = vrot.lane.b32.xlu0 %v7983_v1, %s6991_s23 }
 0x2c1   : > { %2123 = vrot.lane.b32.xlu1 %v7998_v41, %s6997_s6  ;;  %1969 = vrot.lane.b32.xlu0 %v7983_v1, %s6990_s11 }
 0x2c5   : > { %v1826_v11 = vpop.f32.mrb[2].mxu1  ;;  %1931 = vrot.lane.b32.xlu1 %v7998_v41, %s6991_s23  ;;  %2011 = vrot.lane.b32.xlu0 %v7998_v41, %s6992_s26 }
 0x2c6   : > { %v1828_v25 = vpop.f32.mrb[3].mxu1  ;;  %v1827_v62 = vadd.f32 %v1826_v11, %v7935_v12 }
 0x2c7   : > { %v1829_v33 = vadd.f32 %v1828_v25, %v7935_v12 }
 0x2c8   : > { %v8034_v35 = vmax.f32 %v1827_v62, 0.0 }
 0x2c9   : > { %1861 = vrot.lane.b32.xlu1 %v8019_v21, %s6993_s5  ;;  %2051 = vrot.lane.b32.xlu0 %v7998_v41, %s6995_s7  ;;  %v8055_v61 = vmax.f32 %v1829_v33, 0.0 }
 0x2ca   : > { %v6624_v45 = vpack.i.bf16 %v8034_v35, %v8019_v21 }
 0x2cb   : > { %v6629_v37 = vpack.i.bf16 %v8055_v61, %v8034_v35 }
 0x2cd   : > { %1971 = vrot.lane.b32.xlu1 %v7998_v41, %s6990_s11  ;;  %2121 = vrot.lane.b32.xlu0 %v7983_v1, %s6997_s6 }
 0x2d1   : > { %2013 = vrot.lane.b32.xlu1 %v8019_v21, %s6992_s26  ;;  %1859 = vrot.lane.b32.xlu0 %v7998_v41, %s6993_s5 }
 0x2d5   : > { %2053 = vrot.lane.b32.xlu1 %v8019_v21, %s6995_s7  ;;  %6620 = vrot.lane.b32.xlu0 %v6619_v22, %s6994_s13 }
 0x2d9   : > { %6625 = vrot.lane.b32.xlu1 %v6624_v45, %s6996_s2  ;;  %1933 = vrot.lane.b32.xlu0 %v8019_v21, %s6991_s23 }
 0x2dd   : > { %2127 = vrot.lane.b32.xlu1 %v8034_v35, %s6997_s6  ;;  %1973 = vrot.lane.b32.xlu0 %v8019_v21, %s6990_s11 }
 0x2e1   : > { %1935 = vrot.lane.b32.xlu1 %v8034_v35, %s6991_s23  ;;  %2015 = vrot.lane.b32.xlu0 %v8034_v35, %s6992_s26 }
 0x2e5   : > { %1865 = vrot.lane.b32.xlu1 %v8055_v61, %s6993_s5  ;;  %2055 = vrot.lane.b32.xlu0 %v8034_v35, %s6995_s7 }
 0x2e9   : > { %1975 = vrot.lane.b32.xlu1 %v8034_v35, %s6990_s11  ;;  %2125 = vrot.lane.b32.xlu0 %v8019_v21, %s6997_s6 }
 0x2ed   : > { %2017 = vrot.lane.b32.xlu1 %v8055_v61, %s6992_s26  ;;  %1863 = vrot.lane.b32.xlu0 %v8034_v35, %s6993_s5  ;;  %s7000_s5 = smov 15  }
 0x2f1   : > { %2097 = vrot.lane.b32.xlu1 %v8055_v61, %s6996_s2  ;;  %6630 = vrot.lane.b32.xlu0 %v6629_v37, %s6994_s13  ;;  %s7001_s13 = smov 17   ;;  %s7003_s2 = smov 113  }
 0x2f3   : > { %v1924_v9 = vpop.permute.xlu1 %1923  ;;  %v1852_v18 = vpop.permute.xlu0 %1851 }
 0x2f4   : > { %v1882_v51 = vsel %vm9346_vm4, 0.0, %v1852_v18  ;;  %v1954_v38 = vsel %vm1098_vm3, 0.0, %v1924_v9  ;;  %vm9351_vm4 = vmmov %vm9348_vm5 }
 0x2f5   : > { %2157 = vperm.xlu1 %6598, %v1841_v8   ;;  %1937 = vrot.lane.b32.xlu0 %v8055_v61, %s6991_s23  ;;  %v1883_v3 = vmul.f32 %v7516_v27, %v1882_v51  ;;  %v1955_v43 = vmul.f32 %v7520_v29, %v1954_v38  ;;  %vm9352_vm7 = vmmov %vm9351_vm4  ;;  %s827_s23 = scalar_lea.vmem %s9241_s18, %s7384_s3 }
 0x2f7   : > { %v1964_v14 = vpop.permute.xlu1 %1963 }
 0x2f8   : > { %v1994_v6 = vsel %vm1139_vm1, 0.0, %v1964_v14 }
 0x2f9   : > { %1977 = vrot.lane.b32.xlu0 %v8055_v61, %s6990_s11  ;;  %v1995_v46 = vmul.f32 %v7516_v27, %v1994_v6 }
 0x2fb   : > { %v2004_v5 = vpop.permute.xlu1 %2003 }
 0x2fd   : > { %2057 = vrot.lane.b32.xlu0 %v8055_v61, %s6995_s7  ;;  %s7002_s7 = smov 16  }
 0x2ff   : > { %v8085_v34 = vpop.permute.xlu1 %1853 }
 0x300   : > { %v1867_v57 = vsel %vm9345_vm2, %v1852_v18, %v8085_v34 }
 0x301   : > { %2129 = vrot.lane.b32.xlu0 %v8055_v61, %s6997_s6  ;;  %v1884_v40 = vmul.f32 %v7524_v31, %v1867_v57  ;;  %s7004_s6 = smov 112  }
 0x305   : > { %2162 = vperm.xlu0 %6634, %v1842_v52  }
 0x307   : > { %v8090_v2 = vpop.permute.xlu1 %2047  ;;  %v8092_v30 = vpop.permute.xlu0 %2007 }
 0x30b   : > { %v2006_v50 = vpop.permute.xlu1 %2005  ;;  %v8097_v24 = vpop.permute.xlu0 %6600 }
 0x30c   : > { %v6603_v12 = vunpack.i.h.bf16 %v8097_v24  ;;  %v6602_v7 = vunpack.i.l.bf16 %v8097_v24  ;;  %v2020_v39 = vsel %vm1180_vm6, %v2006_v50, %v8092_v30  ;;  %v2019_v25 = vsel %vm1180_vm6, %v2004_v5, %v2006_v50 }
 0x30d   : > { %v2036_v62 = vmul.f32 %v7527_v32, %v2020_v39  ;;  %v2035_v18 = vmul.f32 %v7520_v29, %v2019_v25 }
 0x30e   : > { %v1907_v58 = vsel %vm9348_vm5, %v6602_v7, %v6603_v12  ;;  %v5854_v54 = vpack.c.bf16 %v6602_v7, %v1883_v3  ;;  %vm9354_vm5 = vmmov %vm9353_vm0 }
 0x30f   : > { %v8107_v26 = vpop.permute.xlu1 %6605  ;;  %v8109_v48 = vpop.permute.xlu0 %1925  ;;  %v5852_v47 = vpack.c.bf16 %v1907_v58, %v1884_v40  ;;  %v5861_v52 = vpack.c.bf16 %v2036_v62, %v7947_v36  ;;  %v5863_v50 = vpack.c.bf16 %v2035_v18, %v7938_v13 }
 0x310   : > { %v1939_v63 = vsel %vm1098_vm3, %v1924_v9, %v8109_v48  ;;  %v5859_v9 = vpack.c.bf16 %v1995_v46, %v1955_v43  ;;  %v6608_v57 = vunpack.i.h.bf16 %v8107_v26 }
 0x311   : > { %5853 = vmatprep.subr.bf16.mxu0 %v5852_v47  ;;  %v1956_v22 = vmul.f32 %v7527_v32, %v1939_v63 }
 0x312   : > { %5856 = vmatpush1.bf16.msk.msra.mxu0 %vm5855_vm9, %v5854_v54  ;;  %vm9355_vm9 = vmmov %vm9351_vm4 }
 0x313   : > { %v2118_v28 = vpop.permute.xlu1 %2117  ;;  %v8118_v15 = vpop.permute.xlu0 %1965 }
 0x314   : > { %v1979_v11 = vsel %vm1139_vm1, %v1964_v14, %v8118_v15  ;;  %v6607_v14 = vunpack.i.l.bf16 %v8107_v26 }
 0x315   : > { %v1996_v45 = vmul.f32 %v7524_v31, %v1979_v11  ;;  %v8151_v11 = vld [vmem:[#allocation4] sm:$0xff] }
 0x316   : > { %v2100_v36 = vsel %vm1262_vm15, %v6607_v14, %v6608_v57 }
 0x317   : > { %v2116_v33 = vpop.permute.xlu1 %2115  ;;  %v2044_v37 = vpop.permute.xlu0 %2043  ;;  %v5857_v8 = vpack.c.bf16 %v1996_v45, %v1956_v22 }
 0x318   : > { %v2131_v39 = vsel %vm1288_vm11, %v2116_v33, %v2118_v28 }
 0x319   : > { %5858 = vmatprep.subr.bf16.mxu0 %v5857_v8 }
 0x31a   : > { %5860 = vmatpush1.bf16.msra.mxu0 %v5859_v9 }
 0x31b   : > { %v1928_v5 = vpop.permute.xlu1 %1927  ;;  %v2046_v51 = vpop.permute.xlu0 %2045  ;;  %5862 = vmatprep.subr.bf16.mxu0 %v5861_v52 }
 0x31c   : > { %v2059_v7 = vsel %vm1221_vm14, %v2044_v37, %v2046_v51  ;;  %v2060_v40 = vsel %vm1221_vm14, %v2046_v51, %v8090_v2 }
 0x31d   : > { %v2076_v3 = vmul.f32 %v7524_v31, %v2060_v40  ;;  %v2075_v58 = vmul.f32 %v7516_v27, %v2059_v7  ;;  %v2147_v27 = vmul.f32 %v7520_v29, %v2131_v39 }
 0x31e   : > { %5864 = vmatpush1.bf16.msra.mxu0 %v5863_v50 }
 0x31f   : > { %v8141_v47 = vpop.permute.xlu1 %1857  ;;  %v2084_v54 = vpop.permute.xlu0 %2083  ;;  %v5865_v38 = vpack.c.bf16 %v2100_v36, %v2076_v3 }
 0x320   : > { %v2099_v13 = vsel %vm1262_vm15, %v2084_v54, %v6607_v14 }
 0x321   : > { %v5867_v6 = vpack.c.bf16 %v2099_v13, %v2075_v58  ;;  %5866 = vmatprep.subr.bf16.mxu0 %v5865_v38 }
 0x323   : > { %v1968_v63 = vpop.permute.xlu1 %1967  ;;  %v8145_v43 = vpop.permute.xlu0 %2119  ;;  %5868 = vmatpush1.bf16.msra.mxu0 %v5867_v6 }
 0x324   : > { %v2132_v31 = vsel %vm1288_vm11, %v2118_v28, %v8145_v43  ;;  %v1980_v7 = vsel %vm1139_vm1, %v8118_v15, %v1968_v63 }
 0x325   : > { %v2148_v46 = vmul.f32 %v7527_v32, %v2132_v31  ;;  %v8160_v32 = vld [vmem:[#allocation4 + $0x8] sm:$0xff]  ;;  %v1997_v36 = vmul.f32 %v7608_v59, %v1980_v7 }
 0x327   : > { %v2010_v25 = vpop.permute.xlu1 %2009  ;;  %v1856_v62 = vpop.permute.xlu0 %1855  ;;  %2188 = vmatprep.subr.mxu0 %v2148_v46 }
 0x328   : > { %2189 = vmatpush1.msra.mxu0 %v2147_v27  ;;  %v1868_v22 = vsel %vm9350_vm13, %v8085_v34, %v1856_v62  ;;  %v1869_v28 = vsel %vm9345_vm2, %v1856_v62, %v8141_v47  ;;  %v2021_v15 = vsel %vm1180_vm6, %v8092_v30, %v2010_v25  ;;  %vm9356_vm13 = vmmov %vm9351_vm4 }
 0x329   : > { %5450 = vmatmul.mubr.msk.f32.vlgmr.msra.gmra.mrb[4].mxu0 %vm2165_vm12, %v8151_v11  ;;  %v1885_v8 = vmul.f32 %v7608_v59, %v1868_v22  ;;  %v1886_v9 = vmul.f32 %v7611_v60, %v1869_v28  ;;  %v2037_v31 = vmul.f32 %v7602_v53, %v2021_v15  ;;  %vm9357_vm2 = vmmov %vm9353_vm0 }
 0x32a   : > { %2242 = vmatprep.mubr.f32.mxu0 %v6989_v0 }
 0x32b   : > { %v2050_v29 = vpop.permute.xlu1 %2049  ;;  %v8162_v45 = vpop.permute.xlu0 %6610 }
 0x32c   : > { %v6613_v33 = vunpack.i.h.bf16 %v8162_v45  ;;  %v6612_v37 = vunpack.i.l.bf16 %v8162_v45  ;;  %v2061_v62 = vsel %vm1221_vm14, %v8090_v2, %v2050_v29 }
 0x32d   : > { %5451 = vmatmul.mubr.msk.f32.gmra.mrb[6].mxu0 %vm2165_vm12, %v8160_v32  ;;  %v2077_v2 = vmul.f32 %v7608_v59, %v2061_v62 }
 0x32e   : > { %v1908_v34 = vsel %vm9351_vm4, %v6603_v12, %v6612_v37  ;;  %v1909_v18 = vsel %vm9352_vm7, %v6612_v37, %v6613_v33  ;;  %2313 = vmatprep.mubr.f32.mxu0 %v6989_v0  ;;  %v1940_v12 = vsel %vm1098_vm3, %v8109_v48, %v1928_v5  ;;  %vm9358_vm4 = vmmov %vm9353_vm0 }
 0x32f   : > { %v8177_v52 = vpop.permute.xlu1 %6615  ;;  %v8179_v14 = vpop.permute.xlu0 %1929  ;;  %v5869_v51 = vpack.c.bf16 %v1909_v18, %v1886_v9  ;;  %v5871_v50 = vpack.c.bf16 %v1908_v34, %v1885_v8  ;;  %v1957_v13 = vmul.f32 %v7602_v53, %v1940_v12  ;;  %v5879_v8 = vpack.c.bf16 %v2037_v31, %v7954_v4 }
 0x330   : > { %v1941_v24 = vsel %vm1098_vm3, %v1928_v5, %v8179_v14  ;;  %v6618_v27 = vunpack.i.h.bf16 %v8177_v52 }
 0x331   : > { %5870 = vmatprep.subr.bf16.mxu0 %v5869_v51  ;;  %v1958_v54 = vmul.f32 %v7605_v56, %v1941_v24  ;;  %v5875_v39 = vpack.c.bf16 %v1997_v36, %v1957_v13 }
 0x332   : > { %5872 = vmatpush1.bf16.msra.mxu0 %v5871_v50 }
 0x333   : > { %v8187_v40 = vpop.permute.xlu1 %2123  ;;  %v8189_v3 = vpop.permute.xlu0 %1969 }
 0x334   : > { %v1981_v58 = vsel %vm1139_vm1, %v1968_v63, %v8189_v3  ;;  %v6617_v63 = vunpack.i.l.bf16 %v8177_v52  ;;  %v2497_v52 = vld [vmem:[#allocation10 + $0x8] sm:$0xff] }
 0x335   : > { %v1998_v38 = vmul.f32 %v7611_v60, %v1981_v58 }
 0x336   : > { %v2101_v9 = vsel %vm1262_vm15, %v6608_v57, %v6617_v63  ;;  %v2102_v18 = vsel %vm1262_vm15, %v6617_v63, %v6618_v27 }
 0x337   : > { %v1932_v6 = vpop.permute.xlu1 %1931  ;;  %v8199_v48 = vpop.permute.xlu0 %2011  ;;  %v5873_v5 = vpack.c.bf16 %v1998_v38, %v1958_v54  ;;  %v5883_v50 = vpack.c.bf16 %v2101_v9, %v2077_v2 }
 0x338   : > { %v2022_v46 = vsel %vm1180_vm6, %v2010_v25, %v8199_v48  ;;  %v1942_v31 = vsel %vm1098_vm3, %v8179_v14, %v1932_v6 }
 0x339   : > { %v2038_v30 = vmul.f32 %v7605_v56, %v2022_v46  ;;  %5874 = vmatprep.subr.bf16.mxu0 %v5873_v5 }
 0x33a   : > { %5876 = vmatpush1.bf16.msra.mxu0 %v5875_v39 }
 0x33b   : > { %v8209_v22 = vpop.permute.xlu1 %1861  ;;  %v8211_v28 = vpop.permute.xlu0 %2051  ;;  %v5877_v37 = vpack.c.bf16 %v2038_v30, %v7983_v1 }
 0x33c   : > { %v2062_v25 = vsel %vm1221_vm14, %v2050_v29, %v8211_v28 }
 0x33d   : > { %v2078_v34 = vmul.f32 %v7611_v60, %v2062_v25  ;;  %5878 = vmatprep.subr.bf16.mxu0 %v5877_v37  ;;  %v1959_v25 = vmul.f32 %v7757_v55, %v1942_v31 }
 0x33e   : > { %5880 = vmatpush1.bf16.msra.mxu0 %v5879_v8 }
 0x33f   : > { %v1972_v1 = vpop.permute.xlu1 %1971  ;;  %v2122_v51 = vpop.permute.xlu0 %2121  ;;  %v5881_v4 = vpack.c.bf16 %v2102_v18, %v2078_v34 }
 0x340   : > { %v2134_v29 = vsel %vm1288_vm11, %v2122_v51, %v8187_v40  ;;  %v2133_v26 = vsel %vm1288_vm11, %v8145_v43, %v2122_v51  ;;  %v1982_v45 = vsel %vm1139_vm1, %v8189_v3, %v1972_v1 }
 0x341   : > { %5882 = vmatprep.subr.bf16.mxu0 %v5881_v4  ;;  %v2150_v60 = vmul.f32 %v7605_v56, %v2134_v29  ;;  %v2149_v7 = vmul.f32 %v7602_v53, %v2133_v26  ;;  %v1999_v30 = vmul.f32 %v7747_v16, %v1982_v45 }
 0x342   : > { %5884 = vmatpush1.bf16.msra.mxu0 %v5883_v50 }
 0x343   : > { %v2014_v59 = vpop.permute.xlu1 %2013  ;;  %v1860_v57 = vpop.permute.xlu0 %1859  ;;  %2265 = vmatprep.subr.mxu0 %v2150_v60 }
 0x344   : > { %v1870_v24 = vsel %vm9353_vm0, %v8141_v47, %v1860_v57  ;;  %v1871_v12 = vsel %vm9354_vm5, %v1860_v57, %v8209_v22  ;;  %v2023_v3 = vsel %vm1180_vm6, %v8199_v48, %v2014_v59  ;;  %vm9359_vm0 = vmmov %vm9352_vm7  ;;  %vm3159_vm5 = vcmask 121856  }
 0x345   : > { %v1887_v53 = vmul.f32 %v7747_v16, %v1870_v24  ;;  %v1888_v47 = vmul.f32 %v7739_v10, %v1871_v12  ;;  %v2039_v34 = vmul.f32 %v7757_v55, %v2023_v3  ;;  %v2505_v3 = vld [vmem:[#allocation10 + $0x48] sm:$0xff] }
 0x346   : > { %2266 = vmatpush1.msra.mxu0 %v2149_v7 }
 0x347   : > { %v2054_v36 = vpop.permute.xlu1 %2053  ;;  %v8235_v58 = vpop.permute.xlu0 %6620  ;;  %5452 = vmatmul.mubr.msk.f32.vlgmr.msra.gmra.mrb[8].mxu0 %vm2165_vm12, %v8151_v11  ;;  %v5895_v26 = vpack.c.bf16 %v2039_v34, %v7998_v41 }
 0x348   : > { %v6623_v56 = vunpack.i.h.bf16 %v8235_v58  ;;  %v6622_v43 = vunpack.i.l.bf16 %v8235_v58  ;;  %2319 = vmatprep.mubr.f32.mxu0 %v6989_v0  ;;  %v2063_v4 = vsel %vm1221_vm14, %v8211_v28, %v2054_v36 }
 0x349   : > { %v2079_v7 = vmul.f32 %v7747_v16, %v2063_v4 }
 0x34a   : > { %v1910_v15 = vsel %vm9355_vm9, %v6613_v33, %v6622_v43  ;;  %v1911_v54 = vsel %vm9356_vm13, %v6622_v43, %v6623_v56  ;;  %v2499_v43 = vld [vmem:[#allocation10 + $0x18] sm:$0xff] }
 0x34b   : > { %v8250_v38 = vpop.permute.xlu1 %6625  ;;  %v8252_v13 = vpop.permute.xlu0 %1933  ;;  %v5885_v5 = vpack.c.bf16 %v1911_v54, %v1888_v47  ;;  %v5887_v39 = vpack.c.bf16 %v1910_v15, %v1887_v53  ;;  %5453 = vmatmul.mubr.msk.f32.gmra.mrb[10].mxu0 %vm2165_vm12, %v8160_v32  ;;  %v2498_v53 = vld [vmem:[#allocation10 + $0x10] sm:$0xff]  ;;  %v2501_v47 = vld [vmem:[#allocation10 + $0x28] sm:$0xff]  ;;  %v2503_v15 = vld [vmem:[#allocation10 + $0x38] sm:$0xff] }
 0x34c   : > { %2390 = vmatprep.mubr.f32.mxu0 %v6989_v0  ;;  %v1943_v33 = vsel %vm1098_vm3, %v1932_v6, %v8252_v13  ;;  %v5891_v6 = vpack.c.bf16 %v1999_v30, %v1959_v25  ;;  %v6627_v18 = vunpack.i.l.bf16 %v8250_v38  ;;  %v6628_v51 = vunpack.i.h.bf16 %v8250_v38  ;;  %v2500_v30 = vld [vmem:[#allocation10 + $0x20] sm:$0xff] }
 0x34d   : > { %5886 = vmatprep.subr.bf16.mxu0 %v5885_v5  ;;  %v1960_v37 = vmul.f32 %v7730_v49, %v1943_v33  ;;  %v5918_v5 = vpack.c.bf16 %v2499_v43, %v2497_v52  ;;  %v5922_v31 = vpack.c.bf16 %v2503_v15, %v2501_v47  ;;  %v2512_v47 = vld [vmem:[#allocation10 + $0x80] sm:$0xff]  ;;  %v2514_v15 = vld [vmem:[#allocation10 + $0x90] sm:$0xff] }
 0x34e   : > { %5888 = vmatpush1.bf16.msra.mxu0 %v5887_v39  ;;  %v2104_v28 = vsel %vm1262_vm15, %v6627_v18, %v6628_v51 }
 0x34f   : > { %v8263_v46 = vpop.permute.xlu1 %2127  ;;  %v8265_v63 = vpop.permute.xlu0 %1973 }
 0x350   : > { %v1983_v62 = vsel %vm1139_vm1, %v1972_v1, %v8265_v63 }
 0x351   : > { %v2000_v8 = vmul.f32 %v7739_v10, %v1983_v62  ;;  %v2502_v62 = vld [vmem:[#allocation10 + $0x30] sm:$0xff] }
 0x353   : > { %v8275_v9 = vpop.permute.xlu0 %2015  ;;  %v5889_v14 = vpack.c.bf16 %v2000_v8, %v1960_v37  ;;  %v8281_v1 = vpop.permute.xlu1 %1935  ;;  %v2507_v37 = vld [vmem:[#allocation10 + $0x58] sm:$0xff] }
 0x354   : > { %v2024_v2 = vsel %vm1180_vm6, %v2014_v59, %v8275_v9  ;;  %v2103_v59 = vsel %vm1262_vm15, %v6618_v27, %v6627_v18  ;;  %v2496_v27 = vld [vmem:[#allocation10] sm:$0xff]  ;;  %v5926_v34 = vpack.c.bf16 %v2507_v37, %v2505_v3  ;;  %v2506_v18 = vld [vmem:[#allocation10 + $0x50] sm:$0xff]  ;;  %v1944_v43 = vsel %vm1098_vm3, %v8252_v13, %v8281_v1  ;;  %v2517_v13 = vld [vmem:[#allocation10 + $0xa8] sm:$0xff] }
 0x355   : > { %v2040_v48 = vmul.f32 %v7730_v49, %v2024_v2  ;;  %5890 = vmatprep.subr.bf16.mxu0 %v5889_v14  ;;  %v5920_v45 = vpack.c.bf16 %v2498_v53, %v2496_v27  ;;  %v5924_v14 = vpack.c.bf16 %v2502_v62, %v2500_v30  ;;  %v2504_v2 = vld [vmem:[#allocation10 + $0x40] sm:$0xff]  ;;  %v5936_v62 = vpack.c.bf16 %v2514_v15, %v2512_v47 }
 0x356   : > { %5892 = vmatpush1.bf16.msra.mxu0 %v5891_v6  ;;  %v2536_v15 = vld [vmem:[#allocation10 + $0x140] sm:$0xff] }
 0x357   : > { %v8287_v29 = vpop.permute.xlu0 %2055  ;;  %v5893_v50 = vpack.c.bf16 %v2040_v48, %v8019_v21  ;;  %v1866_v21 = vpop.permute.xlu1 %1865 }
 0x358   : > { %v2064_v60 = vsel %vm1221_vm14, %v2054_v36, %v8287_v29  ;;  %v5899_v36 = vpack.c.bf16 %v2103_v59, %v2079_v7 }
 0x359   : > { %v2080_v57 = vmul.f32 %v7739_v10, %v2064_v60  ;;  %5894 = vmatprep.subr.bf16.mxu0 %v5893_v50  ;;  %v2509_v50 = vld [vmem:[#allocation10 + $0x68] sm:$0xff] }
 0x35a   : > { %5896 = vmatpush1.bf16.msra.mxu0 %v5895_v26  ;;  %v2511_v26 = vld [vmem:[#allocation10 + $0x78] sm:$0xff] }
 0x35b   : > { %v2126_v24 = vpop.permute.xlu0 %2125  ;;  %v5897_v41 = vpack.c.bf16 %v2104_v28, %v2080_v57  ;;  %v1976_v33 = vpop.permute.xlu1 %1975  ;;  %v5928_v28 = vpack.c.bf16 %v2506_v18, %v2504_v2  ;;  %v5930_v58 = vpack.c.bf16 %v2511_v26, %v2509_v50  ;;  %v2522_v50 = vld [vmem:[#allocation10 + $0xd0] sm:$0xff] }
 0x35c   : > { %v2136_v12 = vsel %vm1288_vm11, %v2126_v24, %v8263_v46  ;;  %v2135_v10 = vsel %vm1288_vm11, %v8187_v40, %v2126_v24  ;;  %v1984_v24 = vsel %vm1139_vm1, %v8265_v63, %v1976_v33 }
 0x35d   : > { %5898 = vmatprep.subr.bf16.mxu0 %v5897_v41  ;;  %v2152_v16 = vmul.f32 %v7730_v49, %v2136_v12  ;;  %v2151_v39 = vmul.f32 %v7757_v55, %v2135_v10  ;;  %v2513_v41 = vld [vmem:[#allocation10 + $0x88] sm:$0xff]  ;;  %v2515_v12 = vld [vmem:[#allocation10 + $0x98] sm:$0xff] }
 0x35e   : > { %5900 = vmatpush1.bf16.msra.mxu0 %v5899_v36  ;;  %v5934_v53 = vpack.c.bf16 %v2515_v12, %v2513_v41  ;;  %v2531_v41 = vld [vmem:[#allocation10 + $0x118] sm:$0xff] }
 0x35f   : > { %v1864_v54 = vpop.permute.xlu0 %1863  ;;  %2342 = vmatprep.subr.mxu0 %v2152_v16  ;;  %v2018_v60 = vpop.permute.xlu1 %2017  ;;  %v2001_v16 = vmul.f32 %v7869_v44, %v1984_v24  ;;  %v2524_v24 = vld [vmem:[#allocation10 + $0xe0] sm:$0xff] }
 0x360   : > { %v1872_v40 = vsel %vm9357_vm2, %v8209_v22, %v1864_v54  ;;  %v1873_v49 = vsel %vm9358_vm4, %v1864_v54, %v1866_v21  ;;  %v2508_v21 = vld [vmem:[#allocation10 + $0x60] sm:$0xff]  ;;  %v2034_v36 = vsel %vm1180_vm6, %v2018_v60, 0.0  ;;  %v2025_v54 = vsel %vm1180_vm6, %v8275_v9, %v2018_v60  ;;  %v2525_v60 = vld [vmem:[#allocation10 + $0xe8] sm:$0xff] }
 0x361   : > { %v1889_v6 = vmul.f32 %v7869_v44, %v1872_v40  ;;  %v1890_v22 = vmul.f32 %v7872_v19, %v1873_v49  ;;  %v2041_v49 = vmul.f32 %v7853_v23, %v2025_v54  ;;  %v2538_v54 = vld [vmem:[#allocation10 + $0x150] sm:$0xff] }
 0x362   : > { %2343 = vmatpush1.msra.mxu0 %v2151_v39 }
 0x363   : > { %v6631_v8 = vpop.permute.xlu0 %6630  ;;  %5454 = vmatmul.mubr.msk.f32.vlgmr.msra.gmra.mrb[12].mxu0 %vm2165_vm12, %v8151_v11  ;;  %5919 = vmatprep.subr.bf16.mxu0 %v5918_v5  ;;  %v2042_v5 = vmul.f32 %v7858_v42, %v2034_v36  ;;  %v5911_v2 = vpack.c.bf16 %v2041_v49, %v8034_v35  ;;  %v2098_v18 = vpop.permute.xlu1 %2097  ;;  %v2528_v36 = vld [vmem:[#allocation10 + $0x100] sm:$0xff]  ;;  %v2549_v49 = vld [vmem:[#allocation10 + $0x1a8] sm:$0xff] }
 0x364   : > { %v6633_v25 = vunpack.i.h.bf16 %v6631_v8  ;;  %v6632_v55 = vunpack.i.l.bf16 %v6631_v8  ;;  %2396 = vmatprep.mubr.f32.mxu0 %v6989_v0  ;;  %5921 = vmatpush1.bf16.msra.mxu0 %v5920_v45  ;;  %v2105_v35 = vsel %vm1262_vm15, %v6628_v51, %v2098_v18 }
 0x365   : > { %5923 = vmatprep.subr.bf16.mxu0 %v5922_v31  ;;  %v1961_v31 = vmul.f32 %v7853_v23, %v1944_v43  ;;  %v2535_v43 = vld [vmem:[#allocation10 + $0x138] sm:$0xff] }
 0x366   : > { %v1912_v48 = vsel %vm9352_vm7, %v6623_v56, %v6632_v55  ;;  %v1913_v4 = vsel %vm9359_vm0, %v6632_v55, %v6633_v25  ;;  %v2510_v56 = vld [vmem:[#allocation10 + $0x70] sm:$0xff]  ;;  %v5909_v25 = vpack.c.bf16 %v2042_v5, %v8055_v61  ;;  %v2516_v55 = vld [vmem:[#allocation10 + $0xa0] sm:$0xff]  ;;  %v2543_v5 = vld [vmem:[#allocation10 + $0x178] sm:$0xff]  ;;  %vm3220_vm7 = vcmask 924672  }
 0x367   : > { %v1938_v59 = vpop.permute.xlu0 %1937  ;;  %5455 = vmatmul.mubr.msk.f32.gmra.mrb[14].mxu0 %vm2165_vm12, %v8160_v32  ;;  %v5901_v57 = vpack.c.bf16 %v1913_v4, %v1890_v22  ;;  %v5903_v7 = vpack.c.bf16 %v1912_v48, %v1889_v6  ;;  %v5932_v27 = vpack.c.bf16 %v2510_v56, %v2508_v21  ;;  %v5907_v40 = vpack.c.bf16 %v2001_v16, %v1961_v31  ;;  %v2521_v6 = vld [vmem:[#allocation10 + $0xc8] sm:$0xff]  ;;  %v2523_v22 = vld [vmem:[#allocation10 + $0xd8] sm:$0xff]  ;;  %v2520_v4 = vld [vmem:[#allocation10 + $0xc0] sm:$0xff] }
 0x368   : > { %5925 = vmatpush1.bf16.msra.mxu0 %v5924_v14  ;;  %v1945_v52 = vsel %vm1098_vm3, %v8281_v1, %v1938_v59  ;;  %v2519_v1 = vld [vmem:[#allocation10 + $0xb8] sm:$0xff]  ;;  %v2518_v14 = vld [vmem:[#allocation10 + $0xb0] sm:$0xff]  ;;  %vm5914_vm3 = vmpackc.low %vm1262_vm15, %vm9349_vm8  ;;  %v5942_v61 = vpack.c.bf16 %v2523_v22, %v2521_v6  ;;  %vm3241_vm0 = vcmask 916480  }
 0x369   : > { %5902 = vmatprep.subr.bf16.mxu1 %v5901_v57  ;;  %5927 = vmatprep.subr.bf16.mxu0 %v5926_v34  ;;  %v1962_v39 = vmul.f32 %v7858_v42, %v1945_v52  ;;  %v5938_v9 = vpack.c.bf16 %v2519_v1, %v2517_v13  ;;  %v2527_v59 = vld [vmem:[#allocation10 + $0xf8] sm:$0xff]  ;;  %v5944_v57 = vpack.c.bf16 %v2522_v50, %v2520_v4  ;;  %v2529_v56 = vld [vmem:[#allocation10 + $0x108] sm:$0xff]  ;;  %v2530_v52 = vld [vmem:[#allocation10 + $0x110] sm:$0xff] }
 0x36a   : > { %5904 = vmatpush1.bf16.msra.mxu1 %v5903_v7  ;;  %v5946_v21 = vpack.c.bf16 %v2527_v59, %v2525_v60  ;;  %v5950_v12 = vpack.c.bf16 %v2531_v41, %v2529_v56  ;;  %v2532_v16 = vld [vmem:[#allocation10 + $0x120] sm:$0xff]  ;;  %v2542_v1 = vld [vmem:[#allocation10 + $0x170] sm:$0xff]  ;;  %v2545_v31 = vld [vmem:[#allocation10 + $0x188] sm:$0xff] }
 0x36b   : > { %v1978_v10 = vpop.permute.xlu0 %1977  ;;  %v2540_v13 = vld [vmem:[#allocation10 + $0x160] sm:$0xff]  ;;  %v2558_v4 = vld [vmem:[#allocation10 + $0x1f0] sm:$0xff]  ;;  %v2561_v50 = vld [vmem:[#allocation10 + $0x208] sm:$0xff] }
 0x36c   : > { %v1985_v63 = vsel %vm1139_vm1, %v1976_v33, %v1978_v10  ;;  %5929 = vmatpush1.bf16.msra.mxu0 %v5928_v28  ;;  %v2567_v56 = vld [vmem:[#allocation10 + $0x238] sm:$0xff] }
 0x36d   : > { %v2002_v45 = vmul.f32 %v7872_v19, %v1985_v63  ;;  %5931 = vmatprep.subr.bf16.mxu0 %v5930_v58  ;;  %v2526_v58 = vld [vmem:[#allocation10 + $0xf0] sm:$0xff]  ;;  %v2537_v63 = vld [vmem:[#allocation10 + $0x148] sm:$0xff] }
 0x36e   : > { %v5948_v51 = vpack.c.bf16 %v2526_v58, %v2524_v24  ;;  %v2565_v58 = vld [vmem:[#allocation10 + $0x228] sm:$0xff] }
 0x36f   : > { %v2058_v33 = vpop.permute.xlu0 %2057  ;;  %v5905_v30 = vpack.c.bf16 %v2002_v45, %v1962_v39  ;;  %v5960_v39 = vpack.c.bf16 %v2538_v54, %v2536_v15  ;;  %v2568_v54 = vld [vmem:[#allocation10 + $0x240] sm:$0xff] }
 0x370   : > { %v2074_v3 = vsel %vm1221_vm14, %v2058_v33, 0.0  ;;  %5933 = vmatpush1.bf16.msra.mxu0 %v5932_v27  ;;  %v2065_v37 = vsel %vm1221_vm14, %v8287_v29, %v2058_v33  ;;  %v2539_v27 = vld [vmem:[#allocation10 + $0x158] sm:$0xff] }
 0x371   : > { %v2082_v8 = vmul.f32 %v7872_v19, %v2074_v3  ;;  %5906 = vmatprep.subr.bf16.mxu1 %v5905_v30  ;;  %5935 = vmatprep.subr.bf16.mxu0 %v5934_v53  ;;  %v2081_v48 = vmul.f32 %v7869_v44, %v2065_v37  ;;  %v5940_v19 = vpack.c.bf16 %v2518_v14, %v2516_v55  ;;  %v2547_v33 = vld [vmem:[#allocation10 + $0x198] sm:$0xff]  ;;  %v2553_v55 = vld [vmem:[#allocation10 + $0x1c8] sm:$0xff] }
 0x372   : > { %5908 = vmatpush1.bf16.msra.mxu1 %v5907_v40  ;;  %v5958_v47 = vpack.c.bf16 %v2539_v27, %v2537_v63  ;;  %v5964_v30 = vpack.c.bf16 %v2542_v1, %v2540_v13  ;;  %v2546_v40 = vld [vmem:[#allocation10 + $0x190] sm:$0xff]  ;;  %v2551_v3 = vld [vmem:[#allocation10 + $0x1b8] sm:$0xff]  ;;  %v2572_v1 = vld [vmem:[#allocation10 + $0x260] sm:$0xff] }
 0x373   : > { %v2130_v34 = vpop.permute.xlu0 %2129  ;;  %5910 = vmatprep.subr.bf16.mxu1 %v5909_v25  ;;  %v5913_v29 = vpack.c.bf16 %v2098_v18, %v2082_v8  ;;  %v5916_v44 = vpack.c.bf16 %v2105_v35, %v2081_v48  ;;  %v5970_v37 = vpack.c.bf16 %v2551_v3, %v2549_v49  ;;  %v2548_v8 = vld [vmem:[#allocation10 + $0x1a0] sm:$0xff]  ;;  %v2550_v25 = vld [vmem:[#allocation10 + $0x1b0] sm:$0xff]  ;;  %v2555_v14 = vld [vmem:[#allocation10 + $0x1d8] sm:$0xff] }
 0x374   : > { %5937 = vmatpush1.bf16.msra.mxu0 %v5936_v62  ;;  %v2146_v26 = vsel %vm1288_vm11, %v2130_v34, 0.0  ;;  %v2137_v7 = vsel %vm1288_vm11, %v8263_v46, %v2130_v34  ;;  %v2533_v46 = vld [vmem:[#allocation10 + $0x128] sm:$0xff]  ;;  %v2544_v62 = vld [vmem:[#allocation10 + $0x180] sm:$0xff]  ;;  %v5972_v6 = vpack.c.bf16 %v2550_v25, %v2548_v8  ;;  %v5974_v22 = vpack.c.bf16 %v2555_v14, %v2553_v55  ;;  %v2559_v48 = vld [vmem:[#allocation10 + $0x1f8] sm:$0xff]  ;;  %v8360_v35 = vpop.permute.xlu1 %2157 }
 0x375   : > { %5939 = vmatprep.subr.bf16.mxu0 %v5938_v9  ;;  %v2154_v28 = vmul.f32 %v7858_v42, %v2146_v26  ;;  %v2153_v38 = vmul.f32 %v7853_v23, %v2137_v7  ;;  %v5952_v42 = vpack.c.bf16 %v2530_v52, %v2528_v36  ;;  %v5954_v10 = vpack.c.bf16 %v2535_v43, %v2533_v46  ;;  %v2534_v23 = vld [vmem:[#allocation10 + $0x130] sm:$0xff]  ;;  %v2552_v34 = vld [vmem:[#allocation10 + $0x1c0] sm:$0xff]  ;;  %v2557_v18 = vld [vmem:[#allocation10 + $0x1e8] sm:$0xff] }
 0x376   : > { %5912 = vmatpush1.bf16.msra.mxu1 %v5911_v2  ;;  %v5956_v53 = vpack.c.bf16 %v2534_v23, %v2532_v16  ;;  %v5968_v9 = vpack.c.bf16 %v2546_v40, %v2544_v62  ;;  %v2554_v2 = vld [vmem:[#allocation10 + $0x1d0] sm:$0xff]  ;;  %v2563_v26 = vld [vmem:[#allocation10 + $0x218] sm:$0xff]  ;;  %v5986_v52 = vpack.c.bf16 %v2567_v56, %v2565_v58  ;;  %v2564_v46 = vld [vmem:[#allocation10 + $0x220] sm:$0xff]  ;;  %vm3142_vm11 = vcmask 130048  }
 0x377   : > { %5915 = vmatprep.subr.msk.bf16.mxu1 %vm5914_vm3, %v5913_v29  ;;  %v5978_v29 = vpack.c.bf16 %v2559_v48, %v2557_v18  ;;  %v5982_v59 = vpack.c.bf16 %v2563_v26, %v2561_v50  ;;  %v2566_v43 = vld [vmem:[#allocation10 + $0x230] sm:$0xff]  ;;  %v2569_v16 = vld [vmem:[#allocation10 + $0x248] sm:$0xff]  ;;  %v2571_v23 = vld [vmem:[#allocation10 + $0x258] sm:$0xff] }
 0x378   : > { %5941 = vmatpush1.bf16.msra.mxu0 %v5940_v19  ;;  %v5976_v19 = vpack.c.bf16 %v2554_v2, %v2552_v34  ;;  %v5990_v15 = vpack.c.bf16 %v2571_v23, %v2569_v16  ;;  %v2576_v40 = vld [vmem:[#allocation10 + $0x280] sm:$0xff]  ;;  %v2578_v49 = vld [vmem:[#allocation10 + $0x290] sm:$0xff]  ;;  %v2581_v3 = vld [vmem:[#allocation10 + $0x2a8] sm:$0xff] }
 0x379   : > { %5943 = vmatprep.subr.bf16.mxu0 %v5942_v61  ;;  %v2556_v61 = vld [vmem:[#allocation10 + $0x1e0] sm:$0xff]  ;;  %v2582_v55 = vld [vmem:[#allocation10 + $0x2b0] sm:$0xff]  ;;  %v2585_v14 = vld [vmem:[#allocation10 + $0x2c8] sm:$0xff] }
 0x37a   : > { %5917 = vmatpush1.bf16.msra.mxu1 %v5916_v44  ;;  %v5980_v60 = vpack.c.bf16 %v2558_v4, %v2556_v61  ;;  %v2580_v25 = vld [vmem:[#allocation10 + $0x2a0] sm:$0xff]  ;;  %v2586_v18 = vld [vmem:[#allocation10 + $0x2d0] sm:$0xff]  ;;  %v2589_v48 = vld [vmem:[#allocation10 + $0x2e8] sm:$0xff] }
 0x37b   : > { %2419 = vmatprep.subr.mxu1 %v2154_v28  ;;  %v2560_v28 = vld [vmem:[#allocation10 + $0x200] sm:$0xff]  ;;  %v2590_v50 = vld [vmem:[#allocation10 + $0x2f0] sm:$0xff]  ;;  %v2597_v56 = vld [vmem:[#allocation10 + $0x328] sm:$0xff] }
 0x37c   : > { %5945 = vmatpush1.bf16.msra.mxu0 %v5944_v57  ;;  %v2584_v2 = vld [vmem:[#allocation10 + $0x2c0] sm:$0xff]  ;;  %vm8493_vm2 = vmneg %vm3142_vm11 }
 0x37d   : > { %5947 = vmatprep.subr.bf16.mxu0 %v5946_v21  ;;  %v2562_v21 = vld [vmem:[#allocation10 + $0x210] sm:$0xff]  ;;  %v2588_v4 = vld [vmem:[#allocation10 + $0x2e0] sm:$0xff]  ;;  %vm6181_vm4 = vmpackc.low %vm8493_vm2, %vm8493_vm2 }
 0x37e   : > { %2420 = vmatpush1.msra.mxu1 %v2153_v38  ;;  %vm6204_vm3 = vmpackc.low %vm3241_vm0, %vm3241_vm0 }
 0x37f   : > { %5457 = vmatmul.mubr.msk.f32.vlgmr.msra.gmra.mrb[4].mxu1 %vm2165_vm12, %v8151_v11  ;;  %v2541_v11 = vld [vmem:[#allocation10 + $0x168] sm:$0xff] }
 0x380   : > { %2473 = vmatprep.mubr.f32.mxu1 %v6989_v0  ;;  %5949 = vmatpush1.bf16.msra.mxu0 %v5948_v51  ;;  %v5962_v45 = vpack.c.bf16 %v2543_v5, %v2541_v11  ;;  %v5984_v51 = vpack.c.bf16 %v2562_v21, %v2560_v28  ;;  %v2570_v11 = vld [vmem:[#allocation10 + $0x250] sm:$0xff]  ;;  %v2573_v5 = vld [vmem:[#allocation10 + $0x268] sm:$0xff]  ;;  %v2592_v21 = vld [vmem:[#allocation10 + $0x300] sm:$0xff] }
 0x381   : > { %5951 = vmatprep.subr.bf16.mxu0 %v5950_v12 }
 0x383   : > { %5458 = vmatmul.mubr.msk.f32.gmra.mrb[6].mxu1 %vm2165_vm12, %v8160_v32  ;;  %v5966_v32 = vpack.c.bf16 %v2547_v33, %v2545_v31  ;;  %v2574_v31 = vld [vmem:[#allocation10 + $0x270] sm:$0xff]  ;;  %v2577_v33 = vld [vmem:[#allocation10 + $0x288] sm:$0xff]  ;;  %vm3121_vm12 = vcmask 138240  }
 0x384   : > { %5953 = vmatpush1.bf16.msra.mxu0 %v5952_v42  ;;  %v8364_v41 = vpop.permute.xlu0 %2162 }
 0x385   : > { %5955 = vmatprep.subr.bf16.mxu0 %v5954_v10 }
 0x388   : > { %5957 = vmatpush1.bf16.msra.mxu0 %v5956_v53  ;;  %v5988_v53 = vpack.c.bf16 %v2566_v43, %v2564_v46  ;;  %v2596_v46 = vld [vmem:[#allocation10 + $0x320] sm:$0xff]  ;;  %v2598_v43 = vld [vmem:[#allocation10 + $0x330] sm:$0xff] }
 0x389   : > { %5959 = vmatprep.subr.bf16.mxu0 %v5958_v47  ;;  %v6020_v16 = vpack.c.bf16 %v2598_v43, %v2596_v46  ;;  %v2628_v46 = vld [vmem:[#allocation10 + $0x420] sm:$0xff]  ;;  %v2630_v43 = vld [vmem:[#allocation10 + $0x430] sm:$0xff] }
 0x38c   : > { %5961 = vmatpush1.bf16.msra.mxu0 %v5960_v39  ;;  %v2575_v39 = vld [vmem:[#allocation10 + $0x278] sm:$0xff] }
 0x38d   : > { %5963 = vmatprep.subr.bf16.mxu0 %v5962_v45  ;;  %v5992_v45 = vpack.c.bf16 %v2570_v11, %v2568_v54  ;;  %v5994_v13 = vpack.c.bf16 %v2575_v39, %v2573_v5  ;;  %v2604_v11 = vld [vmem:[#allocation10 + $0x360] sm:$0xff]  ;;  %v2606_v5 = vld [vmem:[#allocation10 + $0x370] sm:$0xff]  ;;  %v2609_v39 = vld [vmem:[#allocation10 + $0x388] sm:$0xff] }
 0x390   : > { %5965 = vmatpush1.bf16.msra.mxu0 %v5964_v30  ;;  %v2579_v30 = vld [vmem:[#allocation10 + $0x298] sm:$0xff] }
 0x391   : > { %5967 = vmatprep.subr.bf16.mxu0 %v5966_v32  ;;  %v5996_v32 = vpack.c.bf16 %v2574_v31, %v2572_v1  ;;  %v5998_v62 = vpack.c.bf16 %v2579_v30, %v2577_v33  ;;  %v2608_v31 = vld [vmem:[#allocation10 + $0x380] sm:$0xff]  ;;  %v2610_v33 = vld [vmem:[#allocation10 + $0x390] sm:$0xff]  ;;  %v2613_v30 = vld [vmem:[#allocation10 + $0x3a8] sm:$0xff] }
 0x394   : > { %5969 = vmatpush1.bf16.msra.mxu0 %v5968_v9  ;;  %v2583_v9 = vld [vmem:[#allocation10 + $0x2b8] sm:$0xff] }
 0x395   : > { %5971 = vmatprep.subr.bf16.mxu0 %v5970_v37  ;;  %v6000_v37 = vpack.c.bf16 %v2578_v49, %v2576_v40  ;;  %v6002_v8 = vpack.c.bf16 %v2583_v9, %v2581_v3  ;;  %v2612_v49 = vld [vmem:[#allocation10 + $0x3a0] sm:$0xff]  ;;  %v2614_v3 = vld [vmem:[#allocation10 + $0x3b0] sm:$0xff]  ;;  %v2617_v9 = vld [vmem:[#allocation10 + $0x3c8] sm:$0xff] }
 0x398   : > { %5973 = vmatpush1.bf16.msra.mxu0 %v5972_v6  ;;  %v2587_v6 = vld [vmem:[#allocation10 + $0x2d8] sm:$0xff] }
 0x399   : > { %5975 = vmatprep.subr.bf16.mxu0 %v5974_v22  ;;  %v6004_v22 = vpack.c.bf16 %v2582_v55, %v2580_v25  ;;  %v6006_v34 = vpack.c.bf16 %v2587_v6, %v2585_v14  ;;  %v2616_v55 = vld [vmem:[#allocation10 + $0x3c0] sm:$0xff]  ;;  %v2618_v14 = vld [vmem:[#allocation10 + $0x3d0] sm:$0xff] }
 0x39c   : > { %5977 = vmatpush1.bf16.msra.mxu0 %v5976_v19  ;;  %v2591_v19 = vld [vmem:[#allocation10 + $0x2f8] sm:$0xff] }
 0x39d   : > { %5979 = vmatprep.subr.bf16.mxu0 %v5978_v29  ;;  %v6008_v29 = vpack.c.bf16 %v2586_v18, %v2584_v2  ;;  %v6010_v61 = vpack.c.bf16 %v2591_v19, %v2589_v48  ;;  %v6040_v18 = vpack.c.bf16 %v2618_v14, %v2616_v55  ;;  %v2620_v19 = vld [vmem:[#allocation10 + $0x3e0] sm:$0xff] }
 0x3a0   : > { %5981 = vmatpush1.bf16.msra.mxu0 %v5980_v60  ;;  %v2593_v60 = vld [vmem:[#allocation10 + $0x308] sm:$0xff] }
 0x3a1   : > { %5983 = vmatprep.subr.bf16.mxu0 %v5982_v59  ;;  %v2595_v59 = vld [vmem:[#allocation10 + $0x318] sm:$0xff] }
 0x3a2   : > { %v6014_v28 = vpack.c.bf16 %v2595_v59, %v2593_v60 }
 0x3fc   : > { %v2238_v44 = vpop.f32.mrb[4].mxu0 }
 0x3fd   : > { %v2239_v57 = vadd.f32 %v2238_v44, %v8360_v35  ;;  %v2240_v7 = vpop.f32.mrb[5].mxu0 }
 0x3fe   : > { %v2241_v24 = vadd.f32 %v2240_v7, %v8360_v35  ;;  %v6012_v7 = vpack.c.bf16 %v2590_v50, %v2588_v4  ;;  %v2625_v4 = vld [vmem:[#allocation10 + $0x408] sm:$0xff]  ;;  %v2627_v50 = vld [vmem:[#allocation10 + $0x418] sm:$0xff] }
 0x3ff   : > { %v2480_v36 = vmax.f32 %v2239_v57, 0.0 }
 0x400   : > { %v2481_v38 = vmax.f32 %v2241_v24, 0.0  ;;  %v2244_v12 = vpop.f32.mrb[6].mxu0  ;;  %v2594_v24 = vld [vmem:[#allocation10 + $0x310] sm:$0xff] }
 0x401   : > { %v2246_v42 = vpop.f32.mrb[7].mxu0  ;;  %v2245_v10 = vadd.f32 %v2244_v12, %v8364_v41 }
 0x402   : > { %2816 = vmatprep.mubr.f32.mxu0 %v2481_v38  ;;  %v2247_v63 = vadd.f32 %v2246_v42, %v8364_v41  ;;  %v2599_v38 = vld [vmem:[#allocation10 + $0x338] sm:$0xff]  ;;  %v2601_v42 = vld [vmem:[#allocation10 + $0x348] sm:$0xff] }
 0x403   : > { %2817 = vmatmul.mubr.f32.vlgmr.msra.gmra.mrb[16].mxu0 %v2480_v36  ;;  %v2488_v27 = vmax.f32 %v2245_v10, 0.0  ;;  %v6016_v36 = vpack.c.bf16 %v2594_v24, %v2592_v21  ;;  %v2603_v10 = vld [vmem:[#allocation10 + $0x358] sm:$0xff]  ;;  %v2629_v24 = vld [vmem:[#allocation10 + $0x428] sm:$0xff] }
 0x404   : > { %5985 = vmatpush1.bf16.msra.mxu0 %v5984_v51  ;;  %v2489_v47 = vmax.f32 %v2247_v63, 0.0  ;;  %v6022_v23 = vpack.c.bf16 %v2603_v10, %v2601_v42  ;;  %v2600_v63 = vld [vmem:[#allocation10 + $0x340] sm:$0xff]  ;;  %v2633_v10 = vld [vmem:[#allocation10 + $0x448] sm:$0xff] }
 0x405   : > { %5987 = vmatprep.subr.bf16.mxu0 %v5986_v52  ;;  %v6018_v52 = vpack.c.bf16 %v2599_v38, %v2597_v56 }
 0x406   : > { %2822 = vmatprep.mubr.f32.mxu0 %v2489_v47  ;;  %v2607_v47 = vld [vmem:[#allocation10 + $0x378] sm:$0xff] }
 0x407   : > { %2823 = vmatmul.mubr.f32.gmra.mrb[18].mxu0 %v2488_v27  ;;  %v2602_v27 = vld [vmem:[#allocation10 + $0x350] sm:$0xff] }
 0x408   : > { %5989 = vmatpush1.bf16.msra.mxu0 %v5988_v53  ;;  %v2605_v53 = vld [vmem:[#allocation10 + $0x368] sm:$0xff] }
 0x409   : > { %5991 = vmatprep.subr.bf16.mxu0 %v5990_v15  ;;  %v6024_v15 = vpack.c.bf16 %v2602_v27, %v2600_v63  ;;  %v6026_v54 = vpack.c.bf16 %v2607_v47, %v2605_v53  ;;  %v2632_v27 = vld [vmem:[#allocation10 + $0x440] sm:$0xff]  ;;  %v2634_v53 = vld [vmem:[#allocation10 + $0x450] sm:$0xff] }
 0x40c   : > { %5993 = vmatpush1.bf16.msra.mxu0 %v5992_v45  ;;  %v2611_v45 = vld [vmem:[#allocation10 + $0x398] sm:$0xff] }
 0x40d   : > { %5995 = vmatprep.subr.bf16.mxu0 %v5994_v13  ;;  %v6028_v13 = vpack.c.bf16 %v2606_v5, %v2604_v11  ;;  %v6030_v1 = vpack.c.bf16 %v2611_v45, %v2609_v39  ;;  %v2636_v5 = vld [vmem:[#allocation10 + $0x460] sm:$0xff]  ;;  %v2638_v39 = vld [vmem:[#allocation10 + $0x470] sm:$0xff]  ;;  %v2641_v45 = vld [vmem:[#allocation10 + $0x488] sm:$0xff] }
 0x410   : > { %5997 = vmatpush1.bf16.msra.mxu0 %v5996_v32  ;;  %v2615_v32 = vld [vmem:[#allocation10 + $0x3b8] sm:$0xff] }
 0x411   : > { %5999 = vmatprep.subr.bf16.mxu0 %v5998_v62  ;;  %v6032_v62 = vpack.c.bf16 %v2610_v33, %v2608_v31  ;;  %v6034_v40 = vpack.c.bf16 %v2615_v32, %v2613_v30  ;;  %v2640_v33 = vld [vmem:[#allocation10 + $0x480] sm:$0xff]  ;;  %v2642_v30 = vld [vmem:[#allocation10 + $0x490] sm:$0xff]  ;;  %v2645_v32 = vld [vmem:[#allocation10 + $0x4a8] sm:$0xff] }
 0x414   : > { %6001 = vmatpush1.bf16.msra.mxu0 %v6000_v37  ;;  %v2619_v37 = vld [vmem:[#allocation10 + $0x3d8] sm:$0xff] }
 0x415   : > { %6003 = vmatprep.subr.bf16.mxu0 %v6002_v8  ;;  %v6036_v8 = vpack.c.bf16 %v2614_v3, %v2612_v49  ;;  %v6038_v25 = vpack.c.bf16 %v2619_v37, %v2617_v9  ;;  %v2644_v3 = vld [vmem:[#allocation10 + $0x4a0] sm:$0xff]  ;;  %v2646_v9 = vld [vmem:[#allocation10 + $0x4b0] sm:$0xff] }
 0x416   : > { %v6068_v14 = vpack.c.bf16 %v2646_v9, %v2644_v3 }
 0x418   : > { %6005 = vmatpush1.bf16.msra.mxu0 %v6004_v22  ;;  %v2621_v22 = vld [vmem:[#allocation10 + $0x3e8] sm:$0xff] }
 0x419   : > { %6007 = vmatprep.subr.bf16.mxu0 %v6006_v34  ;;  %v2623_v34 = vld [vmem:[#allocation10 + $0x3f8] sm:$0xff] }
 0x41a   : > { %v8368_v26 = vpop.f32.mrb[8].mxu0  ;;  %v6042_v48 = vpack.c.bf16 %v2623_v34, %v2621_v22  ;;  %v2648_v34 = vld [vmem:[#allocation10 + $0x4c0] sm:$0xff] }
 0x41b   : > { %v2317_v44 = vpop.f32.mrb[9].mxu0 }
 0x41c   : > { %v2318_v57 = vadd.f32 %v2317_v44, %v8360_v35  ;;  %6009 = vmatpush1.bf16.msra.mxu0 %v6008_v29  ;;  %v2622_v29 = vld [vmem:[#allocation10 + $0x3f0] sm:$0xff]  ;;  %v2316_v44 = vadd.f32 %v8368_v26, %v8360_v35 }
 0x41d   : > { %6011 = vmatprep.subr.bf16.mxu0 %v6010_v61  ;;  %v6044_v59 = vpack.c.bf16 %v2622_v29, %v2620_v19  ;;  %v2655_v19 = vld [vmem:[#allocation10 + $0x4f8] sm:$0xff] }
 0x41e   : > { %v2483_v58 = vmax.f32 %v2318_v57, 0.0  ;;  %v8371_v51 = vpop.f32.mrb[10].mxu0  ;;  %v6046_v57 = vpack.c.bf16 %v2627_v50, %v2625_v4  ;;  %v2482_v38 = vmax.f32 %v2316_v44, 0.0  ;;  %v2654_v44 = vld [vmem:[#allocation10 + $0x4f0] sm:$0xff] }
 0x41f   : > { %v8373_v12 = vpop.f32.mrb[11].mxu0 }
 0x420   : > { %6013 = vmatpush1.bf16.msra.mxu0 %v6012_v7  ;;  %2893 = vmatprep.mubr.f32.mxu0 %v2483_v58  ;;  %v2624_v7 = vld [vmem:[#allocation10 + $0x400] sm:$0xff]  ;;  %v2324_v21 = vadd.f32 %v8373_v12, %v8364_v41  ;;  %v2631_v58 = vld [vmem:[#allocation10 + $0x438] sm:$0xff]  ;;  %v6052_v12 = vpack.c.bf16 %v2630_v43, %v2628_v46  ;;  %v2662_v43 = vld [vmem:[#allocation10 + $0x530] sm:$0xff] }
 0x421   : > { %6015 = vmatprep.subr.bf16.mxu0 %v6014_v28  ;;  %v2626_v28 = vld [vmem:[#allocation10 + $0x410] sm:$0xff]  ;;  %v2660_v46 = vld [vmem:[#allocation10 + $0x520] sm:$0xff] }
 0x422   : > { %v6048_v56 = vpack.c.bf16 %v2626_v28, %v2624_v7  ;;  %v2491_v26 = vmax.f32 %v2324_v21, 0.0  ;;  %v2659_v7 = vld [vmem:[#allocation10 + $0x518] sm:$0xff] }
 0x424   : > { %6017 = vmatpush1.bf16.msra.mxu0 %v6016_v36  ;;  %v2322_v36 = vadd.f32 %v8371_v51, %v8364_v41  ;;  %v2637_v51 = vld [vmem:[#allocation10 + $0x468] sm:$0xff] }
 0x425   : > { %6019 = vmatprep.subr.bf16.mxu0 %v6018_v52  ;;  %v6050_v52 = vpack.c.bf16 %v2631_v58, %v2629_v24  ;;  %v2656_v24 = vld [vmem:[#allocation10 + $0x500] sm:$0xff]  ;;  %v2658_v58 = vld [vmem:[#allocation10 + $0x510] sm:$0xff] }
 0x428   : > { %6021 = vmatpush1.bf16.msra.mxu0 %v6020_v16  ;;  %v2635_v16 = vld [vmem:[#allocation10 + $0x458] sm:$0xff] }
 0x429   : > { %6023 = vmatprep.subr.bf16.mxu0 %v6022_v23  ;;  %v2490_v23 = vmax.f32 %v2322_v36, 0.0  ;;  %v6054_v63 = vpack.c.bf16 %v2635_v16, %v2633_v10  ;;  %v6080_v36 = vpack.c.bf16 %v2658_v58, %v2656_v24  ;;  %v6084_v10 = vpack.c.bf16 %v2662_v43, %v2660_v46  ;;  %v2693_v24 = vld [vmem:[#allocation10 + $0x628] sm:$0xff]  ;;  %v2695_v58 = vld [vmem:[#allocation10 + $0x638] sm:$0xff]  ;;  %v2692_v46 = vld [vmem:[#allocation10 + $0x620] sm:$0xff] }
 0x42a   : > { %v2694_v43 = vld [vmem:[#allocation10 + $0x630] sm:$0xff] }
 0x42c   : > { %6025 = vmatpush1.bf16.msra.mxu0 %v6024_v15  ;;  %v2639_v15 = vld [vmem:[#allocation10 + $0x478] sm:$0xff] }
 0x42d   : > { %6027 = vmatprep.subr.bf16.mxu0 %v6026_v54  ;;  %v6056_v54 = vpack.c.bf16 %v2634_v53, %v2632_v27  ;;  %v6058_v11 = vpack.c.bf16 %v2639_v15, %v2637_v51  ;;  %v2671_v27 = vld [vmem:[#allocation10 + $0x578] sm:$0xff]  ;;  %v2668_v51 = vld [vmem:[#allocation10 + $0x560] sm:$0xff]  ;;  %v2670_v15 = vld [vmem:[#allocation10 + $0x570] sm:$0xff] }
 0x430   : > { %6029 = vmatpush1.bf16.msra.mxu0 %v6028_v13  ;;  %v2643_v13 = vld [vmem:[#allocation10 + $0x498] sm:$0xff] }
 0x431   : > { %6031 = vmatprep.subr.bf16.mxu0 %v6030_v1  ;;  %v6060_v1 = vpack.c.bf16 %v2638_v39, %v2636_v5  ;;  %v6062_v31 = vpack.c.bf16 %v2643_v13, %v2641_v45  ;;  %v6092_v5 = vpack.c.bf16 %v2670_v15, %v2668_v51  ;;  %v2672_v45 = vld [vmem:[#allocation10 + $0x580] sm:$0xff]  ;;  %v2674_v13 = vld [vmem:[#allocation10 + $0x590] sm:$0xff] }
 0x432   : > { %v2700_v51 = vld [vmem:[#allocation10 + $0x660] sm:$0xff]  ;;  %v2702_v15 = vld [vmem:[#allocation10 + $0x670] sm:$0xff] }
 0x434   : > { %6033 = vmatpush1.bf16.msra.mxu0 %v6032_v62  ;;  %v2647_v62 = vld [vmem:[#allocation10 + $0x4b8] sm:$0xff] }
 0x435   : > { %6035 = vmatprep.subr.bf16.mxu0 %v6034_v40  ;;  %v6064_v40 = vpack.c.bf16 %v2642_v30, %v2640_v33  ;;  %v6066_v49 = vpack.c.bf16 %v2647_v62, %v2645_v32  ;;  %v6096_v33 = vpack.c.bf16 %v2674_v13, %v2672_v45  ;;  %v2676_v32 = vld [vmem:[#allocation10 + $0x5a0] sm:$0xff]  ;;  %v2678_v62 = vld [vmem:[#allocation10 + $0x5b0] sm:$0xff] }
 0x436   : > { %v8375_v6 = vpop.f32.mrb[12].mxu0  ;;  %v6100_v3 = vpack.c.bf16 %v2678_v62, %v2676_v32  ;;  %v2704_v45 = vld [vmem:[#allocation10 + $0x680] sm:$0xff]  ;;  %v2706_v13 = vld [vmem:[#allocation10 + $0x690] sm:$0xff] }
 0x437   : > { %v2394_v2 = vpop.f32.mrb[13].mxu0  ;;  %v2708_v32 = vld [vmem:[#allocation10 + $0x6a0] sm:$0xff]  ;;  %v2710_v62 = vld [vmem:[#allocation10 + $0x6b0] sm:$0xff] }
 0x438   : > { %6037 = vmatpush1.bf16.msra.mxu0 %v6036_v8  ;;  %v2395_v42 = vadd.f32 %v2394_v2, %v8360_v35  ;;  %v2649_v8 = vld [vmem:[#allocation10 + $0x4c8] sm:$0xff]  ;;  %v2650_v2 = vld [vmem:[#allocation10 + $0x4d0] sm:$0xff] }
 0x439   : > { %6039 = vmatprep.subr.bf16.mxu0 %v6038_v25  ;;  %v2651_v25 = vld [vmem:[#allocation10 + $0x4d8] sm:$0xff]  ;;  %v6072_v4 = vpack.c.bf16 %v2650_v2, %v2648_v34 }
 0x43a   : > { %v8377_v61 = vpop.f32.mrb[14].mxu0  ;;  %v2485_v47 = vmax.f32 %v2395_v42, 0.0  ;;  %v6070_v22 = vpack.c.bf16 %v2651_v25, %v2649_v8  ;;  %v2667_v42 = vld [vmem:[#allocation10 + $0x558] sm:$0xff]  ;;  %v2680_v8 = vld [vmem:[#allocation10 + $0x5c0] sm:$0xff]  ;;  %v2682_v25 = vld [vmem:[#allocation10 + $0x5d0] sm:$0xff] }
 0x43b   : > { %v8379_v60 = vpop.f32.mrb[15].mxu0  ;;  %v6104_v34 = vpack.c.bf16 %v2682_v25, %v2680_v8  ;;  %v2712_v8 = vld [vmem:[#allocation10 + $0x6c0] sm:$0xff]  ;;  %v2714_v25 = vld [vmem:[#allocation10 + $0x6d0] sm:$0xff] }
 0x43c   : > { %6041 = vmatpush1.bf16.msra.mxu0 %v6040_v18 }
 0x43d   : > { %6043 = vmatprep.subr.bf16.mxu0 %v6042_v48  ;;  %v2653_v48 = vld [vmem:[#allocation10 + $0x4e8] sm:$0xff] }
 0x43e   : > { %v6074_v50 = vpack.c.bf16 %v2655_v19, %v2653_v48  ;;  %v2684_v48 = vld [vmem:[#allocation10 + $0x5e0] sm:$0xff]  ;;  %v2686_v19 = vld [vmem:[#allocation10 + $0x5f0] sm:$0xff] }
 0x440   : > { %6045 = vmatpush1.bf16.msra.mxu0 %v6044_v59  ;;  %v2652_v59 = vld [vmem:[#allocation10 + $0x4e0] sm:$0xff] }
 0x441   : > { %6047 = vmatprep.subr.bf16.mxu0 %v6046_v57  ;;  %v2657_v57 = vld [vmem:[#allocation10 + $0x508] sm:$0xff]  ;;  %v6076_v28 = vpack.c.bf16 %v2654_v44, %v2652_v59  ;;  %v6108_v59 = vpack.c.bf16 %v2686_v19, %v2684_v48  ;;  %v2393_v44 = vadd.f32 %v8375_v6, %v8360_v35  ;;  %v2716_v48 = vld [vmem:[#allocation10 + $0x6e0] sm:$0xff]  ;;  %v2718_v19 = vld [vmem:[#allocation10 + $0x6f0] sm:$0xff] }
 0x442   : > { %v6078_v21 = vpack.c.bf16 %v2659_v7, %v2657_v57  ;;  %v2688_v7 = vld [vmem:[#allocation10 + $0x600] sm:$0xff] }
 0x443   : > { %2894 = vmatmul.mubr.f32.vlgmr.msra.gmra.mrb[16].mxu0 %v2482_v38  ;;  %v2663_v38 = vld [vmem:[#allocation10 + $0x538] sm:$0xff] }
 0x444   : > { %2899 = vmatprep.mubr.f32.mxu0 %v2491_v26  ;;  %6049 = vmatpush1.bf16.msra.mxu0 %v6048_v56  ;;  %v2661_v56 = vld [vmem:[#allocation10 + $0x528] sm:$0xff] }
 0x445   : > { %6051 = vmatprep.subr.bf16.mxu0 %v6050_v52  ;;  %v6082_v52 = vpack.c.bf16 %v2663_v38, %v2661_v56  ;;  %v2665_v26 = vld [vmem:[#allocation10 + $0x548] sm:$0xff]  ;;  %v2484_v38 = vmax.f32 %v2393_v44, 0.0 }
 0x446   : > { %v6086_v16 = vpack.c.bf16 %v2667_v42, %v2665_v26  ;;  %v2697_v42 = vld [vmem:[#allocation10 + $0x648] sm:$0xff] }
 0x447   : > { %2900 = vmatmul.mubr.f32.gmra.mrb[18].mxu0 %v2490_v23  ;;  %v2666_v23 = vld [vmem:[#allocation10 + $0x550] sm:$0xff] }
 0x448   : > { %6053 = vmatpush1.bf16.msra.mxu0 %v6052_v12  ;;  %2970 = vmatprep.mubr.f32.mxu0 %v2485_v47  ;;  %v2664_v12 = vld [vmem:[#allocation10 + $0x540] sm:$0xff] }
 0x449   : > { %6055 = vmatprep.subr.bf16.mxu0 %v6054_v63  ;;  %v2669_v63 = vld [vmem:[#allocation10 + $0x568] sm:$0xff]  ;;  %v6088_v53 = vpack.c.bf16 %v2666_v23, %v2664_v12  ;;  %v2696_v23 = vld [vmem:[#allocation10 + $0x640] sm:$0xff] }
 0x44a   : > { %v6090_v47 = vpack.c.bf16 %v2671_v27, %v2669_v63  ;;  %v2698_v63 = vld [vmem:[#allocation10 + $0x650] sm:$0xff]  ;;  %v2701_v27 = vld [vmem:[#allocation10 + $0x668] sm:$0xff] }
 0x44c   : > { %6057 = vmatpush1.bf16.msra.mxu0 %v6056_v54  ;;  %v2673_v54 = vld [vmem:[#allocation10 + $0x588] sm:$0xff] }
 0x44d   : > { %6059 = vmatprep.subr.bf16.mxu0 %v6058_v11  ;;  %v2675_v11 = vld [vmem:[#allocation10 + $0x598] sm:$0xff] }
 0x44e   : > { %v6094_v39 = vpack.c.bf16 %v2675_v11, %v2673_v54  ;;  %v2705_v54 = vld [vmem:[#allocation10 + $0x688] sm:$0xff]  ;;  %v2707_v11 = vld [vmem:[#allocation10 + $0x698] sm:$0xff] }
 0x450   : > { %6061 = vmatpush1.bf16.msra.mxu0 %v6060_v1  ;;  %v2677_v1 = vld [vmem:[#allocation10 + $0x5a8] sm:$0xff] }
 0x451   : > { %6063 = vmatprep.subr.bf16.mxu0 %v6062_v31  ;;  %v2679_v31 = vld [vmem:[#allocation10 + $0x5b8] sm:$0xff] }
 0x452   : > { %v8388_v37 = vpop.f32.mrb[4].mxu1  ;;  %v6098_v30 = vpack.c.bf16 %v2679_v31, %v2677_v1  ;;  %v2709_v1 = vld [vmem:[#allocation10 + $0x6a8] sm:$0xff]  ;;  %v2711_v31 = vld [vmem:[#allocation10 + $0x6b8] sm:$0xff] }
 0x453   : > { %v8390_v55 = vpop.f32.mrb[5].mxu1 }
 0x454   : > { %6065 = vmatpush1.bf16.msra.mxu0 %v6064_v40  ;;  %v2681_v40 = vld [vmem:[#allocation10 + $0x5c8] sm:$0xff]  ;;  %v2472_v26 = vadd.f32 %v8390_v55, %v8360_v35 }
 0x455   : > { %6067 = vmatprep.subr.bf16.mxu0 %v6066_v49  ;;  %v2683_v49 = vld [vmem:[#allocation10 + $0x5d8] sm:$0xff] }
 0x456   : > { %v8392_v18 = vpop.f32.mrb[6].mxu1  ;;  %v6102_v9 = vpack.c.bf16 %v2683_v49, %v2681_v40  ;;  %v2713_v40 = vld [vmem:[#allocation10 + $0x6c8] sm:$0xff]  ;;  %v2715_v49 = vld [vmem:[#allocation10 + $0x6d8] sm:$0xff] }
 0x457   : > { %v8394_v29 = vpop.f32.mrb[7].mxu1 }
 0x458   : > { %6069 = vmatpush1.bf16.msra.mxu0 %v6068_v14  ;;  %v2685_v14 = vld [vmem:[#allocation10 + $0x5e8] sm:$0xff] }
 0x459   : > { %6071 = vmatprep.subr.bf16.mxu0 %v6070_v22  ;;  %v2687_v22 = vld [vmem:[#allocation10 + $0x5f8] sm:$0xff] }
 0x45a   : > { %v6106_v2 = vpack.c.bf16 %v2687_v22, %v2685_v14  ;;  %v2717_v14 = vld [vmem:[#allocation10 + $0x6e8] sm:$0xff]  ;;  %v2719_v22 = vld [vmem:[#allocation10 + $0x6f8] sm:$0xff] }
 0x45c   : > { %6073 = vmatpush1.bf16.msra.mxu0 %v6072_v4  ;;  %v2689_v4 = vld [vmem:[#allocation10 + $0x608] sm:$0xff] }
 0x45d   : > { %6075 = vmatprep.subr.bf16.mxu0 %v6074_v50  ;;  %v2691_v50 = vld [vmem:[#allocation10 + $0x618] sm:$0xff] }
 0x45e   : > { %v6110_v57 = vpack.c.bf16 %v2691_v50, %v2689_v4  ;;  %v2721_v4 = vld [vmem:[#allocation10 + $0x708] sm:$0xff]  ;;  %v2723_v50 = vld [vmem:[#allocation10 + $0x718] sm:$0xff] }
 0x45f   : > { %v6142_v44 = vpack.c.bf16 %v2723_v50, %v2721_v4 }
 0x460   : > { %6077 = vmatpush1.bf16.msra.mxu0 %v6076_v28  ;;  %v2690_v28 = vld [vmem:[#allocation10 + $0x610] sm:$0xff] }
 0x461   : > { %6079 = vmatprep.subr.bf16.mxu0 %v6078_v21  ;;  %v2401_v21 = vadd.f32 %v8379_v60, %v8364_v41  ;;  %v6112_v56 = vpack.c.bf16 %v2690_v28, %v2688_v7  ;;  %v6116_v60 = vpack.c.bf16 %v2694_v43, %v2692_v46  ;;  %v2722_v7 = vld [vmem:[#allocation10 + $0x710] sm:$0xff]  ;;  %v2725_v28 = vld [vmem:[#allocation10 + $0x728] sm:$0xff] }
 0x463   : > { %v2493_v6 = vmax.f32 %v2401_v21, 0.0  ;;  %v2727_v21 = vld [vmem:[#allocation10 + $0x738] sm:$0xff] }
 0x464   : > { %6081 = vmatpush1.bf16.msra.mxu0 %v6080_v36  ;;  %v2399_v36 = vadd.f32 %v8377_v61, %v8364_v41  ;;  %v2487_v61 = vmax.f32 %v2472_v26, 0.0  ;;  %v2730_v26 = vld [vmem:[#allocation10 + $0x750] sm:$0xff] }
 0x465   : > { %6083 = vmatprep.subr.bf16.mxu0 %v6082_v52  ;;  %v6114_v52 = vpack.c.bf16 %v2695_v58, %v2693_v24  ;;  %v6146_v58 = vpack.c.bf16 %v2727_v21, %v2725_v28 }
 0x468   : > { %6085 = vmatpush1.bf16.msra.mxu0 %v6084_v10  ;;  %v2699_v10 = vld [vmem:[#allocation10 + $0x658] sm:$0xff] }
 0x469   : > { %6087 = vmatprep.subr.bf16.mxu0 %v6086_v16  ;;  %v2492_v16 = vmax.f32 %v2399_v36, 0.0  ;;  %v6118_v12 = vpack.c.bf16 %v2699_v10, %v2697_v42  ;;  %v2729_v36 = vld [vmem:[#allocation10 + $0x748] sm:$0xff]  ;;  %v2735_v10 = vld [vmem:[#allocation10 + $0x778] sm:$0xff] }
 0x46a   : > { %v2733_v42 = vld [vmem:[#allocation10 + $0x768] sm:$0xff] }
 0x46c   : > { %6089 = vmatpush1.bf16.msra.mxu0 %v6088_v53  ;;  %v2703_v53 = vld [vmem:[#allocation10 + $0x678] sm:$0xff] }
 0x46d   : > { %6091 = vmatprep.subr.bf16.mxu0 %v6090_v47  ;;  %v6120_v47 = vpack.c.bf16 %v2698_v63, %v2696_v23  ;;  %v6122_v55 = vpack.c.bf16 %v2703_v53, %v2701_v27  ;;  %v2734_v23 = vld [vmem:[#allocation10 + $0x770] sm:$0xff]  ;;  %v2737_v63 = vld [vmem:[#allocation10 + $0x788] sm:$0xff] }
 0x470   : > { %6093 = vmatpush1.bf16.msra.mxu0 %v6092_v5  ;;  %v6124_v5 = vpack.c.bf16 %v2702_v15, %v2700_v51  ;;  %v2741_v51 = vld [vmem:[#allocation10 + $0x7a8] sm:$0xff]  ;;  %v2743_v15 = vld [vmem:[#allocation10 + $0x7b8] sm:$0xff] }
 0x471   : > { %6095 = vmatprep.subr.bf16.mxu0 %v6094_v39  ;;  %v6126_v39 = vpack.c.bf16 %v2707_v11, %v2705_v54  ;;  %v6162_v11 = vpack.c.bf16 %v2743_v15, %v2741_v51 }
 0x474   : > { %6097 = vmatpush1.bf16.msra.mxu0 %v6096_v33  ;;  %v6128_v33 = vpack.c.bf16 %v2706_v13, %v2704_v45  ;;  %v2745_v45 = vld [vmem:[#allocation10 + $0x7c8] sm:$0xff]  ;;  %v2747_v13 = vld [vmem:[#allocation10 + $0x7d8] sm:$0xff] }
 0x475   : > { %6099 = vmatprep.subr.bf16.mxu0 %v6098_v30  ;;  %v6130_v30 = vpack.c.bf16 %v2711_v31, %v2709_v1  ;;  %v6166_v31 = vpack.c.bf16 %v2747_v13, %v2745_v45 }
 0x478   : > { %6101 = vmatpush1.bf16.msra.mxu0 %v6100_v3  ;;  %v6132_v3 = vpack.c.bf16 %v2710_v62, %v2708_v32  ;;  %v2749_v32 = vld [vmem:[#allocation10 + $0x7e8] sm:$0xff]  ;;  %v2751_v62 = vld [vmem:[#allocation10 + $0x7f8] sm:$0xff] }
 0x479   : > { %6103 = vmatprep.subr.bf16.mxu0 %v6102_v9  ;;  %v6134_v9 = vpack.c.bf16 %v2715_v49, %v2713_v40  ;;  %v6170_v49 = vpack.c.bf16 %v2751_v62, %v2749_v32 }
 0x47c   : > { %6105 = vmatpush1.bf16.msra.mxu0 %v6104_v34  ;;  %v6136_v34 = vpack.c.bf16 %v2714_v25, %v2712_v8  ;;  %v2470_v25 = vadd.f32 %v8388_v37, %v8360_v35 }
 0x47d   : > { %6107 = vmatprep.subr.bf16.mxu0 %v6106_v2  ;;  %v6138_v2 = vpack.c.bf16 %v2719_v22, %v2717_v14  ;;  %v2478_v14 = vadd.f32 %v8394_v29, %v8364_v41 }
 0x47e   : > { %v2486_v22 = vmax.f32 %v2470_v25, 0.0 }
 0x480   : > { %6109 = vmatpush1.bf16.msra.mxu0 %v6108_v59  ;;  %v6140_v59 = vpack.c.bf16 %v2718_v19, %v2716_v48 }
 0x481   : > { %6111 = vmatprep.subr.bf16.mxu0 %v6110_v57  ;;  %v2720_v57 = vld [vmem:[#allocation10 + $0x700] sm:$0xff] }
 0x482   : > { %v6144_v24 = vpack.c.bf16 %v2722_v7, %v2720_v57  ;;  %v3072_v57 = vld [vmem:[%s9360_s27 + $0x10] sm:$0xff]  ;;  %v3071_v7 = vld [vmem:[%s9360_s27 + $0x8] sm:$0xff] }
 0x483   : > { %2971 = vmatmul.mubr.f32.vlgmr.msra.gmra.mrb[16].mxu0 %v2484_v38  ;;  %v2726_v38 = vld [vmem:[#allocation10 + $0x730] sm:$0xff] }
 0x484   : > { %2976 = vmatprep.mubr.f32.mxu0 %v2493_v6  ;;  %6113 = vmatpush1.bf16.msra.mxu0 %v6112_v56  ;;  %v2724_v56 = vld [vmem:[#allocation10 + $0x720] sm:$0xff] }
 0x485   : > { %6115 = vmatprep.subr.bf16.mxu0 %v6114_v52  ;;  %v2731_v52 = vld [vmem:[#allocation10 + $0x758] sm:$0xff]  ;;  %v6148_v46 = vpack.c.bf16 %v2726_v38, %v2724_v56  ;;  %v2728_v6 = vld [vmem:[#allocation10 + $0x740] sm:$0xff] }
 0x486   : > { %v6150_v43 = vpack.c.bf16 %v2731_v52, %v2729_v36  ;;  %v3084_v36 = vand.u32 15, %v7506_v20 }
 0x487   : > { %2977 = vmatmul.mubr.f32.gmra.mrb[18].mxu0 %v2492_v16  ;;  %v6154_v16 = vpack.c.bf16 %v2735_v10, %v2733_v42 }
 0x488   : > { %6117 = vmatpush1.bf16.msra.mxu0 %v6116_v60  ;;  %3047 = vmatprep.mubr.f32.mxu0 %v2487_v61  ;;  %v6152_v60 = vpack.c.bf16 %v2730_v26, %v2728_v6  ;;  %v2739_v61 = vld [vmem:[#allocation10 + $0x798] sm:$0xff]  ;;  %vm3098_vm14 = vcmp.ne.s32.totalorder %v3084_v36, 0  ;;  %vm3104_vm9 = vcmp.ne.s32.totalorder %v3084_v36, 15 }
 0x489   : > { %6119 = vmatprep.subr.bf16.mxu0 %v6118_v12  ;;  %v2732_v12 = vld [vmem:[#allocation10 + $0x760] sm:$0xff]  ;;  %v6158_v53 = vpack.c.bf16 %v2739_v61, %v2737_v63  ;;  %v8483_v10 = vsel %vm3098_vm14, 1.0, %v6989_v0  ;;  %vm3496_vm14 = vcmask 523264  }
 0x48a   : > { %v6156_v27 = vpack.c.bf16 %v2734_v23, %v2732_v12 }
 0x48c   : > { %6121 = vmatpush1.bf16.msra.mxu0 %v6120_v47  ;;  %v2736_v47 = vld [vmem:[#allocation10 + $0x780] sm:$0xff] }
 0x48d   : > { %6123 = vmatprep.subr.bf16.mxu0 %v6122_v55  ;;  %v2738_v55 = vld [vmem:[#allocation10 + $0x790] sm:$0xff] }
 0x48e   : > { %v6160_v54 = vpack.c.bf16 %v2738_v55, %v2736_v47 }
 0x490   : > { %6125 = vmatpush1.bf16.msra.mxu0 %v6124_v5  ;;  %v2740_v5 = vld [vmem:[#allocation10 + $0x7a0] sm:$0xff] }
 0x491   : > { %6127 = vmatprep.subr.bf16.mxu0 %v6126_v39  ;;  %v2742_v39 = vld [vmem:[#allocation10 + $0x7b0] sm:$0xff] }
 0x492   : > { %v6164_v1 = vpack.c.bf16 %v2742_v39, %v2740_v5 }
 0x494   : > { %6129 = vmatpush1.bf16.msra.mxu0 %v6128_v33  ;;  %v2744_v33 = vld [vmem:[#allocation10 + $0x7c0] sm:$0xff] }
 0x495   : > { %6131 = vmatprep.subr.bf16.mxu0 %v6130_v30  ;;  %v2746_v30 = vld [vmem:[#allocation10 + $0x7d0] sm:$0xff] }
 0x496   : > { %v6168_v40 = vpack.c.bf16 %v2746_v30, %v2744_v33 }
 0x498   : > { %6133 = vmatpush1.bf16.msra.mxu0 %v6132_v3  ;;  %v2748_v3 = vld [vmem:[#allocation10 + $0x7e0] sm:$0xff] }
 0x499   : > { %6135 = vmatprep.subr.bf16.mxu0 %v6134_v9  ;;  %v2750_v9 = vld [vmem:[#allocation10 + $0x7f0] sm:$0xff] }
 0x49a   : > { %v6172_v8 = vpack.c.bf16 %v2750_v9, %v2748_v3 }
 0x49c   : > { %6137 = vmatpush1.bf16.msra.mxu0 %v6136_v34  ;;  %v2476_v34 = vadd.f32 %v8392_v18, %v8364_v41 }
 0x49d   : > { %6139 = vmatprep.subr.bf16.mxu0 %v6138_v2  ;;  %v2495_v2 = vmax.f32 %v2478_v14, 0.0 }
 0x49e   : > { %v2494_v48 = vmax.f32 %v2476_v34, 0.0 }
 0x4a0   : > { %6141 = vmatpush1.bf16.msra.mxu0 %v6140_v59  ;;  %v3065_v59 = vld [vmem:[#allocation6 + $0x8] sm:$0xff] }
 0x4a1   : > { %6143 = vmatprep.subr.bf16.mxu0 %v6142_v44  ;;  %v3070_v44 = vld [vmem:[%s9360_s27] sm:$0xff]  ;;  %5469 = vmatprep.mubr.msk.f32.mxu1 %vm3142_vm11, %v3065_v59 }
 0x4a4   : > { %6145 = vmatpush1.bf16.msra.mxu0 %v6144_v24 }
 0x4a5   : > { %6147 = vmatprep.subr.bf16.mxu0 %v6146_v58 }
 0x4a8   : > { %6149 = vmatpush1.bf16.msra.mxu0 %v6148_v46 }
 0x4a9   : > { %6151 = vmatprep.subr.bf16.mxu0 %v6150_v43  ;;  %v3077_v43 = vand.u32 15, %v7500_v17 }
 0x4ab   : > { %vm3097_vm15 = vcmp.ne.s32.totalorder %v3077_v43, 0  ;;  %vm3103_vm13 = vcmp.ne.s32.totalorder %v3077_v43, 15 }
 0x4ac   : > { %6153 = vmatpush1.bf16.msra.mxu0 %v6152_v60  ;;  %v8505_v62 = vsel %vm3103_vm13, 1.0, %v6989_v0  ;;  %vm3558_vm13 = vcmask 64512  }
 0x4ad   : > { %6155 = vmatprep.subr.bf16.mxu0 %v6154_v16  ;;  %v8486_v16 = vsel %vm3097_vm15, 1.0, %v6989_v0  ;;  %vm3674_vm15 = vcmask 719872   ;;  %vm8625_vm2 = vmneg %vm3558_vm13 }
 0x4b0   : > { %6157 = vmatpush1.bf16.msra.mxu0 %v6156_v27 }
 0x4b1   : > { %6159 = vmatprep.subr.bf16.mxu0 %v6158_v53 }
 0x4b4   : > { %6161 = vmatpush1.bf16.msra.mxu0 %v6160_v54 }
 0x4b5   : > { %6163 = vmatprep.subr.bf16.mxu0 %v6162_v11 }
 0x4b8   : > { %6165 = vmatpush1.bf16.msra.mxu0 %v6164_v1 }
 0x4b9   : > { %6167 = vmatprep.subr.bf16.mxu0 %v6166_v31  ;;  %v8499_v31 = vsel %vm3104_vm9, 1.0, %v6989_v0  ;;  %vm3542_vm9 = vcmask 72704  }
 0x4bc   : > { %6169 = vmatpush1.bf16.msra.mxu0 %v6168_v40 }
 0x4bd   : > { %6171 = vmatprep.subr.bf16.mxu0 %v6170_v49 }
 0x4c0   : > { %6173 = vmatpush1.bf16.msra.mxu0 %v6172_v8 }
 0x4c3   : > { %3048 = vmatmul.mubr.f32.vlgmr.msra.gmra.mrb[16].mxu0 %v2486_v22 }
 0x4c4   : > { %3053 = vmatprep.mubr.f32.mxu0 %v2495_v2 }
 0x4c7   : > { %3054 = vmatmul.mubr.f32.gmra.mrb[18].mxu0 %v2494_v48 }
 0x596   : > { %v8414_v19 = vpop.f32.mrb[16].mxu0 }
 0x597   : > { %3060 = vst [vmem:[%s827_s23] sm:$0xff] %v8414_v19  ;;  %3151 = vrot.lane.b32.xlu0 %v8414_v19, %s7000_s5  ;;  %3113 = vrot.lane.b32.xlu1 %v8414_v19, %s7001_s13  ;;  %v8419_v35 = vpop.f32.mrb[17].mxu0 }
 0x598   : > { %3061 = vst [vmem:[%s827_s23 + $0x8] sm:$0xff] %v8419_v35  ;;  %v6635_v41 = vpack.i.bf16 %v8419_v35, %v8414_v19 }
 0x59a   : > { %v8424_v37 = vpop.f32.mrb[18].mxu0 }
 0x59b   : > { %3062 = vst [vmem:[%s827_s23 + $0x10] sm:$0xff] %v8424_v37  ;;  %3172 = vrot.lane.b32.xlu0 %v8414_v19, %s6990_s11  ;;  %3115 = vrot.lane.b32.xlu1 %v8419_v35, %s7001_s13  ;;  %v8430_v18 = vpop.f32.mrb[19].mxu0  ;;  %v6193_v29 = vpack.c.bf16 %v8424_v37, %v8414_v19 }
 0x59c   : > { %3063 = vst [vmem:[%s827_s23 + $0x18] sm:$0xff] %v8430_v18  ;;  %v6640_v4 = vpack.i.bf16 %v8430_v18, %v8424_v37  ;;  %v6191_v50 = vpack.c.bf16 %v8430_v18, %v8419_v35  ;;  %s9382_s23 = sld [smem:[#allocation33_spill]] }
 0x59f   : > { %6636 = vrot.lane.b32.xlu0 %v6635_v41, %s7002_s7  ;;  %3153 = vrot.lane.b32.xlu1 %v8419_v35, %s7000_s5 }
 0x5a3   : > { %3174 = vrot.lane.b32.xlu1 %v8419_v35, %s6990_s11  ;;  %3117 = vrot.lane.b32.xlu0 %v8424_v37, %s7001_s13 }
 0x5a7   : > { %3196 = vrot.lane.b32.xlu1 %v8424_v37, %s6992_s26  ;;  %3194 = vrot.lane.b32.xlu0 %v8419_v35, %s6992_s26 }
 0x5ab   : > { %3155 = vrot.lane.b32.xlu0 %v8424_v37, %s7000_s5  ;;  %3119 = vrot.lane.b32.xlu1 %v8430_v18, %s7001_s13  ;;  %s832_s13 = scalar_lea.vmem %s9242_s19, %s6434_s28 }
 0x5af   : > { %3176 = vrot.lane.b32.xlu0 %v8424_v37, %s6990_s11  ;;  %6641 = vrot.lane.b32.xlu1 %v6640_v4, %s7002_s7  ;;  %s7007_s7 = smov 9  }
 0x5b3   : > { %3192 = vrot.lane.b32.xlu0 %v8414_v19, %s6992_s26  ;;  %3157 = vrot.lane.b32.xlu1 %v8430_v18, %s7000_s5 }
 0x5b7   : > { %3214 = vrot.lane.b32.xlu0 %v8419_v35, %s7003_s2  ;;  %3178 = vrot.lane.b32.xlu1 %v8430_v18, %s6990_s11 }
 0x5bb   : > { %3212 = vrot.lane.b32.xlu0 %v8414_v19, %s7003_s2  ;;  %3216 = vrot.lane.b32.xlu1 %v8424_v37, %s7003_s2 }
 0x5bf   : > { %6646 = vrot.lane.b32.xlu0 %v6635_v41, %s7004_s6  ;;  %3198 = vrot.lane.b32.xlu1 %v8430_v18, %s6992_s26 }
 0x5c3   : > { %3252 = vrot.lane.b32.xlu0 %v8419_v35, %s7005_s25  ;;  %3218 = vrot.lane.b32.xlu1 %v8430_v18, %s7003_s2  ;;  %s7008_s2 = smov 8  }
 0x5c7   : > { %3250 = vrot.lane.b32.xlu0 %v8414_v19, %s7005_s25  ;;  %6651 = vrot.lane.b32.xlu1 %v6640_v4, %s7004_s6  ;;  %s7009_s6 = smov 7  }
 0x5cb   : > { %3273 = vperm.xlu0 %6634, %v3070_v44   ;;  %3256 = vrot.lane.b32.xlu1 %v8430_v18, %s7005_s25 }
 0x5cf   : > { %3283 = vperm.xlu0 %6634, %v3072_v57   ;;  %3254 = vrot.lane.b32.xlu1 %v8424_v37, %s7005_s25  ;;  %s7010_s25 = smov 121  }
 0x5d3   : > { %3278 = vperm.xlu1 %6598, %v3071_v7  }
 0x609   : > { %v3152_v28 = vpop.permute.xlu0 %3151  ;;  %v3114_v21 = vpop.permute.xlu1 %3113 }
 0x60a   : > { %v3128_v20 = vsel %vm3121_vm12, 0.0, %v3114_v21  ;;  %v3166_v40 = vsel %vm3159_vm5, 0.0, %v3152_v28 }
 0x60b   : > { %v3130_v47 = vmul.f32 %v8486_v16, %v3128_v20  ;;  %v3168_v48 = vmul.f32 %v8505_v62, %v3166_v40 }
 0x60d   : > { %v3173_v24 = vpop.permute.xlu0 %3172  ;;  %v3116_v58 = vpop.permute.xlu1 %3115 }
 0x60e   : > { %v3122_v60 = vsel %vm3121_vm12, %v3114_v21, %v3116_v58  ;;  %v3186_v4 = vsel %vm1139_vm1, 0.0, %v3173_v24 }
 0x60f   : > { %v3131_v27 = vmul.f32 %v8483_v10, %v3122_v60 }
 0x611   : > { %v6637_v56 = vpop.permute.xlu0 %6636  ;;  %v3154_v38 = vpop.permute.xlu1 %3153 }
 0x612   : > { %v6639_v55 = vunpack.i.h.bf16 %v6637_v56  ;;  %v6638_v51 = vunpack.i.l.bf16 %v6637_v56  ;;  %v3160_v33 = vsel %vm3159_vm5, %v3152_v28, %v3154_v38  ;;  %v3188_v38 = vmul.f32 %v8486_v16, %v3186_v4 }
 0x613   : > { %v3169_v22 = vmul.f32 %v8499_v31, %v3160_v33 }
 0x614   : > { %v3143_v30 = vsel %vm3142_vm11, %v6638_v51, %v6639_v55 }
 0x615   : > { %v3175_v52 = vpop.permute.xlu1 %3174  ;;  %v3118_v46 = vpop.permute.xlu0 %3117 }
 0x616   : > { %v3129_v42 = vsel %vm3121_vm12, 0.0, %v3118_v46  ;;  %v3180_v41 = vsel %vm1139_vm1, %v3173_v24, %v3175_v52 }
 0x617   : > { %v3132_v63 = vmul.f32 %v8486_v16, %v3129_v42  ;;  %v3189_v58 = vmul.f32 %v8483_v10, %v3180_v41 }
 0x619   : > { %v8478_v6 = vpop.permute.xlu1 %3196  ;;  %v8480_v26 = vpop.permute.xlu0 %3194  ;;  %v6176_v5 = vpack.c.bf16 %v3132_v63, %v3130_v47 }
 0x61a   : > { %v3206_v43 = vsel %vm1180_vm6, %v8480_v26, 0.0 }
 0x61b   : > { %v3209_v63 = vmul.f32 %v8499_v31, %v3206_v43 }
 0x61d   : > { %v3156_v12 = vpop.permute.xlu0 %3155  ;;  %v3120_v23 = vpop.permute.xlu1 %3119 }
 0x61e   : > { %v3123_v61 = vsel %vm3121_vm12, %v3118_v46, %v3120_v23  ;;  %v3167_v1 = vsel %vm3159_vm5, 0.0, %v3156_v12 }
 0x61f   : > { %v3133_v53 = vmul.f32 %v8483_v10, %v3123_v61  ;;  %v3170_v8 = vmul.f32 %v8505_v62, %v3167_v1 }
 0x621   : > { %v3177_v15 = vpop.permute.xlu0 %3176  ;;  %v6642_v54 = vpop.permute.xlu1 %6641  ;;  %v6174_v11 = vpack.c.bf16 %v3133_v53, %v3131_v27  ;;  %v6185_v7 = vpack.c.bf16 %v3170_v8, %v3168_v48 }
 0x622   : > { %v6644_v39 = vunpack.i.h.bf16 %v6642_v54  ;;  %v6643_v45 = vunpack.i.l.bf16 %v6642_v54  ;;  %v3187_v34 = vsel %vm1139_vm1, 0.0, %v3177_v15 }
 0x623   : > { %6175 = vmatprep.subr.bf16.mxu1 %v6174_v11  ;;  %v3190_v28 = vmul.f32 %v8486_v16, %v3187_v34  ;;  %v3400_v34 = vld [vmem:[#allocation12 + $0x80] sm:$0xff] }
 0x624   : > { %6177 = vmatpush1.bf16.msra.mxu1 %v6176_v5  ;;  %v3144_v32 = vsel %vm3142_vm11, %v6643_v45, %v6644_v39  ;;  %v6180_v25 = vpack.c.bf16 %v6643_v45, %v6638_v51 }
 0x625   : > { %v3193_v49 = vpop.permute.xlu0 %3192  ;;  %v3158_v3 = vpop.permute.xlu1 %3157  ;;  %v6178_v9 = vpack.c.bf16 %v3144_v32, %v3143_v30  ;;  %v6189_v24 = vpack.c.bf16 %v3190_v28, %v3188_v38  ;;  %v3402_v28 = vld [vmem:[#allocation12 + $0x90] sm:$0xff] }
 0x626   : > { %v3161_v14 = vsel %vm3159_vm5, %v3156_v12, %v3158_v3  ;;  %v3200_v42 = vsel %vm1180_vm6, %v3193_v49, %v8480_v26 }
 0x627   : > { %v3171_v2 = vmul.f32 %v8499_v31, %v3161_v14  ;;  %6179 = vmatprep.subr.bf16.mxu1 %v6178_v9  ;;  %v3208_v61 = vmul.f32 %v8505_v62, %v3200_v42  ;;  %v3069_v42 = vld [vmem:[#allocation6 + $0x28] sm:$0xff] }
 0x628   : > { %6182 = vmatpush1.bf16.msk.msra.mxu1 %vm6181_vm4, %v6180_v25  ;;  %vm6249_vm4 = vmpackc.low %vm8625_vm2, %vm9349_vm8 }
 0x629   : > { %v3215_v59 = vpop.permute.xlu0 %3214  ;;  %v3179_v44 = vpop.permute.xlu1 %3178  ;;  %v6183_v57 = vpack.c.bf16 %v3171_v2, %v3169_v22  ;;  %v3401_v2 = vld [vmem:[#allocation12 + $0x88] sm:$0xff] }
 0x62a   : > { %v3181_v21 = vsel %vm1139_vm1, %v3177_v15, %v3179_v44  ;;  %v3227_v53 = vsel %vm3220_vm7, %v3215_v59, 0.0  ;;  %v3384_v44 = vld [vmem:[#allocation12] sm:$0xff] }
 0x62b   : > { %v3191_v56 = vmul.f32 %v8483_v10, %v3181_v21  ;;  %6184 = vmatprep.subr.bf16.mxu1 %v6183_v57  ;;  %v3230_v51 = vmul.f32 %v8483_v10, %v3227_v53  ;;  %v3385_v57 = vld [vmem:[#allocation12 + $0x8] sm:$0xff]  ;;  %v3064_v21 = vld [vmem:[#allocation6] sm:$0xff]  ;;  %v3390_v53 = vld [vmem:[#allocation12 + $0x30] sm:$0xff] }
 0x62c   : > { %6186 = vmatpush1.bf16.msra.mxu1 %v6185_v7 }
 0x62d   : > { %v3213_v36 = vpop.permute.xlu0 %3212  ;;  %v3217_v52 = vpop.permute.xlu1 %3216  ;;  %v6187_v46 = vpack.c.bf16 %v3191_v56, %v3189_v58  ;;  %v6214_v58 = vpack.c.bf16 %v3385_v57, %v3384_v44  ;;  %v3067_v56 = vld [vmem:[#allocation6 + $0x18] sm:$0xff] }
 0x62e   : > { %v3221_v47 = vsel %vm3220_vm7, %v3213_v36, %v3215_v59  ;;  %v6212_v59 = vpack.c.bf16 %v3401_v2, %v3400_v34  ;;  %v3386_v36 = vld [vmem:[#allocation12 + $0x10] sm:$0xff] }
 0x62f   : > { %6188 = vmatprep.subr.bf16.mxu1 %v6187_v46  ;;  %v3229_v15 = vmul.f32 %v8486_v16, %v3221_v47  ;;  %v3404_v46 = vld [vmem:[#allocation12 + $0xa0] sm:$0xff]  ;;  %v3391_v47 = vld [vmem:[#allocation12 + $0x38] sm:$0xff] }
 0x630   : > { %6190 = vmatpush1.bf16.msra.mxu1 %v6189_v24  ;;  %v3405_v24 = vld [vmem:[#allocation12 + $0xa8] sm:$0xff] }
 0x631   : > { %v6647_v60 = vpop.permute.xlu0 %6646  ;;  %v3199_v20 = vpop.permute.xlu1 %3198  ;;  %6192 = vmatprep.subr.bf16.mxu1 %v6191_v50 }
 0x632   : > { %v3201_v12 = vsel %vm1180_vm6, %v8478_v6, %v3199_v20  ;;  %v3207_v23 = vsel %vm1180_vm6, %v3199_v20, 0.0  ;;  %v6649_v39 = vunpack.i.h.bf16 %v6647_v60  ;;  %v6648_v19 = vunpack.i.l.bf16 %v6647_v60  ;;  %v3388_v20 = vld [vmem:[#allocation12 + $0x20] sm:$0xff] }
 0x633   : > { %v3210_v27 = vmul.f32 %v8505_v62, %v3201_v12  ;;  %v3211_v26 = vmul.f32 %v8499_v31, %v3207_v23  ;;  %vm3258_vm6 = vcmask 908288   ;;  %v6220_v60 = vpack.c.bf16 %v3405_v24, %v3404_v46  ;;  %v3389_v12 = vld [vmem:[#allocation12 + $0x28] sm:$0xff]  ;;  %v3406_v23 = vld [vmem:[#allocation12 + $0xb0] sm:$0xff] }
 0x634   : > { %6194 = vmatpush1.bf16.msra.mxu1 %v6193_v29 }
 0x635   : > { %v6197_v35 = vpack.c.bf16 %v3210_v27, %v3208_v61  ;;  %v3219_v18 = vpop.permute.xlu1 %3218  ;;  %v6195_v50 = vpack.c.bf16 %v3211_v26, %v3209_v63  ;;  %v3253_v54 = vpop.permute.xlu0 %3252  ;;  %v3407_v63 = vld [vmem:[#allocation12 + $0xb8] sm:$0xff]  ;;  %v3068_v61 = vld [vmem:[#allocation6 + $0x20] sm:$0xff]  ;;  %v6222_v27 = vpack.c.bf16 %v3389_v12, %v3388_v20 }
 0x636   : > { %v3222_v6 = vsel %vm3220_vm7, %v3217_v52, %v3219_v18  ;;  %v3228_v55 = vsel %vm3220_vm7, %v3219_v18, 0.0  ;;  %v3265_v33 = vsel %vm3258_vm6, %v3253_v54, 0.0  ;;  %v3387_v52 = vld [vmem:[#allocation12 + $0x18] sm:$0xff]  ;;  %v6224_v26 = vpack.c.bf16 %v3407_v63, %v3406_v23  ;;  %v3409_v18 = vld [vmem:[#allocation12 + $0xc8] sm:$0xff] }
 0x637   : > { %v3231_v11 = vmul.f32 %v8486_v16, %v3222_v6  ;;  %v3232_v5 = vmul.f32 %v8483_v10, %v3228_v55  ;;  %6196 = vmatprep.subr.bf16.mxu1 %v6195_v50  ;;  %v3242_v16 = vsel %vm3241_vm0, %v6648_v19, %v6649_v39  ;;  %v3268_v9 = vmul.f32 %v8499_v31, %v3265_v33  ;;  %v3392_v55 = vld [vmem:[#allocation12 + $0x40] sm:$0xff]  ;;  %v3395_v19 = vld [vmem:[#allocation12 + $0x58] sm:$0xff]  ;;  %v3397_v33 = vld [vmem:[#allocation12 + $0x68] sm:$0xff] }
 0x638   : > { %6198 = vmatpush1.bf16.msra.mxu1 %v6197_v35  ;;  %v6218_v43 = vpack.c.bf16 %v3387_v52, %v3386_v36  ;;  %v3408_v35 = vld [vmem:[#allocation12 + $0xc0] sm:$0xff]  ;;  %v6226_v50 = vpack.c.bf16 %v3391_v47, %v3390_v53  ;;  %v7006_v52 = vmov 0.0|0.0   ;;  %v3501_v53 = vld [vmem:[#allocation7 + $0x8] sm:$0xff] }
 0x639   : > { %v6201_v37 = vpack.c.bf16 %v3231_v11, %v3229_v15  ;;  %v6652_v29 = vpop.permute.xlu1 %6651  ;;  %v6199_v45 = vpack.c.bf16 %v3232_v5, %v3230_v51  ;;  %v3251_v10 = vpop.permute.xlu0 %3250  ;;  %v6228_v6 = vpack.c.bf16 %v3409_v18, %v3408_v35  ;;  %v3393_v51 = vld [vmem:[#allocation12 + $0x48] sm:$0xff]  ;;  %v3410_v15 = vld [vmem:[#allocation12 + $0xd0] sm:$0xff]  ;;  %v3511_v47 = vld [vmem:[%s9231_s8 + $0x18] sm:$0xff]  ;;  %v3516_v18 = vand.u32 7, %v7500_v17 }
 0x63a   : > { %v6654_v13 = vunpack.i.h.bf16 %v6652_v29  ;;  %v6653_v1 = vunpack.i.l.bf16 %v6652_v29  ;;  %v3259_v25 = vsel %vm3258_vm6, %v3251_v10, %v3253_v54  ;;  %v3411_v54 = vld [vmem:[#allocation12 + $0xd8] sm:$0xff]  ;;  %v6230_v11 = vpack.c.bf16 %v3393_v51, %v3392_v55  ;;  %v3413_v29 = vld [vmem:[#allocation12 + $0xe8] sm:$0xff] }
 0x63b   : > { %6200 = vmatprep.subr.bf16.mxu1 %v6199_v45  ;;  %v3267_v41 = vmul.f32 %v8505_v62, %v3259_v25  ;;  %v6232_v5 = vpack.c.bf16 %v3411_v54, %v3410_v15  ;;  %v3510_v35 = vld [vmem:[%s9231_s8 + $0x10] sm:$0xff]  ;;  %vm3524_vm12 = vcmp.ne.s32.totalorder %v3516_v18, 0  ;;  %vm3527_vm7 = vcmp.ne.s32.totalorder %v3516_v18, 7 }
 0x63c   : > { %v6203_v30 = vpack.c.bf16 %v6654_v13, %v6649_v39  ;;  %6202 = vmatpush1.bf16.msra.mxu1 %v6201_v37  ;;  %v3243_v32 = vsel %vm3241_vm0, %v6653_v1, %v6654_v13  ;;  %v3394_v39 = vld [vmem:[#allocation12 + $0x50] sm:$0xff]  ;;  %v3412_v37 = vld [vmem:[#allocation12 + $0xe0] sm:$0xff]  ;;  %vm6253_vm0 = vmpackc.low %vm8625_vm2, %vm8625_vm2  ;;  %vm3647_vm2 = vcmask 449536  }
 0x63d   : > { %v3257_v40 = vpop.permute.xlu1 %3256  ;;  %v6206_v49 = vpack.c.bf16 %v3243_v32, %v3242_v16  ;;  %v6234_v45 = vpack.c.bf16 %v3395_v19, %v3394_v39  ;;  %v6236_v13 = vpack.c.bf16 %v3413_v29, %v3412_v37  ;;  %v3396_v1 = vld [vmem:[#allocation12 + $0x60] sm:$0xff]  ;;  %v3414_v16 = vld [vmem:[#allocation12 + $0xf0] sm:$0xff]  ;;  %v3415_v32 = vld [vmem:[#allocation12 + $0xf8] sm:$0xff] }
 0x63e   : > { %v3266_v3 = vsel %vm3258_vm6, %v3257_v40, 0.0  ;;  %6205 = vmatprep.subr.msk.bf16.mxu1 %vm6204_vm3, %v6203_v30  ;;  %v6238_v30 = vpack.c.bf16 %v3397_v33, %v3396_v1  ;;  %v6240_v10 = vpack.c.bf16 %v3415_v32, %v3414_v16  ;;  %v8635_v32 = vsel %vm3527_vm7, 1.0, %v6989_v0 }
 0x63f   : > { %v3270_v8 = vmul.f32 %v8499_v31, %v3266_v3  ;;  %v3403_v31 = vld [vmem:[#allocation12 + $0x98] sm:$0xff]  ;;  %vm3602_vm3 = vcmask 515072   ;;  %vm3964_vm7 = vcmask 31744  }
 0x640   : > { %6207 = vmatpush1.bf16.msra.mxu1 %v6206_v49  ;;  %v6216_v38 = vpack.c.bf16 %v3403_v31, %v3402_v28  ;;  %v3399_v49 = vld [vmem:[#allocation12 + $0x78] sm:$0xff] }
 0x641   : > { %v3255_v14 = vpop.permute.xlu1 %3254  ;;  %v6208_v22 = vpack.c.bf16 %v3270_v8, %v3268_v9 }
 0x642   : > { %v3260_v48 = vsel %vm3258_vm6, %v3255_v14, %v3257_v40  ;;  %v3398_v40 = vld [vmem:[#allocation12 + $0x70] sm:$0xff]  ;;  %vm3571_vm6 = vcmask 56320  }
 0x643   : > { %v3269_v4 = vmul.f32 %v8505_v62, %v3260_v48  ;;  %6209 = vmatprep.subr.bf16.mxu1 %v6208_v22  ;;  %v3066_v62 = vld [vmem:[#allocation6 + $0x10] sm:$0xff]  ;;  %v6242_v3 = vpack.c.bf16 %v3399_v49, %v3398_v40 }
 0x645   : > { %v6210_v7 = vpack.c.bf16 %v3269_v4, %v3267_v41 }
 0x647   : > { %6211 = vmatpush1.bf16.msra.mxu1 %v6210_v7 }
 0x648   : > { %6213 = vmatprep.subr.bf16.mxu1 %v6212_v59 }
 0x64a   : > { %3360 = vmatmul.mubr.f32.vlgmr.msra.gmra.mrb[8].mxu1 %v3064_v21  ;;  %v3274_v9 = vpop.permute.xlu0 %3273 }
 0x64b   : > { %5470 = vmatprep.mubr.msk.f32.mxu1 %vm3142_vm11, %v3067_v56  ;;  %6215 = vmatpush3.bf16.msra.mxu1 %v6214_v58 }
 0x64c   : > { %6217 = vmatprep.subr.bf16.mxu1 %v6216_v38 }
 0x64e   : > { %3366 = vmatmul.mubr.f32.gmra.mrb[10].mxu1 %v3066_v62  ;;  %v3284_v57 = vpop.permute.xlu0 %3283 }
 0x64f   : > { %5471 = vmatprep.mubr.msk.f32.mxu1 %vm3142_vm11, %v3069_v42  ;;  %6219 = vmatpush3.bf16.msra.mxu1 %v6218_v43 }
 0x650   : > { %6221 = vmatprep.subr.bf16.mxu1 %v6220_v60 }
 0x652   : > { %3372 = vmatmul.mubr.f32.gmra.mrb[12].mxu1 %v3068_v61  ;;  %v3279_v34 = vpop.permute.xlu1 %3278 }
 0x653   : > { %6223 = vmatpush3.bf16.msra.mxu1 %v6222_v27  ;;  %v3509_v27 = vld [vmem:[%s9231_s8 + $0x8] sm:$0xff] }
 0x654   : > { %6225 = vmatprep.subr.bf16.mxu1 %v6224_v26  ;;  %v3508_v26 = vld [vmem:[%s9231_s8] sm:$0xff] }
 0x657   : > { %6227 = vmatpush3.bf16.msra.mxu1 %v6226_v50 }
 0x658   : > { %6229 = vmatprep.subr.bf16.mxu1 %v6228_v6  ;;  %v8621_v6 = vsel %vm3524_vm12, 1.0, %v6989_v0  ;;  %vm3618_vm12 = vcmask 465920  }
 0x65b   : > { %6231 = vmatpush3.bf16.msra.mxu1 %v6230_v11 }
 0x65c   : > { %6233 = vmatprep.subr.bf16.mxu1 %v6232_v5 }
 0x65f   : > { %6235 = vmatpush3.bf16.msra.mxu1 %v6234_v45 }
 0x660   : > { %6237 = vmatprep.subr.bf16.mxu1 %v6236_v13 }
 0x663   : > { %6239 = vmatpush3.bf16.msra.mxu1 %v6238_v30 }
 0x664   : > { %6241 = vmatprep.subr.bf16.mxu1 %v6240_v10 }
 0x667   : > { %6243 = vmatpush3.bf16.msra.mxu1 %v6242_v3 }
 0x668   : > { %6244 = vmatprep.subr.bf16.mxu1 %v7006_v52 }
 0x71d   : > { %v3361_v8 = vpop.f32.mrb[8].mxu1 }
 0x71e   : > { %v3362_v25 = vadd.f32 %v3361_v8, %v3274_v9  ;;  %v3363_v14 = vpop.f32.mrb[9].mxu1 }
 0x71f   : > { %v3364_v22 = vadd.f32 %v3363_v14, %v3274_v9 }
 0x720   : > { %v3378_v41 = vmax.f32 %v3362_v25, 0.0 }
 0x721   : > { %v3379_v2 = vmax.f32 %v3364_v22, 0.0  ;;  %v3367_v48 = vpop.f32.mrb[10].mxu1 }
 0x722   : > { %v3368_v4 = vadd.f32 %v3367_v48, %v3279_v34  ;;  %v3369_v59 = vpop.f32.mrb[11].mxu1 }
 0x723   : > { %v3370_v44 = vadd.f32 %v3369_v59, %v3279_v34  ;;  %3480 = vmatprep.mubr.f32.mxu1 %v3379_v2 }
 0x724   : > { %3481 = vmatmul.mubr.f32.vlgmr.msra.gmra.mrb[14].mxu1 %v3378_v41  ;;  %v3380_v31 = vmax.f32 %v3368_v4, 0.0 }
 0x725   : > { %v3381_v7 = vmax.f32 %v3370_v44, 0.0  ;;  %v3373_v28 = vpop.f32.mrb[12].mxu1 }
 0x726   : > { %v3374_v21 = vadd.f32 %v3373_v28, %v3284_v57  ;;  %v3375_v58 = vpop.f32.mrb[13].mxu1 }
 0x727   : > { %v3376_v56 = vadd.f32 %v3375_v58, %v3284_v57  ;;  %3485 = vmatprep.mubr.f32.mxu1 %v3381_v7 }
 0x728   : > { %3486 = vmatmul.mubr.f32.gmra.mrb[16].mxu1 %v3380_v31  ;;  %v3382_v36 = vmax.f32 %v3374_v21, 0.0 }
 0x729   : > { %v3383_v38 = vmax.f32 %v3376_v56, 0.0 }
 0x72b   : > { %3490 = vmatprep.mubr.f32.mxu1 %v3383_v38 }
 0x72c   : > { %3491 = vmatmul.mubr.f32.gmra.mrb[18].mxu1 %v3382_v36 }
 0x72d   : > { %5483 = vmatprep.mubr.msk.f32.mxu1 %vm3674_vm15, %v3501_v53 }
 0x7f7   : > { %v5592_v46 = vpop.f32.mrb[14].mxu1 }
 0x7f8   : > { %v5593_v24 = vpop.f32.mrb[15].mxu1 }
 0x7f9   : > { %v8564_v62 = vadd.f32 %v5593_v24, %v5592_v46 }
 0x7fb   : > { %v5595_v43 = vpop.f32.mrb[16].mxu1  ;;  %3533 = vrot.lane.b32.xlu1 %v8564_v62, %s7007_s7  ;;  %3497 = vst.msk [vmem:[%s832_s13] sm:$0xff] %vm3496_vm14, %v8564_v62 }
 0x7fc   : > { %v5596_v42 = vpop.f32.mrb[17].mxu1 }
 0x7fd   : > { %v8569_v60 = vadd.f32 %v5596_v42, %v5595_v43 }
 0x7ff   : > { %v5598_v20 = vpop.f32.mrb[18].mxu1  ;;  %3535 = vrot.lane.b32.xlu0 %v8569_v60, %s7007_s7  ;;  %v6655_v12 = vpack.i.bf16 %v8569_v60, %v8564_v62  ;;  %v6265_v23 = vpack.c.bf16 %v8569_v60, %v8564_v62  ;;  %3498 = vst.msk [vmem:[%s832_s13 + $0x8] sm:$0xff] %vm3496_vm14, %v8569_v60 }
 0x800   : > { %v5599_v63 = vpop.f32.mrb[19].mxu1 }
 0x801   : > { %v8578_v61 = vadd.f32 %v5599_v63, %v5598_v20 }
 0x803   : > { %6656 = vrot.lane.b32.xlu0 %v6655_v12, %s7008_s2  ;;  %3537 = vrot.lane.b32.xlu1 %v8578_v61, %s7007_s7  ;;  %3499 = vst.msk [vmem:[%s832_s13 + $0x10] sm:$0xff] %vm3496_vm14, %v8578_v61  ;;  %s7019_s13 = smov 2  }
 0x807   : > { %3562 = vrot.lane.b32.xlu0 %v8564_v62, %s7009_s6  ;;  %3553 = vrot.lane.b32.xlu1 %v8578_v61, %s7008_s2  ;;  %s9375_s2 = sld [smem:[#allocation29_spill]] }
 0x80b   : > { %3566 = vrot.lane.b32.xlu0 %v8578_v61, %s7009_s6  ;;  %3564 = vrot.lane.b32.xlu1 %v8569_v60, %s7009_s6 }
 0x80f   : > { %3580 = vrot.lane.b32.xlu0 %v8569_v60, %s6990_s11  ;;  %3578 = vrot.lane.b32.xlu1 %v8564_v62, %s6990_s11 }
 0x813   : > { %3593 = vrot.lane.b32.xlu0 %v8564_v62, %s6992_s26  ;;  %3582 = vrot.lane.b32.xlu1 %v8578_v61, %s6990_s11 }
 0x817   : > { %3597 = vrot.lane.b32.xlu0 %v8578_v61, %s6992_s26  ;;  %3595 = vrot.lane.b32.xlu1 %v8569_v60, %s6992_s26 }
 0x81b   : > { %3611 = vrot.lane.b32.xlu0 %v8569_v60, %s7010_s25  ;;  %3609 = vrot.lane.b32.xlu1 %v8564_v62, %s7010_s25 }
 0x81f   : > { %6661 = vrot.lane.b32.xlu0 %v6655_v12, %s7011_s24  ;;  %3613 = vrot.lane.b32.xlu1 %v8578_v61, %s7010_s25  ;;  %s9376_s25 = sld [smem:[#allocation30_spill]] }
 0x823   : > { %3638 = vrot.lane.b32.xlu0 %v8564_v62, %s7012_s12  ;;  %3629 = vrot.lane.b32.xlu1 %v8578_v61, %s7011_s24  ;;  %s837_s24 = scalar_lea.vmem %s9243_s20, %s7384_s3  ;;  %s7014_s3 = smov 125  }
 0x827   : > { %3642 = vrot.lane.b32.xlu0 %v8578_v61, %s7012_s12  ;;  %3640 = vrot.lane.b32.xlu1 %v8569_v60, %s7012_s12  ;;  %s7013_s12 = smov 5  }
 0x82b   : > { %3661 = vperm.xlu0 %6634, %v3509_v27   ;;  %3656 = vperm.xlu1 %6598, %v3508_v26  }
 0x82f   : > { %3671 = vperm.xlu0 %6634, %v3511_v47   ;;  %3666 = vperm.xlu1 %6598, %v3510_v35  }
 0x86d   : > { %v3534_v50 = vpop.permute.xlu1 %3533 }
 0x86e   : > { %v3543_v55 = vsel %vm3542_vm9, 0.0, %v3534_v50 }
 0x86f   : > { %v3546_v54 = vmul.f32 %v8621_v6, %v3543_v55 }
 0x871   : > { %v3536_v51 = vpop.permute.xlu0 %3535 }
 0x872   : > { %v3544_v15 = vsel %vm3542_vm9, 0.0, %v3536_v51 }
 0x873   : > { %v3547_v11 = vmul.f32 %v8621_v6, %v3544_v15 }
 0x875   : > { %v6245_v5 = vpack.c.bf16 %v3547_v11, %v3546_v54  ;;  %v6657_v39 = vpop.permute.xlu0 %6656  ;;  %v3538_v19 = vpop.permute.xlu1 %3537 }
 0x876   : > { %v6658_v29 = vunpack.i.l.bf16 %v6657_v39  ;;  %v3545_v45 = vsel %vm3542_vm9, 0.0, %v3538_v19  ;;  %v6659_v16 = vunpack.i.h.bf16 %v6657_v39  ;;  %vm3634_vm9 = vcmask 457728  }
 0x877   : > { %v3548_v13 = vmul.f32 %v8621_v6, %v3545_v45  ;;  %6246 = vmatpush1.bf16.msra.mxu1 %v6245_v5  ;;  %vm6278_vm13 = vmpackc.low %vm3634_vm9, %vm9349_vm8 }
 0x878   : > { %6247 = vmatprep.subr.bf16.mxu1 %v7006_v52 }
 0x879   : > { %v6248_v1 = vpack.c.bf16 %v6658_v29, %v3548_v13  ;;  %v3563_v33 = vpop.permute.xlu0 %3562  ;;  %v3554_v30 = vpop.permute.xlu1 %3553 }
 0x87a   : > { %v3572_v10 = vsel %vm3571_vm6, 0.0, %v3563_v33  ;;  %v6252_v40 = vpack.c.bf16 %v3554_v30, %v6659_v16  ;;  %v3777_v33 = vld [vmem:[%s9238_s15 + $0x8] sm:$0xff]  ;;  %v3778_v16 = vld [vmem:[%s9238_s15 + $0x10] sm:$0xff] }
 0x87b   : > { %6250 = vmatpush1.bf16.msk.msra.mxu1 %vm6249_vm4, %v6248_v1  ;;  %v3575_v8 = vmul.f32 %v8635_v32, %v3572_v10  ;;  %vm6282_vm4 = vmpackc.low %vm3634_vm9, %vm3634_vm9  ;;  %v3776_v1 = vld [vmem:[%s9238_s15] sm:$0xff]  ;;  %v3779_v10 = vld [vmem:[%s9238_s15 + $0x18] sm:$0xff] }
 0x87c   : > { %6251 = vmatprep.subr.bf16.mxu1 %v7006_v52 }
 0x87d   : > { %v3567_v49 = vpop.permute.xlu0 %3566  ;;  %v3565_v3 = vpop.permute.xlu1 %3564 }
 0x87e   : > { %v3573_v9 = vsel %vm3571_vm6, 0.0, %v3565_v3  ;;  %v3574_v14 = vsel %vm3571_vm6, 0.0, %v3567_v49  ;;  %v3500_v3 = vld [vmem:[#allocation7] sm:$0xff]  ;;  %vm8790_vm6 = vmneg %vm3964_vm7 }
 0x87f   : > { %v3576_v25 = vmul.f32 %v8635_v32, %v3573_v9  ;;  %6254 = vmatpush1.bf16.msk.msra.mxu1 %vm6253_vm0, %v6252_v40  ;;  %v3577_v41 = vmul.f32 %v8635_v32, %v3574_v14  ;;  %v6287_v40 = vpack.c.bf16 %v3777_v33, %v3776_v1  ;;  %v3503_v9 = vld [vmem:[#allocation7 + $0x18] sm:$0xff]  ;;  %v3505_v14 = vld [vmem:[#allocation7 + $0x28] sm:$0xff]  ;;  %vm4042_vm0 = vcmask 105472  }
 0x880   : > { %6255 = vmatprep.subr.bf16.mxu1 %v7006_v52 }
 0x881   : > { %v6256_v22 = vpack.c.bf16 %v3576_v25, %v3575_v8  ;;  %v3581_v34 = vpop.permute.xlu0 %3580  ;;  %v3579_v2 = vpop.permute.xlu1 %3578  ;;  %v6291_v8 = vpack.c.bf16 %v3779_v10, %v3778_v16  ;;  %v3502_v25 = vld [vmem:[#allocation7 + $0x10] sm:$0xff] }
 0x882   : > { %v3587_v48 = vsel %vm1139_vm1, 0.0, %v3579_v2  ;;  %v3588_v59 = vsel %vm1139_vm1, 0.0, %v3581_v34  ;;  %v3507_v34 = vld [vmem:[#allocation7 + $0x38] sm:$0xff] }
 0x883   : > { %v3590_v4 = vmul.f32 %v8621_v6, %v3587_v48  ;;  %6257 = vmatpush1.bf16.msra.mxu1 %v6256_v22  ;;  %v3591_v31 = vmul.f32 %v8621_v6, %v3588_v59  ;;  %v3504_v22 = vld [vmem:[#allocation7 + $0x20] sm:$0xff]  ;;  %v3780_v2 = vld [vmem:[%s9238_s15 + $0x20] sm:$0xff]  ;;  %v3783_v59 = vld [vmem:[%s9238_s15 + $0x38] sm:$0xff] }
 0x884   : > { %6258 = vmatprep.subr.bf16.mxu1 %v7006_v52  ;;  %v3781_v48 = vld [vmem:[%s9238_s15 + $0x28] sm:$0xff] }
 0x885   : > { %v6259_v44 = vpack.c.bf16 %v3590_v4, %v3577_v41  ;;  %v3594_v57 = vpop.permute.xlu0 %3593  ;;  %v3583_v7 = vpop.permute.xlu1 %3582  ;;  %v6295_v41 = vpack.c.bf16 %v3781_v48, %v3780_v2  ;;  %v3782_v4 = vld [vmem:[%s9238_s15 + $0x30] sm:$0xff] }
 0x886   : > { %v3589_v28 = vsel %vm1139_vm1, 0.0, %v3583_v7  ;;  %v3603_v36 = vsel %vm3602_vm3, %v3594_v57, 0.0 }
 0x887   : > { %v3592_v21 = vmul.f32 %v8621_v6, %v3589_v28  ;;  %6260 = vmatpush1.bf16.msra.mxu1 %v6259_v44  ;;  %v3606_v46 = vmul.f32 %v8635_v32, %v3603_v36  ;;  %v6299_v44 = vpack.c.bf16 %v3783_v59, %v3782_v4 }
 0x888   : > { %6261 = vmatprep.subr.bf16.mxu1 %v7006_v52 }
 0x889   : > { %v6262_v58 = vpack.c.bf16 %v3592_v21, %v3591_v31  ;;  %v3598_v56 = vpop.permute.xlu0 %3597  ;;  %v3596_v38 = vpop.permute.xlu1 %3595  ;;  %v6268_v12 = vpack.c.bf16 %v3606_v46, %v8578_v61 }
 0x88a   : > { %v3605_v43 = vsel %vm3602_vm3, %v3598_v56, 0.0  ;;  %v3604_v42 = vsel %vm3602_vm3, %v3596_v38, 0.0  ;;  %vm3981_vm3 = vcmask 23552  }
 0x88b   : > { %6263 = vmatpush1.bf16.msra.mxu1 %v6262_v58  ;;  %v3608_v63 = vmul.f32 %v8635_v32, %v3605_v43  ;;  %v3607_v27 = vmul.f32 %v8635_v32, %v3604_v42 }
 0x88c   : > { %6264 = vmatprep.subr.bf16.mxu1 %v7006_v52 }
 0x88d   : > { %v3610_v24 = vpop.permute.xlu1 %3609  ;;  %v3612_v20 = vpop.permute.xlu0 %3611  ;;  %v6271_v35 = vpack.c.bf16 %v3608_v63, %v3607_v27 }
 0x88e   : > { %v3620_v53 = vsel %vm3618_vm12, %v3612_v20, 0.0  ;;  %v3619_v47 = vsel %vm3618_vm12, %v3610_v24, 0.0 }
 0x88f   : > { %6266 = vmatpush1.bf16.msra.mxu1 %v6265_v23  ;;  %v3623_v62 = vmul.f32 %v8621_v6, %v3620_v53  ;;  %v3622_v60 = vmul.f32 %v8621_v6, %v3619_v47 }
 0x890   : > { %6267 = vmatprep.subr.bf16.mxu1 %v7006_v52 }
 0x891   : > { %v3614_v26 = vpop.permute.xlu1 %3613  ;;  %v6662_v18 = vpop.permute.xlu0 %6661  ;;  %v6274_v50 = vpack.c.bf16 %v3623_v62, %v3622_v60 }
 0x892   : > { %v3621_v61 = vsel %vm3618_vm12, %v3614_v26, 0.0  ;;  %v6663_v55 = vunpack.i.l.bf16 %v6662_v18  ;;  %v6664_v39 = vunpack.i.h.bf16 %v6662_v18  ;;  %vm4063_vm12 = vcmask 97280  }
 0x893   : > { %6269 = vmatpush1.bf16.msra.mxu1 %v6268_v12  ;;  %v3624_v51 = vmul.f32 %v8621_v6, %v3621_v61  ;;  %vm8829_vm9 = vmpackc.low %vm4063_vm12, %vm4063_vm12 }
 0x894   : > { %6270 = vmatprep.subr.bf16.mxu1 %v7006_v52 }
 0x895   : > { %v3630_v23 = vpop.permute.xlu1 %3629  ;;  %v6277_v54 = vpack.c.bf16 %v6663_v55, %v3624_v51  ;;  %v3639_v11 = vpop.permute.xlu0 %3638  ;;  %v3886_v51 = vld [vmem:[#allocation9 + $0x8] sm:$0xff] }
 0x896   : > { %v3648_v19 = vsel %vm3647_vm2, %v3639_v11, 0.0  ;;  %v6281_v6 = vpack.c.bf16 %v3630_v23, %v6664_v39  ;;  %v3906_v11 = vld [vmem:[%s9233_s10 + $0x18] sm:$0xff]  ;;  %v3908_v39 = vld [vmem:[%s9233_s10 + $0x28] sm:$0xff] }
 0x897   : > { %6272 = vmatpush1.bf16.msra.mxu1 %v6271_v35  ;;  %v3651_v29 = vmul.f32 %v8635_v32, %v3648_v19  ;;  %v3907_v19 = vld [vmem:[%s9233_s10 + $0x20] sm:$0xff] }
 0x898   : > { %6273 = vmatprep.subr.bf16.mxu1 %v7006_v52 }
 0x899   : > { %v3641_v15 = vpop.permute.xlu1 %3640  ;;  %v3643_v45 = vpop.permute.xlu0 %3642 }
 0x89a   : > { %v3649_v5 = vsel %vm3647_vm2, %v3641_v15, 0.0  ;;  %v3650_v30 = vsel %vm3647_vm2, %v3643_v45, 0.0  ;;  %v3904_v15 = vld [vmem:[%s9233_s10 + $0x8] sm:$0xff]  ;;  %vm9369_vm2 = vcmask 261120  }
 0x89b   : > { %6275 = vmatpush1.bf16.msra.mxu1 %v6274_v50  ;;  %v3652_v37 = vmul.f32 %v8635_v32, %v3649_v5  ;;  %v3653_v49 = vmul.f32 %v8635_v32, %v3650_v30  ;;  %v3506_v32 = vld [vmem:[#allocation7 + $0x30] sm:$0xff]  ;;  %v3905_v5 = vld [vmem:[%s9233_s10 + $0x10] sm:$0xff] }
 0x89c   : > { %6276 = vmatprep.subr.bf16.mxu1 %v7006_v52 }
 0x89d   : > { %v6285_v13 = vpack.c.bf16 %v3652_v37, %v3651_v29 }
 0x89f   : > { %6279 = vmatpush1.bf16.msk.msra.mxu1 %vm6278_vm13, %v6277_v54  ;;  %v3903_v54 = vld [vmem:[%s9233_s10] sm:$0xff]  ;;  %vm4080_vm13 = vcmask 89088  }
 0x8a0   : > { %6280 = vmatprep.subr.bf16.mxu1 %v7006_v52 }
 0x8a3   : > { %6283 = vmatpush1.bf16.msk.msra.mxu1 %vm6282_vm4, %v6281_v6  ;;  %v3913_v6 = vand.u32 3, %v7500_v17  ;;  %vm9370_vm4 = vmmov %vm9369_vm2 }
 0x8a4   : > { %6284 = vmatprep.subr.bf16.mxu1 %v7006_v52 }
 0x8a5   : > { %vm3921_vm8 = vcmp.ne.s32.totalorder %v3913_v6, 0 }
 0x8a6   : > { %v8770_v37 = vsel %vm3921_vm8, 1.0, %v6989_v0  ;;  %vm9371_vm8 = vmmov %vm9369_vm2 }
 0x8a7   : > { %6286 = vmatpush1.bf16.msra.mxu1 %v6285_v13 }
 0x8a8   : > { %3739 = vmatprep.subr.mxu1 %v6989_v0 }
 0x8aa   : > { %v3657_v57 = vpop.permute.xlu1 %3656  ;;  %v3662_v58 = vpop.permute.xlu0 %3661 }
 0x8ab   : > { %3740 = vmatpush1.msra.mxu1 %v3653_v49 }
 0x8ac   : > { %3752 = vmatmul.mubr.f32.vlgmr.msra.gmra.mrb[20].mxu1 %v3500_v3  ;;  %6288 = vmatprep.subr.bf16.mxu1 %v6287_v40 }
 0x8ad   : > { %5484 = vmatprep.mubr.msk.f32.mxu1 %vm3674_vm15, %v3503_v9  ;;  %6290 = vmatpush3.bf16.msra.mxu1 %v6287_v40 }
 0x8ae   : > { %6292 = vmatprep.subr.bf16.mxu1 %v6291_v8  ;;  %v3667_v24 = vpop.permute.xlu1 %3666  ;;  %v3672_v63 = vpop.permute.xlu0 %3671 }
 0x8b0   : > { %3757 = vmatmul.mubr.f32.gmra.mrb[22].mxu1 %v3502_v25 }
 0x8b1   : > { %5485 = vmatprep.mubr.msk.f32.mxu1 %vm3674_vm15, %v3505_v14  ;;  %6294 = vmatpush3.bf16.msra.mxu1 %v6291_v8 }
 0x8b2   : > { %6296 = vmatprep.subr.bf16.mxu1 %v6295_v41 }
 0x8b4   : > { %3762 = vmatmul.mubr.f32.gmra.mrb[24].mxu1 %v3504_v22 }
 0x8b5   : > { %5486 = vmatprep.mubr.msk.f32.mxu1 %vm3674_vm15, %v3507_v34  ;;  %6298 = vmatpush3.bf16.msra.mxu1 %v6295_v41  ;;  %vm3924_vm15 = vcmp.ne.s32.totalorder %v3913_v6, 3 }
 0x8b6   : > { %6300 = vmatprep.subr.bf16.mxu1 %v6299_v44  ;;  %v8777_v22 = vsel %vm3924_vm15, 1.0, %v6989_v0  ;;  %vm9373_vm15 = vmmov %vm9369_vm2 }
 0x8b8   : > { %3767 = vmatmul.mubr.f32.gmra.mrb[26].mxu1 %v3506_v32 }
 0x8b9   : > { %6302 = vmatpush3.bf16.msra.mxu1 %v6299_v44 }
 0x97f   : > { %v3753_v7 = vpop.f32.mrb[20].mxu1 }
 0x980   : > { %v3754_v28 = vadd.f32 %v3753_v7, %v3657_v57  ;;  %v3755_v31 = vpop.f32.mrb[21].mxu1 }
 0x982   : > { %v3772_v21 = vmax.f32 %v3754_v28, 0.0 }
 0x983   : > { %v3758_v56 = vpop.f32.mrb[22].mxu1 }
 0x984   : > { %v3759_v38 = vadd.f32 %v3758_v56, %v3662_v58  ;;  %v3760_v36 = vpop.f32.mrb[23].mxu1  ;;  %5762 = vmatprep.mubr.msk.f32.mxu1 %vm3496_vm14, %v3772_v21 }
 0x986   : > { %v3773_v46 = vmax.f32 %v3759_v38, 0.0 }
 0x987   : > { %v3763_v43 = vpop.f32.mrb[24].mxu1 }
 0x988   : > { %v3764_v42 = vadd.f32 %v3763_v43, %v3667_v24  ;;  %5763 = vmatmul.mubr.msk.f32.vlgmr.msra.gmra.mrb[28].mxu1 %vm3496_vm14, %v3773_v46  ;;  %v3765_v20 = vpop.f32.mrb[25].mxu1 }
 0x98a   : > { %v3774_v12 = vmax.f32 %v3764_v42, 0.0 }
 0x98b   : > { %v3768_v27 = vpop.f32.mrb[26].mxu1 }
 0x98c   : > { %v3769_v26 = vadd.f32 %v3768_v27, %v3672_v63  ;;  %5765 = vmatprep.mubr.msk.f32.mxu1 %vm3496_vm14, %v3774_v12  ;;  %v3770_v53 = vpop.f32.mrb[27].mxu1 }
 0x98e   : > { %v3775_v47 = vmax.f32 %v3769_v26, 0.0 }
 0x990   : > { %5766 = vmatmul.mubr.msk.f32.gmra.mrb[30].mxu1 %vm3496_vm14, %v3775_v47  ;;  %vm3943_vm14 = vcmask 39936  }
 0x991   : > { %4201 = vmatprep.mubr.f32.mxu1 %v3886_v51 }
 0xa5b   : > { %v5764_v35 = vpop.f32.mrb[28].mxu1 }
 0xa5c   : > { %3882 = vst.msk [vmem:[%s837_s24 + $0x8] sm:$0xff] %vm3142_vm11, %v5764_v35  ;;  %3933 = vrot.lane.b32.xlu0 %v5764_v35, %s7013_s12  ;;  %v3862_v62 = vpop.f32.mrb[29].mxu1 }
 0xa5d   : > { %3881 = vst.msk [vmem:[%s837_s24] sm:$0xff] %vm3142_vm11, %v3862_v62  ;;  %3931 = vrot.lane.b32.xlu1 %v3862_v62, %s7013_s12  ;;  %v6303_v60 = vpack.c.bf16 %v5764_v35, %v3862_v62  ;;  %v6665_v23 = vpack.i.bf16 %v5764_v35, %v3862_v62 }
 0xa5f   : > { %6304 = vmatprep.subr.bf16.mxu1 %v6303_v60 }
 0xa60   : > { %4012 = vrot.lane.b32.xlu0 %v5764_v35, %s6992_s26 }
 0xa61   : > { %4010 = vrot.lane.b32.xlu1 %v3862_v62, %s6992_s26 }
 0xa63   : > { %v8723_v18 = vpop.f32.mrb[30].mxu1 }
 0xa64   : > { %3884 = vst.msk [vmem:[%s837_s24 + $0x18] sm:$0xff] %vm3142_vm11, %v8723_v18  ;;  %4032 = vrot.lane.b32.xlu0 %v5764_v35, %s7014_s3  ;;  %v3872_v61 = vpop.f32.mrb[31].mxu1 }
 0xa65   : > { %3883 = vst.msk [vmem:[%s837_s24 + $0x10] sm:$0xff] %vm3142_vm11, %v3872_v61  ;;  %6666 = vrot.lane.b32.xlu1 %v6665_v23, %s7015_s22  ;;  %v6670_v50 = vpack.i.bf16 %v8723_v18, %v3872_v61  ;;  %v6307_v55 = vpack.c.bf16 %v8723_v18, %v3872_v61 }
 0xa68   : > { %3937 = vrot.lane.b32.xlu0 %v8723_v18, %s7013_s12 }
 0xa69   : > { %4030 = vrot.lane.b32.xlu1 %v3862_v62, %s7014_s3 }
 0xa6c   : > { %3971 = vrot.lane.b32.xlu0 %v5764_v35, %s7016_s4 }
 0xa6d   : > { %4016 = vrot.lane.b32.xlu1 %v8723_v18, %s6992_s26 }
 0xa70   : > { %4036 = vrot.lane.b32.xlu0 %v8723_v18, %s7014_s3 }
 0xa71   : > { %3935 = vrot.lane.b32.xlu1 %v3872_v61, %s7013_s12 }
 0xa74   : > { %4014 = vrot.lane.b32.xlu0 %v3872_v61, %s6992_s26 }
 0xa75   : > { %3969 = vrot.lane.b32.xlu1 %v3862_v62, %s7016_s4 }
 0xa78   : > { %6671 = vrot.lane.b32.xlu0 %v6670_v50, %s7015_s22 }
 0xa79   : > { %3990 = vrot.lane.b32.xlu1 %v3862_v62, %s6990_s11 }
 0xa7c   : > { %3975 = vrot.lane.b32.xlu0 %v8723_v18, %s7016_s4 }
 0xa7d   : > { %4034 = vrot.lane.b32.xlu1 %v3872_v61, %s7014_s3 }
 0xa80   : > { %3992 = vrot.lane.b32.xlu0 %v5764_v35, %s6990_s11 }
 0xa81   : > { %3973 = vrot.lane.b32.xlu1 %v3872_v61, %s7016_s4 }
 0xa84   : > { %3994 = vrot.lane.b32.xlu0 %v3872_v61, %s6990_s11 }
 0xa85   : > { %6676 = vrot.lane.b32.xlu1 %v6665_v23, %s7017_s0 }
 0xa88   : > { %6681 = vrot.lane.b32.xlu0 %v6670_v50, %s7017_s0  ;;  %s9381_s0 = sld [smem:[#allocation32_spill]] }
 0xa89   : > { %3996 = vrot.lane.b32.xlu1 %v8723_v18, %s6990_s11 }
 0xa8c   : > { %4070 = vrot.lane.b32.xlu0 %v5764_v35, %s7018_s1 }
 0xa8d   : > { %4068 = vrot.lane.b32.xlu1 %v3862_v62, %s7018_s1 }
 0xa90   : > { %4074 = vrot.lane.b32.xlu0 %v8723_v18, %s7018_s1 }
 0xa91   : > { %4072 = vrot.lane.b32.xlu1 %v3872_v61, %s7018_s1  ;;  %s6435_s1 = smul.u32 48, %s9385_s30 }
 0xa93   : > { %s842_s5 = scalar_lea.vmem %s9244_s21, %s6435_s1  ;;  %s5559_s1 = sshll.u32 %s9385_s30, 6 }
 0xa94   : > { %4096 = vperm.xlu0 %6634, %v3904_v15  }
 0xa95   : > { %4091 = vperm.xlu1 %6598, %v3903_v54  }
 0xa98   : > { %4106 = vperm.xlu0 %6634, %v3906_v11  }
 0xa99   : > { %4101 = vperm.xlu1 %6598, %v3905_v5  }
 0xa9c   : > { %4116 = vperm.xlu0 %6634, %v3908_v39  }
 0xa9d   : > { %4111 = vperm.xlu1 %6598, %v3907_v19  }
 0xace   : > { %v3934_v29 = vpop.permute.xlu0 %3933 }
 0xacf   : > { %v3945_v45 = vsel %vm3943_vm14, 0.0, %v3934_v29  ;;  %v3932_v13 = vpop.permute.xlu1 %3931 }
 0xad0   : > { %v3949_v1 = vmul.f32 %v8770_v37, %v3945_v45  ;;  %v3944_v33 = vsel %vm3943_vm14, 0.0, %v3932_v13 }
 0xad1   : > { %v3948_v30 = vmul.f32 %v8770_v37, %v3944_v33 }
 0xad2   : > { %v4013_v16 = vpop.permute.xlu0 %4012 }
 0xad3   : > { %v6305_v10 = vpack.c.bf16 %v3949_v1, %v3948_v30  ;;  %v4011_v40 = vpop.permute.xlu1 %4010  ;;  %v4023_v34 = vsel %vm3159_vm5, %v4013_v16, 0.0 }
 0xad4   : > { %v4022_v32 = vsel %vm3159_vm5, %v4011_v40, 0.0  ;;  %v4027_v4 = vmul.f32 %v8777_v22, %v4023_v34 }
 0xad5   : > { %6306 = vmatpush3.bf16.msra.mxu1 %v6305_v10  ;;  %v4026_v59 = vmul.f32 %v8777_v22, %v4022_v32 }
 0xad6   : > { %v4033_v49 = vpop.permute.xlu0 %4032  ;;  %6308 = vmatprep.subr.bf16.mxu1 %v6307_v55 }
 0xad7   : > { %v6667_v3 = vpop.permute.xlu1 %6666  ;;  %v6311_v24 = vpack.c.bf16 %v4027_v4, %v4026_v59  ;;  %v4044_v63 = vsel %vm4042_vm0, %v4033_v49, 0.0 }
 0xad8   : > { %v6669_v28 = vunpack.i.h.bf16 %v6667_v3  ;;  %v6668_v21 = vunpack.i.l.bf16 %v6667_v3  ;;  %v4048_v23 = vmul.f32 %v8770_v37, %v4044_v63 }
 0xada   : > { %v3938_v9 = vpop.permute.xlu0 %3937  ;;  %v6313_v27 = vpack.c.bf16 %v6669_v28, %v6668_v21 }
 0xadb   : > { %v4031_v8 = vpop.permute.xlu1 %4030  ;;  %v3947_v2 = vsel %vm3943_vm14, 0.0, %v3938_v9 }
 0xadc   : > { %v3951_v57 = vmul.f32 %v8770_v37, %v3947_v2  ;;  %v4043_v42 = vsel %vm4042_vm0, %v4031_v8, 0.0 }
 0xadd   : > { %v4047_v35 = vmul.f32 %v8770_v37, %v4043_v42  ;;  %v3885_v42 = vld [vmem:[#allocation9] sm:$0xff] }
 0xade   : > { %v3972_v25 = vpop.permute.xlu0 %3971 }
 0xadf   : > { %v4017_v14 = vpop.permute.xlu1 %4016  ;;  %v3983_v18 = vsel %vm3981_vm3, 0.0, %v3972_v25  ;;  %v6321_v54 = vpack.c.bf16 %v4048_v23, %v4047_v35  ;;  %v3888_v35 = vld [vmem:[#allocation9 + $0x18] sm:$0xff]  ;;  %v3891_v23 = vld [vmem:[#allocation9 + $0x30] sm:$0xff] }
 0xae0   : > { %v4025_v58 = vsel %vm3159_vm5, %v4017_v14, 0.0  ;;  %v3987_v5 = vmul.f32 %v8777_v22, %v3983_v18  ;;  %v3895_v18 = vld [vmem:[#allocation9 + $0x50] sm:$0xff] }
 0xae1   : > { %v4029_v20 = vmul.f32 %v8777_v22, %v4025_v58 }
 0xae2   : > { %v4037_v48 = vpop.permute.xlu0 %4036 }
 0xae3   : > { %v3936_v41 = vpop.permute.xlu1 %3935  ;;  %v4046_v61 = vsel %vm4042_vm0, %v4037_v48, 0.0 }
 0xae4   : > { %v3946_v44 = vsel %vm3943_vm14, 0.0, %v3936_v41  ;;  %v4050_v39 = vmul.f32 %v8770_v37, %v4046_v61  ;;  %v3894_v61 = vld [vmem:[#allocation9 + $0x48] sm:$0xff]  ;;  %vm9372_vm14 = vmmov %vm9369_vm2 }
 0xae5   : > { %v3950_v7 = vmul.f32 %v8770_v37, %v3946_v44 }
 0xae6   : > { %v4015_v31 = vpop.permute.xlu0 %4014 }
 0xae7   : > { %v6309_v56 = vpack.c.bf16 %v3951_v57, %v3950_v7  ;;  %v4024_v38 = vsel %vm3159_vm5, %v4015_v31, 0.0  ;;  %v3970_v36 = vpop.permute.xlu1 %3969  ;;  %vm6314_vm5 = vmpackc.low %vm8790_vm6, %vm8790_vm6 }
 0xae8   : > { %v4028_v43 = vmul.f32 %v8777_v22, %v4024_v38  ;;  %v3982_v60 = vsel %vm3981_vm3, 0.0, %v3970_v36  ;;  %vm9374_vm6 = vmmov %vm9369_vm2 }
 0xae9   : > { %6310 = vmatpush3.bf16.msra.mxu1 %v6309_v56  ;;  %v3986_v55 = vmul.f32 %v8777_v22, %v3982_v60 }
 0xaea   : > { %v6672_v12 = vpop.permute.xlu0 %6671  ;;  %6312 = vmatprep.subr.bf16.mxu1 %v6311_v24  ;;  %v6316_v62 = vpack.c.bf16 %v4029_v20, %v4028_v43 }
 0xaeb   : > { %v6674_v26 = vunpack.i.h.bf16 %v6672_v12  ;;  %v6673_v53 = vunpack.i.l.bf16 %v6672_v12  ;;  %v3991_v47 = vpop.permute.xlu1 %3990  ;;  %v6323_v45 = vpack.c.bf16 %v3987_v5, %v3986_v55  ;;  %v3889_v12 = vld [vmem:[#allocation9 + $0x20] sm:$0xff]  ;;  %v3896_v5 = vld [vmem:[#allocation9 + $0x58] sm:$0xff] }
 0xaec   : > { %v4002_v40 = vsel %vm1139_vm1, 0.0, %v3991_v47  ;;  %v3897_v55 = vld [vmem:[#allocation9 + $0x60] sm:$0xff] }
 0xaed   : > { %6315 = vmatpush3.bf16.msk.msra.mxu1 %vm6314_vm5, %v6313_v27  ;;  %v6318_v51 = vpack.c.bf16 %v6674_v26, %v6673_v53  ;;  %v4006_v34 = vmul.f32 %v8770_v37, %v4002_v40 }
 0xaee   : > { %v3976_v50 = vpop.permute.xlu0 %3975  ;;  %6317 = vmatprep.subr.bf16.mxu1 %v6316_v62  ;;  %v3892_v62 = vld [vmem:[#allocation9 + $0x38] sm:$0xff] }
 0xaef   : > { %v4035_v15 = vpop.permute.xlu1 %4034  ;;  %v3985_v6 = vsel %vm3981_vm3, 0.0, %v3976_v50  ;;  %v3898_v50 = vld [vmem:[#allocation9 + $0x68] sm:$0xff] }
 0xaf0   : > { %v4045_v11 = vsel %vm4042_vm0, %v4035_v15, 0.0  ;;  %v3989_v16 = vmul.f32 %v8777_v22, %v3985_v6  ;;  %v3887_v15 = vld [vmem:[#allocation9 + $0x10] sm:$0xff] }
 0xaf1   : > { %v4049_v19 = vmul.f32 %v8770_v37, %v4045_v11  ;;  %6320 = vmatpush3.bf16.msk.msra.mxu1 %vm6314_vm5, %v6318_v51  ;;  %v3900_v51 = vld [vmem:[#allocation9 + $0x78] sm:$0xff]  ;;  %v3893_v11 = vld [vmem:[#allocation9 + $0x40] sm:$0xff]  ;;  %v4333_v6 = vld [vmem:[#allocation13] sm:$0xff]  ;;  %vm4566_vm5 = vcmask 15360  }
 0xaf2   : > { %v3993_v29 = vpop.permute.xlu0 %3992  ;;  %6322 = vmatprep.subr.bf16.mxu1 %v6321_v54  ;;  %v3890_v54 = vld [vmem:[#allocation9 + $0x28] sm:$0xff]  ;;  %vm5519_vm12 = vmneg %vm4566_vm5 }
 0xaf3   : > { %v6325_v13 = vpack.c.bf16 %v4050_v39, %v4049_v19  ;;  %v3974_v1 = vpop.permute.xlu1 %3973  ;;  %v4003_v33 = vsel %vm1139_vm1, 0.0, %v3993_v29  ;;  %v3899_v39 = vld [vmem:[#allocation9 + $0x70] sm:$0xff]  ;;  %v3902_v19 = vld [vmem:[#allocation9 + $0x88] sm:$0xff]  ;;  %v4334_v29 = vld [vmem:[#allocation13 + $0x8] sm:$0xff] }
 0xaf4   : > { %v3984_v30 = vsel %vm3981_vm3, 0.0, %v3974_v1  ;;  %v4007_v3 = vmul.f32 %v8770_v37, %v4003_v33 }
 0xaf5   : > { %v3988_v10 = vmul.f32 %v8777_v22, %v3984_v30  ;;  %6324 = vmatpush3.bf16.msra.mxu1 %v6323_v45  ;;  %v6347_v45 = vpack.c.bf16 %v4334_v29, %v4333_v6 }
 0xaf6   : > { %v3995_v49 = vpop.permute.xlu0 %3994  ;;  %6326 = vmatprep.subr.bf16.mxu1 %v6325_v13  ;;  %v6332_v4 = vpack.c.bf16 %v4007_v3, %v4006_v34 }
 0xaf7   : > { %v6327_v9 = vpack.c.bf16 %v3989_v16, %v3988_v10  ;;  %v6677_v8 = vpop.permute.xlu1 %6676  ;;  %v4004_v2 = vsel %vm1139_vm1, 0.0, %v3995_v49 }
 0xaf8   : > { %v6679_v25 = vunpack.i.h.bf16 %v6677_v8  ;;  %v6678_v14 = vunpack.i.l.bf16 %v6677_v8  ;;  %v4008_v28 = vmul.f32 %v8770_v37, %v4004_v2 }
 0xaf9   : > { %6328 = vmatpush3.bf16.msra.mxu1 %v6327_v9 }
 0xafa   : > { %v6329_v48 = vpack.c.bf16 %v6679_v25, %v6678_v14  ;;  %v6682_v41 = vpop.permute.xlu0 %6681 }
 0xafb   : > { %v6684_v59 = vunpack.i.h.bf16 %v6682_v41  ;;  %v6683_v44 = vunpack.i.l.bf16 %v6682_v41  ;;  %v3997_v57 = vpop.permute.xlu1 %3996 }
 0xafc   : > { %v4005_v7 = vsel %vm1139_vm1, 0.0, %v3997_v57  ;;  %6331 = vmatprep.subr.msk.bf16.mxu1 %vm8829_vm9, %v6329_v48 }
 0xafd   : > { %v6334_v31 = vpack.c.bf16 %v6684_v59, %v6683_v44  ;;  %v4009_v21 = vmul.f32 %v8770_v37, %v4005_v7  ;;  %6333 = vmatpush3.bf16.msra.mxu1 %v6332_v4 }
 0xafe   : > { %v4071_v58 = vpop.permute.xlu0 %4070 }
 0xaff   : > { %v6337_v56 = vpack.c.bf16 %v4009_v21, %v4008_v28  ;;  %v4082_v38 = vsel %vm4080_vm13, %v4071_v58, 0.0  ;;  %v4069_v36 = vpop.permute.xlu1 %4068  ;;  %6336 = vmatprep.subr.msk.bf16.mxu1 %vm8829_vm9, %v6334_v31  ;;  %vm9016_vm9 = vmpackc.low %vm5519_vm12, %vm5519_vm12 }
 0xb00   : > { %v4086_v46 = vmul.f32 %v8777_v22, %v4082_v38  ;;  %v4081_v24 = vsel %vm4080_vm13, %v4069_v36, 0.0 }
 0xb01   : > { %v4085_v43 = vmul.f32 %v8777_v22, %v4081_v24  ;;  %6338 = vmatpush3.bf16.msra.mxu1 %v6337_v56 }
 0xb02   : > { %v4075_v20 = vpop.permute.xlu0 %4074 }
 0xb03   : > { %v6339_v37 = vpack.c.bf16 %v4086_v46, %v4085_v43  ;;  %v4084_v63 = vsel %vm4080_vm13, %v4075_v20, 0.0  ;;  %v4073_v27 = vpop.permute.xlu1 %4072 }
 0xb04   : > { %v4088_v26 = vmul.f32 %v8777_v22, %v4084_v63  ;;  %v4083_v53 = vsel %vm4080_vm13, %v4073_v27, 0.0  ;;  %4202 = vmatmul.mubr.f32.vlgmr.msra.gmra.mrb[32].mxu1 %v3885_v42  ;;  %vm4739_vm13 = vcmask 392192  }
 0xb05   : > { %v4087_v47 = vmul.f32 %v8777_v22, %v4083_v53  ;;  %6340 = vmatprep.subr.bf16.mxu1 %v6339_v37  ;;  %4206 = vmatprep.mubr.f32.mxu1 %v3889_v12  ;;  %v3901_v22 = vld [vmem:[#allocation9 + $0x80] sm:$0xff] }
 0xb06   : > { %6342 = vmatpush3.bf16.msra.mxu1 %v6339_v37 }
 0xb07   : > { %v6343_v60 = vpack.c.bf16 %v4088_v26, %v4087_v47 }
 0xb08   : > { %4207 = vmatmul.mubr.f32.gmra.mrb[34].mxu1 %v3888_v35 }
 0xb09   : > { %6344 = vmatprep.subr.bf16.mxu1 %v6343_v60  ;;  %4211 = vmatprep.mubr.f32.mxu1 %v3892_v62 }
 0xb0a   : > { %6346 = vmatpush3.bf16.msra.mxu1 %v6343_v60 }
 0xb0b   : > { %6348 = vmatprep.subr.bf16.mxu1 %v6347_v45 }
 0xb0c   : > { %4212 = vmatmul.mubr.f32.gmra.mrb[36].mxu1 %v3891_v23 }
 0xb0d   : > { %4216 = vmatprep.mubr.f32.mxu1 %v3895_v18 }
 0xb10   : > { %4217 = vmatmul.mubr.f32.gmra.mrb[38].mxu1 %v3894_v61 }
 0xb11   : > { %4221 = vmatprep.mubr.f32.mxu1 %v3898_v50 }
 0xb13   : > { %v4097_v32 = vpop.permute.xlu0 %4096 }
 0xb14   : > { %4222 = vmatmul.mubr.f32.gmra.mrb[40].mxu1 %v3897_v55  ;;  %v4092_v48 = vpop.permute.xlu1 %4091 }
 0xb15   : > { %4226 = vmatprep.mubr.f32.mxu1 %v3901_v22 }
 0xb17   : > { %v4107_v57 = vpop.permute.xlu0 %4106 }
 0xb18   : > { %4227 = vmatmul.mubr.f32.gmra.mrb[42].mxu1 %v3900_v51  ;;  %v4102_v31 = vpop.permute.xlu1 %4101 }
 0xb19   : > { %5776 = vmatprep.mubr.msk.f32.mxu1 %vm9369_vm2, %v3887_v15 }
 0xb1b   : > { %v4117_v12 = vpop.permute.xlu0 %4116 }
 0xb1c   : > { %5777 = vmatmul.mubr.msk.f32.vlgmr.msra.gmra.mrb[44].mxu1 %vm9370_vm4, %v3890_v54  ;;  %v4112_v63 = vpop.permute.xlu1 %4111 }
 0xb1d   : > { %5779 = vmatprep.mubr.msk.f32.mxu1 %vm9371_vm8, %v3893_v11  ;;  %6350 = vmatpush3.bf16.msra.mxu1 %v6347_v45  ;;  %v4455_v45 = vld [vmem:[%s9375_s2 + $0x8] sm:$0xff] }
 0xb20   : > { %5780 = vmatmul.mubr.msk.f32.gmra.mrb[46].mxu1 %vm9372_vm14, %v3896_v5 }
 0xb21   : > { %5782 = vmatprep.mubr.msk.f32.mxu1 %vm9373_vm15, %v3899_v39 }
 0xb24   : > { %5783 = vmatmul.mubr.msk.f32.gmra.mrb[48].mxu1 %vm9374_vm6, %v3902_v19 }
 0xbd7   : > { %v5645_v13 = vpop.f32.mrb[32].mxu1 }
 0xbd8   : > { %v5646_v1 = vpop.f32.mrb[33].mxu1 }
 0xbd9   : > { %v5647_v33 = vadd.f32 %v5646_v1, %v5645_v13  ;;  %v4487_v13 = vld [vmem:[%s9376_s25 + $0x8] sm:$0xff]  ;;  %v4486_v1 = vld [vmem:[%s9376_s25] sm:$0xff] }
 0xbdb   : > { %v5648_v30 = vpop.f32.mrb[34].mxu1  ;;  %v4204_v28 = vadd.f32 %v5647_v33, %v4092_v48  ;;  %v4489_v33 = vld [vmem:[%s9376_s25 + $0x18] sm:$0xff] }
 0xbdc   : > { %v5649_v16 = vpop.f32.mrb[35].mxu1 }
 0xbdd   : > { %v5650_v10 = vadd.f32 %v5649_v16, %v5648_v30  ;;  %v4488_v30 = vld [vmem:[%s9376_s25 + $0x10] sm:$0xff]  ;;  %v4491_v16 = vld [vmem:[%s9376_s25 + $0x28] sm:$0xff] }
 0xbdf   : > { %v5651_v40 = vpop.f32.mrb[36].mxu1  ;;  %v4209_v44 = vadd.f32 %v5650_v10, %v4097_v32  ;;  %v4490_v10 = vld [vmem:[%s9376_s25 + $0x20] sm:$0xff] }
 0xbe0   : > { %v5652_v49 = vpop.f32.mrb[37].mxu1 }
 0xbe1   : > { %v5653_v3 = vadd.f32 %v5652_v49, %v5651_v40  ;;  %v4493_v40 = vld [vmem:[%s9376_s25 + $0x38] sm:$0xff]  ;;  %v4492_v49 = vld [vmem:[%s9376_s25 + $0x30] sm:$0xff] }
 0xbe3   : > { %v5654_v9 = vpop.f32.mrb[38].mxu1  ;;  %v4214_v24 = vadd.f32 %v5653_v3, %v4102_v31  ;;  %v4498_v3 = vand.u32 1, %v7500_v17 }
 0xbe4   : > { %v5655_v8 = vpop.f32.mrb[39].mxu1 }
 0xbe5   : > { %v5656_v25 = vadd.f32 %v5655_v8, %v5654_v9  ;;  %vm4509_vm0 = vcmp.ne.s32.totalorder %v4498_v3, 1 }
 0xbe7   : > { %v5657_v14 = vpop.f32.mrb[40].mxu1  ;;  %v4219_v38 = vadd.f32 %v5656_v25, %v4107_v57 }
 0xbe8   : > { %v5658_v34 = vpop.f32.mrb[41].mxu1 }
 0xbe9   : > { %v5659_v2 = vadd.f32 %v5658_v34, %v5657_v14 }
 0xbeb   : > { %v5660_v41 = vpop.f32.mrb[42].mxu1  ;;  %v4224_v47 = vadd.f32 %v5659_v2, %v4112_v63 }
 0xbec   : > { %v5661_v4 = vpop.f32.mrb[43].mxu1 }
 0xbed   : > { %v5662_v59 = vadd.f32 %v5661_v4, %v5660_v41  ;;  %v8989_v4 = vsel %vm4509_vm0, 1.0, %v6989_v0 }
 0xbef   : > { %v5778_v7 = vpop.f32.mrb[44].mxu1  ;;  %v4229_v27 = vadd.f32 %v5662_v59, %v4117_v12 }
 0xbf0   : > { %v4304_v21 = vadd.f32 %v5778_v7, %v4209_v44  ;;  %v4298_v58 = vpop.f32.mrb[45].mxu1 }
 0xbf1   : > { %v4299_v56 = vadd.f32 %v4298_v58, %v4204_v28 }
 0xbf2   : > { %v4328_v43 = vmax.f32 %v4304_v21, 0.0 }
 0xbf3   : > { %v4327_v36 = vmax.f32 %v4299_v56, 0.0  ;;  %v5781_v46 = vpop.f32.mrb[46].mxu1 }
 0xbf4   : > { %v4314_v42 = vadd.f32 %v5781_v46, %v4219_v38  ;;  %v4308_v20 = vpop.f32.mrb[47].mxu1 }
 0xbf5   : > { %v4309_v37 = vadd.f32 %v4308_v20, %v4214_v24  ;;  %5789 = vmatprep.mubr.msk.f32.mxu1 %vm3142_vm11, %v4327_v36 }
 0xbf6   : > { %5790 = vmatmul.mubr.msk.f32.vlgmr.msra.gmra.mrb[50].mxu1 %vm3142_vm11, %v4328_v43  ;;  %v4330_v35 = vmax.f32 %v4314_v42, 0.0 }
 0xbf7   : > { %v4329_v26 = vmax.f32 %v4309_v37, 0.0  ;;  %v5784_v53 = vpop.f32.mrb[48].mxu1 }
 0xbf8   : > { %v4324_v62 = vadd.f32 %v5784_v53, %v4229_v27  ;;  %v4318_v60 = vpop.f32.mrb[49].mxu1 }
 0xbf9   : > { %v4319_v23 = vadd.f32 %v4318_v60, %v4224_v47  ;;  %5792 = vmatprep.mubr.msk.f32.mxu1 %vm3142_vm11, %v4329_v26 }
 0xbfa   : > { %5793 = vmatmul.mubr.msk.f32.gmra.mrb[52].mxu1 %vm3142_vm11, %v4330_v35  ;;  %v4332_v61 = vmax.f32 %v4324_v62, 0.0 }
 0xbfb   : > { %v4331_v18 = vmax.f32 %v4319_v23, 0.0 }
 0xbfd   : > { %5795 = vmatprep.mubr.msk.f32.mxu1 %vm3142_vm11, %v4331_v18 }
 0xbfe   : > { %5796 = vmatmul.mubr.msk.f32.gmra.mrb[54].mxu1 %vm3142_vm11, %v4332_v61  ;;  %vm4506_vm11 = vcmp.ne.s32.totalorder %v4498_v3, 0 }
 0xbff   : > { %4828 = vmatprep.mubr.f32.mxu1 %v4455_v45  ;;  %v8978_v34 = vsel %vm4506_vm11, 1.0, %v6989_v0 }
 0xcc9   : > { %v8865_v50 = vpop.f32.mrb[50].mxu1 }
 0xcca   : > { %4449 = vst.msk [vmem:[%s842_s5 + $0x8] sm:$0xff] %vm3964_vm7, %v8865_v50  ;;  %4520 = vrot.lane.b32.xlu0 %v8865_v50, %s7016_s4  ;;  %v8871_v55 = vpop.f32.mrb[51].mxu1 }
 0xccb   : > { %4448 = vst.msk [vmem:[%s842_s5] sm:$0xff] %vm3964_vm7, %v8871_v55  ;;  %4518 = vrot.lane.b32.xlu1 %v8871_v55, %s7016_s4  ;;  %v6685_v22 = vpack.i.bf16 %v8865_v50, %v8871_v55  ;;  %v6368_v51 = vpack.c.bf16 %v8865_v50, %v8871_v55 }
 0xccd   : > { %v8881_v15 = vpop.f32.mrb[52].mxu1 }
 0xcce   : > { %4451 = vst.msk [vmem:[%s842_s5 + $0x18] sm:$0xff] %vm3964_vm7, %v8881_v15  ;;  %4575 = vrot.lane.b32.xlu0 %v8865_v50, %s6990_s11  ;;  %v8887_v54 = vpop.f32.mrb[53].mxu1 }
 0xccf   : > { %4450 = vst.msk [vmem:[%s842_s5 + $0x10] sm:$0xff] %vm3964_vm7, %v8887_v54  ;;  %4573 = vrot.lane.b32.xlu1 %v8871_v55, %s6990_s11  ;;  %v6690_v11 = vpack.i.bf16 %v8881_v15, %v8887_v54  ;;  %v6373_v5 = vpack.c.bf16 %v8881_v15, %v8887_v54 }
 0xcd1   : > { %v8897_v39 = vpop.f32.mrb[54].mxu1 }
 0xcd2   : > { %4453 = vst.msk [vmem:[%s842_s5 + $0x28] sm:$0xff] %vm3964_vm7, %v8897_v39  ;;  %4583 = vrot.lane.b32.xlu0 %v8897_v39, %s6990_s11  ;;  %v8903_v19 = vpop.f32.mrb[55].mxu1 }
 0xcd3   : > { %4452 = vst.msk [vmem:[%s842_s5 + $0x20] sm:$0xff] %vm3964_vm7, %v8903_v19  ;;  %4581 = vrot.lane.b32.xlu1 %v8903_v19, %s6990_s11  ;;  %v6695_v6 = vpack.i.bf16 %v8897_v39, %v8903_v19  ;;  %v6378_v29 = vpack.c.bf16 %v8897_v39, %v8903_v19  ;;  %s847_s5 = scalar_lea.vmem %s9382_s23, %s5559_s1 }
 0xcd6   : > { %4524 = vrot.lane.b32.xlu0 %v8881_v15, %s7016_s4 }
 0xcd7   : > { %4522 = vrot.lane.b32.xlu1 %v8887_v54, %s7016_s4 }
 0xcda   : > { %4579 = vrot.lane.b32.xlu0 %v8881_v15, %s6990_s11 }
 0xcdb   : > { %4577 = vrot.lane.b32.xlu1 %v8887_v54, %s6990_s11 }
 0xcde   : > { %4528 = vrot.lane.b32.xlu0 %v8897_v39, %s7016_s4 }
 0xcdf   : > { %4526 = vrot.lane.b32.xlu1 %v8903_v19, %s7016_s4  ;;  %s7020_s4 = smov 126  }
 0xce2   : > { %6691 = vrot.lane.b32.xlu0 %v6690_v11, %s7019_s13 }
 0xce3   : > { %6686 = vrot.lane.b32.xlu1 %v6685_v22, %s7019_s13 }
 0xce6   : > { %4609 = vrot.lane.b32.xlu0 %v8871_v55, %s6992_s26 }
 0xce7   : > { %6696 = vrot.lane.b32.xlu1 %v6695_v6, %s7019_s13 }
 0xcea   : > { %4613 = vrot.lane.b32.xlu0 %v8887_v54, %s6992_s26 }
 0xceb   : > { %4611 = vrot.lane.b32.xlu1 %v8865_v50, %s6992_s26 }
 0xcee   : > { %4617 = vrot.lane.b32.xlu0 %v8903_v19, %s6992_s26 }
 0xcef   : > { %4615 = vrot.lane.b32.xlu1 %v8881_v15, %s6992_s26 }
 0xcf2   : > { %6701 = vrot.lane.b32.xlu0 %v6685_v22, %s7020_s4 }
 0xcf3   : > { %4619 = vrot.lane.b32.xlu1 %v8897_v39, %s6992_s26 }
 0xcf6   : > { %6711 = vrot.lane.b32.xlu0 %v6695_v6, %s7020_s4 }
 0xcf7   : > { %6706 = vrot.lane.b32.xlu1 %v6690_v11, %s7020_s4 }
 0xcfa   : > { %4671 = vrot.lane.b32.xlu0 %v8865_v50, %s7014_s3 }
 0xcfb   : > { %4669 = vrot.lane.b32.xlu1 %v8871_v55, %s7014_s3 }
 0xcfe   : > { %4675 = vrot.lane.b32.xlu0 %v8881_v15, %s7014_s3 }
 0xcff   : > { %4673 = vrot.lane.b32.xlu1 %v8887_v54, %s7014_s3 }
 0xd02   : > { %4679 = vrot.lane.b32.xlu0 %v8897_v39, %s7014_s3 }
 0xd03   : > { %4677 = vrot.lane.b32.xlu1 %v8903_v19, %s7014_s3 }
 0xd06   : > { %4706 = vperm.xlu0 %6634, %v4487_v13  }
 0xd07   : > { %4701 = vperm.xlu1 %6598, %v4486_v1  }
 0xd0a   : > { %4716 = vperm.xlu0 %6634, %v4489_v33  }
 0xd0b   : > { %4711 = vperm.xlu1 %6598, %v4488_v30  }
 0xd0e   : > { %4726 = vperm.xlu0 %6634, %v4491_v16  }
 0xd0f   : > { %4721 = vperm.xlu1 %6598, %v4490_v10  }
 0xd12   : > { %4736 = vperm.xlu0 %6634, %v4493_v40  }
 0xd13   : > { %4731 = vperm.xlu1 %6598, %v4492_v49  }
 0xd3c   : > { %v4521_v9 = vpop.permute.xlu0 %4520 }
 0xd3d   : > { %v4519_v8 = vpop.permute.xlu1 %4518  ;;  %v4537_v32 = vsel %vm3981_vm3, 0.0, %v4521_v9 }
 0xd3e   : > { %v4536_v2 = vsel %vm3981_vm3, 0.0, %v4519_v8  ;;  %v4543_v57 = vmul.f32 %v8978_v34, %v4537_v32 }
 0xd3f   : > { %v4542_v7 = vmul.f32 %v8978_v34, %v4536_v2 }
 0xd40   : > { %v4576_v25 = vpop.permute.xlu0 %4575 }
 0xd41   : > { %v4574_v14 = vpop.permute.xlu1 %4573  ;;  %v8983_v48 = vsel %vm1139_vm1, 0.0, %v4576_v25  ;;  %v6353_v24 = vpack.c.bf16 %v4543_v57, %v4542_v7 }
 0xd42   : > { %v8986_v41 = vsel %vm1139_vm1, 0.0, %v4574_v14  ;;  %v4604_v21 = vmul.f32 %v8978_v34, %v8983_v48 }
 0xd43   : > { %v4603_v58 = vmul.f32 %v8978_v34, %v8986_v41  ;;  %v4597_v50 = vmul.f32 %v8989_v4, %v8986_v41 }
 0xd44   : > { %v4584_v17 = vpop.permute.xlu0 %4583 }
 0xd45   : > { %v4596_v59 = vsel %vm1139_vm1, 0.0, %v4584_v17  ;;  %v4582_v44 = vpop.permute.xlu1 %4581  ;;  %v6355_v20 = vpack.c.bf16 %v4604_v21, %v4603_v58 }
 0xd46   : > { %v4602_v28 = vmul.f32 %v8989_v4, %v4596_v59  ;;  %v4595_v31 = vsel %vm1139_vm1, 0.0, %v4582_v44  ;;  %v4608_v61 = vmul.f32 %v8978_v34, %v4596_v59  ;;  %v4598_v44 = vmul.f32 %v8989_v4, %v8983_v48 }
 0xd47   : > { %v4601_v0 = vmul.f32 %v8989_v4, %v4595_v31  ;;  %v4607_v22 = vmul.f32 %v8978_v34, %v4595_v31 }
 0xd48   : > { %v4525_v56 = vpop.permute.xlu0 %4524  ;;  %v6380_v15 = vpack.c.bf16 %v4598_v44, %v4597_v50 }
 0xd49   : > { %v6351_v38 = vpack.c.bf16 %v4602_v28, %v4601_v0  ;;  %v4539_v36 = vsel %vm3981_vm3, 0.0, %v4525_v56  ;;  %v4523_v46 = vpop.permute.xlu1 %4522  ;;  %v6363_v33 = vpack.c.bf16 %v4608_v61, %v4607_v22 }
 0xd4a   : > { %v4545_v43 = vmul.f32 %v8978_v34, %v4539_v36  ;;  %v4538_v42 = vsel %vm3981_vm3, 0.0, %v4523_v46  ;;  %v4459_v46 = vld [vmem:[%s9375_s2 + $0x28] sm:$0xff] }
 0xd4b   : > { %v4544_v12 = vmul.f32 %v8978_v34, %v4538_v42  ;;  %6352 = vmatprep.subr.bf16.mxu1 %v6351_v38 }
 0xd4c   : > { %v4580_v37 = vpop.permute.xlu0 %4579  ;;  %6354 = vmatpush3.bf16.msra.mxu1 %v6353_v24 }
 0xd4d   : > { %v6357_v63 = vpack.c.bf16 %v4545_v43, %v4544_v12  ;;  %v4594_v27 = vsel %vm1139_vm1, 0.0, %v4580_v37  ;;  %6356 = vmatprep.subr.bf16.mxu1 %v6355_v20  ;;  %v4578_v26 = vpop.permute.xlu1 %4577  ;;  %v4458_v20 = vld [vmem:[%s9375_s2 + $0x20] sm:$0xff]  ;;  %v4463_v12 = vld [vmem:[%s9375_s2 + $0x48] sm:$0xff] }
 0xd4e   : > { %v4606_v53 = vmul.f32 %v8978_v34, %v4594_v27  ;;  %v4593_v47 = vsel %vm1139_vm1, 0.0, %v4578_v26  ;;  %v4600_v54 = vmul.f32 %v8989_v4, %v4594_v27 }
 0xd4f   : > { %v4605_v35 = vmul.f32 %v8978_v34, %v4593_v47 }
 0xd50   : > { %v4529_v62 = vpop.permute.xlu0 %4528  ;;  %6358 = vmatpush3.bf16.msra.mxu1 %v6357_v63 }
 0xd51   : > { %v6359_v60 = vpack.c.bf16 %v4606_v53, %v4605_v35  ;;  %v4541_v23 = vsel %vm3981_vm3, 0.0, %v4529_v62  ;;  %v4527_v18 = vpop.permute.xlu1 %4526  ;;  %v4462_v53 = vld [vmem:[%s9375_s2 + $0x40] sm:$0xff] }
 0xd52   : > { %v4547_v11 = vmul.f32 %v8978_v34, %v4541_v23  ;;  %v4540_v6 = vsel %vm3981_vm3, 0.0, %v4527_v18  ;;  %v4466_v23 = vld [vmem:[%s9375_s2 + $0x60] sm:$0xff]  ;;  %v4471_v18 = vld [vmem:[%s9375_s2 + $0x88] sm:$0xff] }
 0xd53   : > { %v4546_v45 = vmul.f32 %v8978_v34, %v4540_v6  ;;  %6360 = vmatprep.subr.bf16.mxu1 %v6359_v60 }
 0xd54   : > { %v6692_v30 = vpop.permute.xlu0 %6691 }
 0xd55   : > { %v6361_v13 = vpack.c.bf16 %v4547_v11, %v4546_v45  ;;  %v6687_v1 = vpop.permute.xlu1 %6686  ;;  %v6694_v3 = vunpack.i.h.bf16 %v6692_v30  ;;  %v6693_v9 = vunpack.i.l.bf16 %v6692_v30 }
 0xd56   : > { %v6689_v16 = vunpack.i.h.bf16 %v6687_v1  ;;  %v6688_v10 = vunpack.i.l.bf16 %v6687_v1  ;;  %v4475_v1 = vld [vmem:[%s9375_s2 + $0xa8] sm:$0xff] }
 0xd57   : > { %6362 = vmatpush3.bf16.msra.mxu1 %v6361_v13  ;;  %v6370_v25 = vpack.c.bf16 %v6694_v3, %v6693_v9  ;;  %v4470_v13 = vld [vmem:[%s9375_s2 + $0x80] sm:$0xff]  ;;  %v4479_v3 = vld [vmem:[%s9375_s2 + $0xc8] sm:$0xff] }
 0xd58   : > { %v6365_v40 = vpack.c.bf16 %v6689_v16, %v6688_v10  ;;  %6364 = vmatprep.subr.bf16.mxu1 %v6363_v33  ;;  %v4610_v14 = vpop.permute.xlu0 %4609 }
 0xd59   : > { %v6697_v8 = vpop.permute.xlu1 %6696  ;;  %v4627_v55 = vsel %vm3981_vm3, %v4610_v14, 0.0  ;;  %v4478_v14 = vld [vmem:[%s9375_s2 + $0xc0] sm:$0xff] }
 0xd5a   : > { %v6699_v32 = vunpack.i.h.bf16 %v6697_v8  ;;  %v6698_v2 = vunpack.i.l.bf16 %v6697_v8  ;;  %v4633_v31 = vmul.f32 %v8989_v4, %v4627_v55  ;;  %v4639_v27 = vmul.f32 %v8978_v34, %v4627_v55 }
 0xd5b   : > { %6367 = vmatpush3.bf16.msk.msra.mxu1 %vm9016_vm9, %v6365_v40 }
 0xd5c   : > { %6369 = vmatprep.subr.bf16.mxu1 %v6368_v51  ;;  %v6375_v51 = vpack.c.bf16 %v6699_v32, %v6698_v2  ;;  %v4614_v28 = vpop.permute.xlu0 %4613  ;;  %v4483_v32 = vld [vmem:[%s9375_s2 + $0xe8] sm:$0xff] }
 0xd5d   : > { %v4612_v17 = vpop.permute.xlu1 %4611  ;;  %v4629_v58 = vsel %vm3981_vm3, %v4614_v28, 0.0 }
 0xd5e   : > { %v4628_v59 = vsel %vm3981_vm3, %v4612_v17, 0.0  ;;  %v4635_v19 = vmul.f32 %v8989_v4, %v4629_v58  ;;  %v4641_v60 = vmul.f32 %v8978_v34, %v4629_v58 }
 0xd5f   : > { %6372 = vmatpush3.bf16.msk.msra.mxu1 %vm9016_vm9, %v6370_v25  ;;  %v4634_v7 = vmul.f32 %v8989_v4, %v4628_v59  ;;  %v4640_v37 = vmul.f32 %v8978_v34, %v4628_v59 }
 0xd60   : > { %6374 = vmatprep.subr.bf16.mxu1 %v6373_v5  ;;  %v4599_v5 = vmul.f32 %v8989_v4, %v4593_v47  ;;  %v4618_v56 = vpop.permute.xlu0 %4617  ;;  %v4467_v47 = vld [vmem:[%s9375_s2 + $0x68] sm:$0xff] }
 0xd61   : > { %v4616_v57 = vpop.permute.xlu1 %4615  ;;  %v6382_v48 = vpack.c.bf16 %v4634_v7, %v4633_v31  ;;  %v4631_v36 = vsel %vm3981_vm3, %v4618_v56, 0.0  ;;  %v6393_v35 = vpack.c.bf16 %v4640_v37, %v4639_v27  ;;  %v4457_v7 = vld [vmem:[%s9375_s2 + $0x18] sm:$0xff]  ;;  %v4472_v37 = vld [vmem:[%s9375_s2 + $0x90] sm:$0xff] }
 0xd62   : > { %v4630_v41 = vsel %vm3981_vm3, %v4616_v57, 0.0  ;;  %v6384_v0 = vpack.c.bf16 %v4600_v54, %v4599_v5  ;;  %v4637_v42 = vmul.f32 %v8989_v4, %v4631_v36  ;;  %v4643_v45 = vmul.f32 %v8978_v34, %v4631_v36  ;;  %v4482_v57 = vld [vmem:[%s9375_s2 + $0xe0] sm:$0xff]  ;;  %v4476_v27 = vld [vmem:[%s9375_s2 + $0xb0] sm:$0xff] }
 0xd63   : > { %6377 = vmatpush3.bf16.msk.msra.mxu1 %vm9016_vm9, %v6375_v51  ;;  %v4636_v38 = vmul.f32 %v8989_v4, %v4630_v41  ;;  %v4642_v62 = vmul.f32 %v8978_v34, %v4630_v41 }
 0xd64   : > { %6379 = vmatprep.subr.bf16.mxu1 %v6378_v29  ;;  %v4454_v29 = vld [vmem:[%s9375_s2] sm:$0xff]  ;;  %v6702_v26 = vpop.permute.xlu0 %6701 }
 0xd65   : > { %v4620_v21 = vpop.permute.xlu1 %4619  ;;  %v6387_v24 = vpack.c.bf16 %v4636_v38, %v4635_v19  ;;  %v6396_v61 = vpack.c.bf16 %v4642_v62, %v4641_v60  ;;  %v6704_v33 = vunpack.i.h.bf16 %v6702_v26  ;;  %v6703_v30 = vunpack.i.l.bf16 %v6702_v26  ;;  %v4481_v26 = vld [vmem:[%s9375_s2 + $0xd8] sm:$0xff]  ;;  %v4982_v62 = vld [vmem:[%s9381_s0] sm:$0xf] }
 0xd66   : > { %v4632_v39 = vsel %vm3981_vm3, %v4620_v21, 0.0  ;;  %vm9100_vm3 = vmpackc.low %vm4566_vm5, %vm4566_vm5  ;;  %5798 = vmatprep.subr.msk.mxu0 %vm1478_vm10, %v4982_v62 }
 0xd67   : > { %6381 = vmatpush3.bf16.msra.mxu1 %v6380_v15  ;;  %v4638_v43 = vmul.f32 %v8989_v4, %v4632_v39  ;;  %v4644_v22 = vmul.f32 %v8978_v34, %v4632_v39  ;;  %v4474_v34 = vld [vmem:[%s9375_s2 + $0xa0] sm:$0xff]  ;;  %v6402_v9 = vpack.c.bf16 %v6704_v33, %v6703_v30  ;;  %5799 = vmatpush3.msk.msra.mxu0 %vm1478_vm10, %v4982_v62 }
 0xd68   : > { %6383 = vmatprep.subr.bf16.mxu1 %v6382_v48  ;;  %v6712_v11 = vpop.permute.xlu0 %6711 }
 0xd69   : > { %v6390_v63 = vpack.c.bf16 %v4638_v43, %v4637_v42  ;;  %v6707_v6 = vpop.permute.xlu1 %6706  ;;  %v6399_v16 = vpack.c.bf16 %v4644_v22, %v4643_v45  ;;  %v6714_v2 = vunpack.i.h.bf16 %v6712_v11  ;;  %v6713_v17 = vunpack.i.l.bf16 %v6712_v11  ;;  %v4464_v43 = vld [vmem:[%s9375_s2 + $0x50] sm:$0xff]  ;;  %v4469_v42 = vld [vmem:[%s9375_s2 + $0x78] sm:$0xff] }
 0xd6a   : > { %v6709_v8 = vunpack.i.h.bf16 %v6707_v6  ;;  %v6708_v25 = vunpack.i.l.bf16 %v6707_v6 }
 0xd6b   : > { %6385 = vmatpush3.bf16.msra.mxu1 %v6384_v0  ;;  %v6410_v28 = vpack.c.bf16 %v6714_v2, %v6713_v17 }
 0xd6c   : > { %6386 = vmatprep.subr.bf16.mxu1 %v7006_v52  ;;  %v4672_v10 = vpop.permute.xlu0 %4671  ;;  %v6406_v59 = vpack.c.bf16 %v6709_v8, %v6708_v25 }
 0xd6d   : > { %v4670_v40 = vpop.permute.xlu1 %4669  ;;  %v4688_v55 = vsel %vm1139_vm1, %v4672_v10, 0.0 }
 0xd6e   : > { %4829 = vmatmul.mubr.f32.vlgmr.msra.gmra.mrb[56].mxu1 %v4454_v29  ;;  %v4687_v51 = vsel %vm1139_vm1, %v4670_v40, 0.0  ;;  %v4694_v31 = vmul.f32 %v8989_v4, %v4688_v55 }
 0xd6f   : > { %6388 = vmatpush1.bf16.msra.mxu1 %v6387_v24  ;;  %4833 = vmatprep.mubr.f32.mxu1 %v4459_v46  ;;  %v4693_v15 = vmul.f32 %v8989_v4, %v4687_v51  ;;  %v4456_v46 = vld [vmem:[%s9375_s2 + $0x10] sm:$0xff]  ;;  %v4461_v24 = vld [vmem:[%s9375_s2 + $0x38] sm:$0xff] }
 0xd70   : > { %6389 = vmatprep.subr.bf16.mxu1 %v7006_v52  ;;  %v4676_v44 = vpop.permute.xlu0 %4675 }
 0xd71   : > { %v4674_v50 = vpop.permute.xlu1 %4673  ;;  %v4690_v54 = vsel %vm1139_vm1, %v4676_v44, 0.0  ;;  %v6414_v21 = vpack.c.bf16 %v4694_v31, %v4693_v15 }
 0xd72   : > { %4834 = vmatmul.mubr.f32.gmra.mrb[58].mxu1 %v4458_v20  ;;  %v4689_v5 = vsel %vm1139_vm1, %v4674_v50, 0.0  ;;  %v4696_v58 = vmul.f32 %v8989_v4, %v4690_v54  ;;  %v4468_v20 = vld [vmem:[%s9375_s2 + $0x70] sm:$0xff] }
 0xd73   : > { %6391 = vmatpush1.bf16.msra.mxu1 %v6390_v63  ;;  %4838 = vmatprep.mubr.f32.mxu1 %v4463_v12  ;;  %v4695_v0 = vmul.f32 %v8989_v4, %v4689_v5  ;;  %v4473_v12 = vld [vmem:[%s9375_s2 + $0x98] sm:$0xff] }
 0xd74   : > { %6392 = vmatprep.subr.bf16.mxu1 %v7006_v52  ;;  %v4680_v48 = vpop.permute.xlu0 %4679  ;;  %v4477_v63 = vld [vmem:[%s9375_s2 + $0xb8] sm:$0xff] }
 0xd75   : > { %v4678_v41 = vpop.permute.xlu1 %4677  ;;  %v4692_v56 = vsel %vm1139_vm1, %v4680_v48, 0.0  ;;  %v6417_v39 = vpack.c.bf16 %v4696_v58, %v4695_v0 }
 0xd76   : > { %4839 = vmatmul.mubr.f32.gmra.mrb[60].mxu1 %v4462_v53  ;;  %v4691_v38 = vsel %vm1139_vm1, %v4678_v41, 0.0  ;;  %v4698_v19 = vmul.f32 %v8989_v4, %v4692_v56  ;;  %v4480_v53 = vld [vmem:[%s9375_s2 + $0xd0] sm:$0xff] }
 0xd77   : > { %6394 = vmatpush1.bf16.msra.mxu1 %v6393_v35  ;;  %4843 = vmatprep.mubr.f32.mxu1 %v4467_v47  ;;  %v4697_v29 = vmul.f32 %v8989_v4, %v4691_v38  ;;  %v4460_v4 = vld [vmem:[%s9375_s2 + $0x30] sm:$0xff]  ;;  %v4485_v47 = vld [vmem:[%s9375_s2 + $0xf8] sm:$0xff] }
 0xd78   : > { %6395 = vmatprep.subr.bf16.mxu1 %v7006_v52  ;;  %v4484_v35 = vld [vmem:[%s9375_s2 + $0xf0] sm:$0xff] }
 0xd79   : > { %v6420_v36 = vpack.c.bf16 %v4698_v19, %v4697_v29 }
 0xd7a   : > { %4844 = vmatmul.mubr.f32.gmra.mrb[62].mxu1 %v4466_v23 }
 0xd7b   : > { %6397 = vmatpush1.bf16.msra.mxu1 %v6396_v61  ;;  %4848 = vmatprep.mubr.f32.mxu1 %v4471_v18 }
 0xd7c   : > { %6398 = vmatprep.subr.bf16.mxu1 %v7006_v52 }
 0xd7e   : > { %4849 = vmatmul.mubr.f32.gmra.mrb[64].mxu1 %v4470_v13 }
 0xd7f   : > { %6400 = vmatpush1.bf16.msra.mxu1 %v6399_v16  ;;  %4853 = vmatprep.mubr.f32.mxu1 %v4475_v1 }
 0xd80   : > { %6401 = vmatprep.subr.bf16.mxu1 %v7006_v52 }
 0xd82   : > { %4854 = vmatmul.mubr.f32.gmra.mrb[66].mxu1 %v4474_v34 }
 0xd83   : > { %6404 = vmatpush1.bf16.msk.msra.mxu1 %vm9100_vm3, %v6402_v9  ;;  %4858 = vmatprep.mubr.f32.mxu1 %v4479_v3 }
 0xd84   : > { %6405 = vmatprep.subr.bf16.mxu1 %v7006_v52 }
 0xd85   : > { %v4707_v51 = vpop.permute.xlu0 %4706 }
 0xd86   : > { %4859 = vmatmul.mubr.f32.gmra.mrb[68].mxu1 %v4478_v14  ;;  %v4702_v17 = vpop.permute.xlu1 %4701 }
 0xd87   : > { %6408 = vmatpush1.bf16.msk.msra.mxu1 %vm9100_vm3, %v6406_v59  ;;  %4863 = vmatprep.mubr.f32.mxu1 %v4483_v32 }
 0xd88   : > { %6409 = vmatprep.subr.bf16.mxu1 %v7006_v52 }
 0xd89   : > { %v4717_v0 = vpop.permute.xlu0 %4716 }
 0xd8a   : > { %4864 = vmatmul.mubr.f32.gmra.mrb[70].mxu1 %v4482_v57  ;;  %v4712_v54 = vpop.permute.xlu1 %4711 }
 0xd8b   : > { %6412 = vmatpush1.bf16.msk.msra.mxu1 %vm9100_vm3, %v6410_v28  ;;  %5537 = vmatprep.mubr.msk.f32.mxu1 %vm4739_vm13, %v4457_v7 }
 0xd8c   : > { %6413 = vmatprep.subr.bf16.mxu1 %v7006_v52 }
 0xd8f   : > { %6415 = vmatpush1.bf16.msra.mxu1 %v6414_v21 }
 0xd90   : > { %6416 = vmatprep.subr.bf16.mxu1 %v7006_v52 }
 0xd93   : > { %6418 = vmatpush1.bf16.msra.mxu1 %v6417_v39 }
 0xd94   : > { %6419 = vmatprep.subr.bf16.mxu1 %v7006_v52  ;;  %v4465_v52 = vld [vmem:[%s9375_s2 + $0x58] sm:$0xff] }
 0xd97   : > { %6421 = vmatpush1.bf16.msra.mxu1 %v6420_v36  ;;  %v4722_v36 = vpop.permute.xlu1 %4721 }
 0xd9a   : > { %4934 = vmatmul.mubr.f32.vlgmr.msra.gmra.mrb[72].mxu1 %v4456_v46 }
 0xd9b   : > { %5538 = vmatprep.mubr.msk.f32.mxu1 %vm4739_vm13, %v4461_v24 }
 0xd9e   : > { %4939 = vmatmul.mubr.f32.gmra.mrb[74].mxu1 %v4460_v4 }
 0xd9f   : > { %5539 = vmatprep.mubr.msk.f32.mxu1 %vm4739_vm13, %v4465_v52 }
 0xda2   : > { %4944 = vmatmul.mubr.f32.gmra.mrb[76].mxu1 %v4464_v43 }
 0xda3   : > { %5540 = vmatprep.mubr.msk.f32.mxu1 %vm4739_vm13, %v4469_v42  ;;  %v4727_v42 = vpop.permute.xlu0 %4726 }
 0xda6   : > { %4949 = vmatmul.mubr.f32.gmra.mrb[78].mxu1 %v4468_v20 }
 0xda7   : > { %5541 = vmatprep.mubr.msk.f32.mxu1 %vm4739_vm13, %v4473_v12 }
 0xdaa   : > { %4954 = vmatmul.mubr.f32.gmra.mrb[80].mxu1 %v4472_v37 }
 0xdab   : > { %5542 = vmatprep.mubr.msk.f32.mxu1 %vm4739_vm13, %v4477_v63 }
 0xdae   : > { %4959 = vmatmul.mubr.f32.gmra.mrb[82].mxu1 %v4476_v27 }
 0xdaf   : > { %5543 = vmatprep.mubr.msk.f32.mxu1 %vm4739_vm13, %v4481_v26  ;;  %v4732_v26 = vpop.permute.xlu1 %4731 }
 0xdb2   : > { %4964 = vmatmul.mubr.f32.gmra.mrb[84].mxu1 %v4480_v53 }
 0xdb3   : > { %5544 = vmatprep.mubr.msk.f32.mxu1 %vm4739_vm13, %v4485_v47 }
 0xdb6   : > { %4969 = vmatmul.mubr.f32.gmra.mrb[86].mxu1 %v4484_v35 }
 0xe41   : > { %v5713_v60 = vpop.f32.mrb[56].mxu1 }
 0xe42   : > { %v5714_v23 = vpop.f32.mrb[57].mxu1 }
 0xe43   : > { %v5715_v18 = vadd.f32 %v5714_v23, %v5713_v60  ;;  %v4737_v23 = vpop.permute.xlu0 %4736 }
 0xe45   : > { %v5716_v61 = vpop.f32.mrb[58].mxu1  ;;  %v4831_v59 = vadd.f32 %v5715_v18, %v4702_v17 }
 0xe46   : > { %v5717_v22 = vpop.f32.mrb[59].mxu1 }
 0xe47   : > { %v5718_v11 = vadd.f32 %v5717_v22, %v5716_v61 }
 0xe49   : > { %v5719_v6 = vpop.f32.mrb[60].mxu1  ;;  %v4836_v7 = vadd.f32 %v5718_v11, %v4707_v51 }
 0xe4a   : > { %v5720_v45 = vpop.f32.mrb[61].mxu1 }
 0xe4b   : > { %v5721_v13 = vadd.f32 %v5720_v45, %v5719_v6 }
 0xe4d   : > { %v5722_v1 = vpop.f32.mrb[62].mxu1  ;;  %v4841_v48 = vadd.f32 %v5721_v13, %v4712_v54 }
 0xe4e   : > { %v5723_v33 = vpop.f32.mrb[63].mxu1 }
 0xe4f   : > { %v5724_v30 = vadd.f32 %v5723_v33, %v5722_v1 }
 0xe51   : > { %v5725_v16 = vpop.f32.mrb[64].mxu1  ;;  %v4846_v38 = vadd.f32 %v5724_v30, %v4717_v0 }
 0xe52   : > { %v5726_v10 = vpop.f32.mrb[65].mxu1 }
 0xe53   : > { %v5727_v40 = vadd.f32 %v5726_v10, %v5725_v16 }
 0xe55   : > { %v5728_v34 = vpop.f32.mrb[66].mxu1  ;;  %v4851_v24 = vadd.f32 %v5727_v40, %v4722_v36 }
 0xe56   : > { %v5729_v49 = vpop.f32.mrb[67].mxu1 }
 0xe57   : > { %v5730_v3 = vadd.f32 %v5729_v49, %v5728_v34 }
 0xe59   : > { %v5731_v9 = vpop.f32.mrb[68].mxu1  ;;  %v4856_v12 = vadd.f32 %v5730_v3, %v4727_v42 }
 0xe5a   : > { %v5732_v8 = vpop.f32.mrb[69].mxu1 }
 0xe5b   : > { %v5733_v25 = vadd.f32 %v5732_v8, %v5731_v9 }
 0xe5d   : > { %v5734_v14 = vpop.f32.mrb[70].mxu1  ;;  %v4861_v47 = vadd.f32 %v5733_v25, %v4732_v26 }
 0xe5e   : > { %v5735_v32 = vpop.f32.mrb[71].mxu1 }
 0xe5f   : > { %v5736_v2 = vadd.f32 %v5735_v32, %v5734_v14 }
 0xe61   : > { %v4866_v61 = vadd.f32 %v5736_v2, %v4737_v23 }
 0xe6d   : > { %v4935_v44 = vpop.f32.mrb[72].mxu1 }
 0xe6e   : > { %v4936_v50 = vadd.f32 %v4935_v44, %v4831_v59  ;;  %v4937_v55 = vpop.f32.mrb[73].mxu1 }
 0xe70   : > { %v4974_v57 = vmax.f32 %v4936_v50, 0.0 }
 0xe71   : > { %v4940_v28 = vpop.f32.mrb[74].mxu1 }
 0xe72   : > { %v4941_v31 = vadd.f32 %v4940_v28, %v4836_v7  ;;  %5800 = vmatprep.mubr.msk.f32.mxu0 %vm3964_vm7, %v4974_v57  ;;  %v4942_v15 = vpop.f32.mrb[75].mxu1 }
 0xe74   : > { %v4975_v5 = vmax.f32 %v4941_v31, 0.0 }
 0xe75   : > { %v4945_v41 = vpop.f32.mrb[76].mxu1 }
 0xe76   : > { %v4946_v21 = vadd.f32 %v4945_v41, %v4841_v48  ;;  %5801 = vmatmul.mubr.msk.f32.vlgmr.msra.gmra.mrb[20].mxu0 %vm3964_vm7, %v4975_v5  ;;  %v4947_v58 = vpop.f32.mrb[77].mxu1 }
 0xe78   : > { %v4976_v56 = vmax.f32 %v4946_v21, 0.0 }
 0xe79   : > { %v4950_v39 = vpop.f32.mrb[78].mxu1 }
 0xe7a   : > { %v4951_v19 = vadd.f32 %v4950_v39, %v4846_v38  ;;  %5803 = vmatprep.mubr.msk.f32.mxu0 %vm3964_vm7, %v4976_v56  ;;  %v4952_v29 = vpop.f32.mrb[79].mxu1 }
 0xe7c   : > { %v4977_v46 = vmax.f32 %v4951_v19, 0.0 }
 0xe7d   : > { %v4955_v4 = vpop.f32.mrb[80].mxu1 }
 0xe7e   : > { %v4956_v52 = vadd.f32 %v4955_v4, %v4851_v24  ;;  %5804 = vmatmul.mubr.msk.f32.gmra.mrb[22].mxu0 %vm3964_vm7, %v4977_v46  ;;  %v4957_v43 = vpop.f32.mrb[81].mxu1 }
 0xe80   : > { %v4978_v20 = vmax.f32 %v4956_v52, 0.0 }
 0xe81   : > { %v4960_v37 = vpop.f32.mrb[82].mxu1 }
 0xe82   : > { %v4961_v63 = vadd.f32 %v4960_v37, %v4856_v12  ;;  %5806 = vmatprep.mubr.msk.f32.mxu0 %vm3964_vm7, %v4978_v20  ;;  %v4962_v27 = vpop.f32.mrb[83].mxu1 }
 0xe84   : > { %v4979_v53 = vmax.f32 %v4961_v63, 0.0 }
 0xe85   : > { %v4965_v35 = vpop.f32.mrb[84].mxu1 }
 0xe86   : > { %v4966_v62 = vadd.f32 %v4965_v35, %v4861_v47  ;;  %5807 = vmatmul.mubr.msk.f32.gmra.mrb[24].mxu0 %vm3964_vm7, %v4979_v53  ;;  %v4967_v60 = vpop.f32.mrb[85].mxu1 }
 0xe88   : > { %v4980_v18 = vmax.f32 %v4966_v62, 0.0 }
 0xe89   : > { %v4970_v22 = vpop.f32.mrb[86].mxu1 }
 0xe8a   : > { %v4971_v11 = vadd.f32 %v4970_v22, %v4866_v61  ;;  %5809 = vmatprep.mubr.msk.f32.mxu0 %vm3964_vm7, %v4980_v18  ;;  %v4972_v6 = vpop.f32.mrb[87].mxu1 }
 0xe8c   : > { %v4981_v45 = vmax.f32 %v4971_v11, 0.0 }
 0xe8e   : > { %5810 = vmatmul.mubr.msk.f32.gmra.mrb[26].mxu0 %vm3964_vm7, %v4981_v45 }
 0xf49   : > { %v5802_v13 = vpop.f32.mrb[20].mxu0 }
 0xf4a   : > { %5116 = vst.msk [vmem:[%s847_s5 + $0x8] sm:$0xff] %vm1139_vm1, %v5802_v13  ;;  %v5076_v1 = vpop.f32.mrb[21].mxu0 }
 0xf4b   : > { %5115 = vst.msk [vmem:[%s847_s5] sm:$0xff] %vm1139_vm1, %v5076_v1 }
 0xf51   : > { %v5805_v33 = vpop.f32.mrb[22].mxu0 }
 0xf52   : > { %5118 = vst.msk [vmem:[%s847_s5 + $0x18] sm:$0xff] %vm1139_vm1, %v5805_v33  ;;  %v5086_v30 = vpop.f32.mrb[23].mxu0 }
 0xf53   : > { %5117 = vst.msk [vmem:[%s847_s5 + $0x10] sm:$0xff] %vm1139_vm1, %v5086_v30 }
 0xf59   : > { %v5808_v16 = vpop.f32.mrb[24].mxu0 }
 0xf5a   : > { %5120 = vst.msk [vmem:[%s847_s5 + $0x28] sm:$0xff] %vm1139_vm1, %v5808_v16  ;;  %v5096_v10 = vpop.f32.mrb[25].mxu0 }
 0xf5b   : > { %5119 = vst.msk [vmem:[%s847_s5 + $0x20] sm:$0xff] %vm1139_vm1, %v5096_v10 }
 0xf61   : > { %v5811_v40 = vpop.f32.mrb[26].mxu0 }
 0xf62   : > { %5122 = vst.msk [vmem:[%s847_s5 + $0x38] sm:$0xff] %vm1139_vm1, %v5811_v40  ;;  %v5106_v34 = vpop.f32.mrb[27].mxu0 }
 0xf63   : > { %5121 = vst.msk [vmem:[%s847_s5 + $0x30] sm:$0xff] %vm1139_vm1, %v5106_v34 }
 0xf64 PF: > { %s9383_s30 = sld [smem:[#allocation20_spill]] }
 0xf6a   : > { %s38_s3 = sadd.s32 1, %s9383_s30  }
 0xf6b   : > { %p35_p11 = scmp.ge.s32.totalorder %s38_s3, 4  }
 0xf6d   :  { %37 = sbr.rel (!%p35_p11) target bundleno = 19 (0x13), region = 203 }
 0xf74   :  { %5208 = vsyncpa [#allocation3], 1 }
 0xf75   :  { %5210 = vsyncpa [#allocation3 + $0x1], 1 }
 0xf76   :  { %5211 = vsyncpa [#allocation5], 1 }
 0xf77   :  { %5212 = vsyncpa [#allocation8], 1 }
 0xf78   :  { %5213 = vsyncpa [#allocation11], 1 }
 0xf79   :  { %5214 = vsyncpa [#allocation14], 1 }

</bundles_post_ra>
